<compile_context>
chip_gen: v5e
topology: v5e:2x2
jax: 0.10.0
libtpu: 0.0.40
codegen_flags: <defaults>
</compile_context>

<pallas_src>
import jax
import jax.numpy as jnp
from jax.experimental import pallas as pl
from jax.experimental.pallas import tpu as pltpu

# ----------------------------- config (opt) ---------------------------------
EMBED_DIM = 32        # opt.embed_dim
HIDDEN_DIM = 32       # opt.hidden_dim
POLARITIES_DIM = 3    # opt.polarities_dim
N_HEAD = 8
VOCAB = 50
BATCH = 2
CTX_LEN = 8           # context sequence length
TGT_LEN = 4           # target / aspect sequence length
F32 = jnp.float32


# ----------------------------- in-kernel blocks ------------------------------
def _attention_block(k3, q3, wksT, bksT, wqsT, bqsT, wkp, bkp, bp):
    """Multi-head 'mlp'-score attention, all heads at once.

    k3: (B, Lk, E), q3: (B, Lq, E)
    wksT/bksT : (nH, E)/(nH, 1)  k projection folded with per-head score vec w0
    wqsT/bqsT : (nH, E)/(nH, 1)  q projection folded with per-head score vec w1
    wkp/bkp   : (nH, E, O)/(nH, 1, O)  per-head value+output projection
                (wk_h @ wp_h, bk_h @ wp_h -- both linear, folded host-side)
    bp        : (1, O)  output projection bias
    returns (B, Lq, O)
    """
    B, Lk, E = k3.shape
    Lq = q3.shape[1]
    nH = wksT.shape[0]
    O = wkp.shape[-1]
    G = B * nH

    # Per-head scalar scores with heads on the sublane axis (no transposes):
    # skT[b,h,l] = k3[b,l,:] . wks[:,h] + bks[h]
    wksB = jnp.broadcast_to(wksT[None], (B, nH, E))
    wqsB = jnp.broadcast_to(wqsT[None], (B, nH, E))
    skT = jnp.einsum('bhe,ble->bhl', wksB, k3,
                     preferred_element_type=F32) + bksT                  # (B,nH,Lk)
    sqT = jnp.einsum('bhe,bqe->bhq', wqsB, q3,
                     preferred_element_type=F32) + bqsT                  # (B,nH,Lq)

    # Separable MLP score: tanh(kx_h.w0 + qx_h.w1), all heads at once.
    # tanh bounds scores in [-1,1] -> max-subtraction is unnecessary.
    score = jnp.tanh(sqT[:, :, :, None] + skT[:, :, None, :])           # (B,nH,Lq,Lk)
    e = jnp.exp(score)
    denom = jnp.sum(e, axis=-1, keepdims=True)
    attn = e * pl.reciprocal(denom, approx=True)                        # softmax over keys

    # Value path folded with the head-wise output projection:
    # kp[b,h,l,:] = k3[b,l,:] @ (wk_h @ wp_h) + bk_h @ wp_h
    kG = jnp.broadcast_to(k3[:, None], (B, nH, Lk, E)).reshape(G, Lk, E)
    wkpG = jnp.broadcast_to(wkp[None], (B, nH, E, O)).reshape(G, E, O)
    bkpG = jnp.broadcast_to(bkp[None], (B, nH, 1, O)).reshape(G, 1, O)
    kpG = jnp.einsum('gle,geo->glo', kG, wkpG,
                     preferred_element_type=F32) + bkpG                 # (G,Lk,O)

    attnG = attn.reshape(G, Lq, Lk)
    outG = jnp.einsum('gql,glo->gqo', attnG, kpG,
                      preferred_element_type=F32)                       # (G,Lq,O)
    out = jnp.sum(outG.reshape(B, nH, Lq, O), axis=1) + bp              # (B,Lq,O)
    return out


def _ffn_block(x3, w1, b1, w2, b2):
    """PositionwiseFeedForward: relu(x @ W1 + b1) @ W2 + b2 (Conv1d k=1)."""
    B, L, H = x3.shape
    x2 = x3.reshape(B * L, H)
    h = jnp.maximum(jnp.dot(x2, w1, preferred_element_type=F32) + b1, 0.0)
    y = jnp.dot(h, w2, preferred_element_type=F32) + b2
    return y.reshape(B, L, H)


# ----------------------------- fused kernel ----------------------------------
def _aen_fused_kernel(ctx_ref, tgt_ref, icl_ref, itl_ref,
                      # attn_k
                      kwks, kbks, kwqs, kbqs, kwkp, kbkp, kbp,
                      # attn_q
                      qwks, qbks, qwqs, qbqs, qwkp, qbkp, qbp,
                      # attn_s1
                      swks, sbks, swqs, sbqs, swkp, sbkp, sbp,
                      # ffn_c
                      cw1, cb1, cw2, cb2,
                      # ffn_t
                      tw1, tb1, tw2, tb2,
                      # dense (pre-split)
                      wd1, wd2, wd3, bd,
                      o_ref):
    ctx = ctx_ref[...]                                   # (B, Lc, E)
    tgt = tgt_ref[...]                                   # (B, Lt, E)

    hc = _attention_block(ctx, ctx, kwks[...], kbks[...], kwqs[...], kbqs[...],
                          kwkp[...], kbkp[...], kbp[...])
    hc = _ffn_block(hc, cw1[...], cb1[...], cw2[...], cb2[...])         # (B, Lc, H)

    ht = _attention_block(ctx, tgt, qwks[...], qbks[...], qwqs[...], qbqs[...],
                          qwkp[...], qbkp[...], qbp[...])
    ht = _ffn_block(ht, tw1[...], tb1[...], tw2[...], tb2[...])         # (B, Lt, H)

    s1 = _attention_block(hc, ht, swks[...], sbks[...], swqs[...], sbqs[...],
                          swkp[...], sbkp[...], sbp[...])               # (B, Lt, H)

    icl = icl_ref[...]                                   # (B, 1) = 1/ctx_len
    itl = itl_ref[...]                                   # (B, 1) = 1/tgt_len
    hc_mean = jnp.sum(hc, axis=1) * icl                  # (B, H)
    s1_mean = jnp.sum(s1, axis=1) * icl                  # faithful: /context_len
    ht_mean = jnp.sum(ht, axis=1) * itl

    logits = (jnp.dot(hc_mean, wd1[...], preferred_element_type=F32)
              + jnp.dot(s1_mean, wd2[...], preferred_element_type=F32)
              + jnp.dot(ht_mean, wd3[...], preferred_element_type=F32)
              + bd[...])
    o_ref[...] = logits


# ----------------------------- host-side repacking ---------------------------
def _prep_attn(p, n_head):
    """One-time repack of Attention params for the fused kernel."""
    wk, bk, wq, bq, wp, bp, mlp_w = (p["wk"], p["bk"], p["wq"], p["bq"],
                                     p["wp"], p["bp"], p["mlp_w"])
    E = wk.shape[0]
    hd = wk.shape[1] // n_head
    O = wp.shape[1]
    wk4 = wk.reshape(E, n_head, hd)
    wq4 = wq.reshape(E, n_head, hd)
    bk4 = bk.reshape(1, n_head, hd)
    bq4 = bq.reshape(1, n_head, hd)
    wp4 = wp.reshape(n_head, hd, O)
    # score projections folded with the per-head mlp score weights
    wksT = jnp.einsum('ehd,d->he', wk4, mlp_w[0])        # (nH, E)
    wqsT = jnp.einsum('ehd,d->he', wq4, mlp_w[1])
    bksT = jnp.einsum('xhd,d->hx', bk4, mlp_w[0])        # (nH, 1)
    bqsT = jnp.einsum('xhd,d->hx', bq4, mlp_w[1])
    # value + output projection folded (both linear, no nonlinearity between)
    wkp = jnp.einsum('ehd,hdo->heo', wk4, wp4)           # (nH, E, O)
    bkp = jnp.einsum('xhd,hdo->hxo', bk4, wp4)           # (nH, 1, O)
    return (wksT, bksT, wqsT, bqsT, wkp, bkp, bp)


def prepare_params(params):
    ak = _prep_attn(params["attn_k"], N_HEAD)
    aq = _prep_attn(params["attn_q"], N_HEAD)
    as1 = _prep_attn(params["attn_s1"], N_HEAD)
    fc = (params["ffn_c"]["w1"], params["ffn_c"]["b1"],
          params["ffn_c"]["w2"], params["ffn_c"]["b2"])
    ft = (params["ffn_t"]["w1"], params["ffn_t"]["b1"],
          params["ffn_t"]["w2"], params["ffn_t"]["b2"])
    H = HIDDEN_DIM
    wd, bd = params["dense_w"], params["dense_b"]
    dense = (wd[:H], wd[H:2 * H], wd[2 * H:], bd)        # pre-split: no in-kernel concat
    return {"embed": params["embed"],
            "kernel_args": (*ak, *aq, *as1, *fc, *ft, *dense)}


# ----------------------------- model forward ----------------------------------
def aen_glove_forward(prepped, text_raw_indices, target_indices):
    ctx_len = jnp.sum(text_raw_indices != 0, axis=-1).astype(F32)
    tgt_len = jnp.sum(target_indices != 0, axis=-1).astype(F32)

    embed = prepped["embed"]
    context = jnp.take(embed, text_raw_indices, axis=0)                  # (B, Lc, E)
    target = jnp.take(embed, target_indices, axis=0)                     # (B, Lt, E)
    # SqueezeEmbedding: pad positions zeroed by the pack/pad round-trip.
    context = context * (text_raw_indices != 0)[..., None].astype(F32)
    target = target * (target_indices != 0)[..., None].astype(F32)
    # TODO(synk): SqueezeEmbedding's dynamic truncation to batch-max length is
    # a no-op for the all-nonzero synthetic indices used below.

    inv_clen = (1.0 / ctx_len)[:, None]                                  # (B, 1)
    inv_tlen = (1.0 / tgt_len)[:, None]

    B = context.shape[0]
    args = (context, target, inv_clen, inv_tlen, *prepped["kernel_args"])
    out = pl.pallas_call(
        _aen_fused_kernel,
        out_shape=jax.ShapeDtypeStruct((B, POLARITIES_DIM), F32),
        in_specs=[pl.BlockSpec(memory_space=pltpu.MemorySpace.VMEM)
                  for _ in args],
        out_specs=pl.BlockSpec(memory_space=pltpu.MemorySpace.VMEM),
    )(*args)
    return out


# ----------------------------- parameters -------------------------------------
def _linear(key, din, dout, scale=0.1):
    k1, k2 = jax.random.split(key)
    w = jax.random.uniform(k1, (din, dout), F32, -scale, scale)
    b = jax.random.uniform(k2, (1, dout), F32, -scale, scale)
    return w, b


def _attention_params(key, embed_dim, hidden_dim, n_head, out_dim):
    ks = jax.random.split(key, 4)
    wk, bk = _linear(ks[0], embed_dim, n_head * hidden_dim)
    wq, bq = _linear(ks[1], embed_dim, n_head * hidden_dim)
    wp, bp = _linear(ks[2], n_head * hidden_dim, out_dim)
    stdv = 1.0 / (hidden_dim ** 0.5)
    # row 0 multiplies kx (weight[:Hd] in torch), row 1 multiplies qx (weight[Hd:]).
    mlp_w = jax.random.uniform(ks[3], (2, hidden_dim), F32, -stdv, stdv)
    return dict(wk=wk, bk=bk, wq=wq, bq=bq, wp=wp, bp=bp, mlp_w=mlp_w)


def _ffn_params(key, h):
    k1, k2 = jax.random.split(key)
    w1, b1 = _linear(k1, h, h)
    w2, b2 = _linear(k2, h, h)
    return dict(w1=w1, b1=b1, w2=w2, b2=b2)


def build_params(key):
    ks = jax.random.split(key, 7)
    embed = jax.random.normal(ks[0], (VOCAB, EMBED_DIM), F32) * 0.5
    embed = embed.at[0].set(0.0)  # pad row
    dense_w, dense_b = _linear(ks[5], 3 * HIDDEN_DIM, POLARITIES_DIM)
    return dict(
        embed=embed,
        attn_k=_attention_params(ks[1], EMBED_DIM, EMBED_DIM // N_HEAD, N_HEAD, HIDDEN_DIM),
        attn_q=_attention_params(ks[2], EMBED_DIM, EMBED_DIM // N_HEAD, N_HEAD, HIDDEN_DIM),
        attn_s1=_attention_params(ks[3], HIDDEN_DIM, HIDDEN_DIM // N_HEAD, N_HEAD, HIDDEN_DIM),
        ffn_c=_ffn_params(ks[4], HIDDEN_DIM),
        ffn_t=_ffn_params(ks[6], HIDDEN_DIM),
        dense_w=dense_w, dense_b=dense_b,
    )


# ----------------------------- pure-JAX reference ------------------------------
def _attention_ref(k, q, p, n_head, hidden_dim):
    B, Lk, _ = k.shape
    Lq = q.shape[1]
    kx = k @ p["wk"] + p["bk"]
    qx = q @ p["wq"] + p["bq"]
    kx = kx.reshape(B, Lk, n_head, hidden_dim).transpose(2, 0, 1, 3).reshape(-1, Lk, hidden_dim)
    qx = qx.reshape(B, Lq, n_head, hidden_dim).transpose(2, 0, 1, 3).reshape(-1, Lq, hidden_dim)
    weight = jnp.concatenate([p["mlp_w"][0], p["mlp_w"][1]])
    kxx = jnp.broadcast_to(kx[:, None, :, :], (n_head * B, Lq, Lk, hidden_dim))
    qxx = jnp.broadcast_to(qx[:, :, None, :], (n_head * B, Lq, Lk, hidden_dim))
    score = jnp.tanh(jnp.concatenate([kxx, qxx], axis=-1) @ weight)
    score = jax.nn.softmax(score, axis=-1)
    out = score @ kx
    out = jnp.concatenate(jnp.split(out, n_head, axis=0), axis=-1)
    return out @ p["wp"] + p["bp"]


def _ffn_ref(x, p):
    return jnp.maximum(x @ p["w1"] + p["b1"], 0.0) @ p["w2"] + p["b2"]


def aen_glove_ref(params, text_raw_indices, target_indices):
    ctx_len = jnp.sum(text_raw_indices != 0, axis=-1).astype(F32)
    tgt_len = jnp.sum(target_indices != 0, axis=-1).astype(F32)
    context = jnp.take(params["embed"], text_raw_indices, axis=0)
    target = jnp.take(params["embed"], target_indices, axis=0)
    context = context * (text_raw_indices != 0)[..., None].astype(F32)
    target = target * (target_indices != 0)[..., None].astype(F32)
    hc = _ffn_ref(_attention_ref(context, context, params["attn_k"], N_HEAD, EMBED_DIM // N_HEAD),
                  params["ffn_c"])
    ht = _ffn_ref(_attention_ref(context, target, params["attn_q"], N_HEAD, EMBED_DIM // N_HEAD),
                  params["ffn_t"])
    s1 = _attention_ref(hc, ht, params["attn_s1"], N_HEAD, HIDDEN_DIM // N_HEAD)
    hc_mean = jnp.sum(hc, axis=1) / ctx_len[:, None]
    ht_mean = jnp.sum(ht, axis=1) / tgt_len[:, None]
    s1_mean = jnp.sum(s1, axis=1) / ctx_len[:, None]
    x = jnp.concatenate([hc_mean, s1_mean, ht_mean], axis=-1)
    return x @ params["dense_w"] + params["dense_b"]


# ----------------------------- main --------------------------------------------
if __name__ == "__main__":
    key = jax.random.PRNGKey(0)
    pkey, ik1, ik2 = jax.random.split(key, 3)
    params = build_params(pkey)
    prepped = prepare_params(params)   # one-time repack (host side / outside kernel)

    # all-nonzero indices (no padding) so SqueezeEmbedding is an exact identity
    text_raw_indices = jax.random.randint(ik1, (BATCH, CTX_LEN), 1, VOCAB, dtype=jnp.int32)
    target_indices = jax.random.randint(ik2, (BATCH, TGT_LEN), 1, VOCAB, dtype=jnp.int32)

    fwd = jax.jit(aen_glove_forward)
    out = fwd(prepped, text_raw_indices, target_indices)
    out = jax.block_until_ready(out)

    ref = aen_glove_ref(params, text_raw_indices, target_indices)
    assert out.shape == (BATCH, POLARITIES_DIM), out.shape
    assert jnp.allclose(out, ref, rtol=2e-3, atol=2e-3), (out, ref)

    print("KERNEL_OK")
</pallas_src>

<mosaic_0001>
module attributes {stable_mosaic.version = 11 : i64} {
  func.func @_aen_fused_kernel(%arg0: memref<2x8x32xf32, #tpu.memory_space<vmem>>, %arg1: memref<2x4x32xf32, #tpu.memory_space<vmem>>, %arg2: memref<2x1xf32, #tpu.memory_space<vmem>>, %arg3: memref<2x1xf32, #tpu.memory_space<vmem>>, %arg4: memref<8x32xf32, #tpu.memory_space<vmem>>, %arg5: memref<8x1xf32, #tpu.memory_space<vmem>>, %arg6: memref<8x32xf32, #tpu.memory_space<vmem>>, %arg7: memref<8x1xf32, #tpu.memory_space<vmem>>, %arg8: memref<8x32x32xf32, #tpu.memory_space<vmem>>, %arg9: memref<8x1x32xf32, #tpu.memory_space<vmem>>, %arg10: memref<1x32xf32, #tpu.memory_space<vmem>>, %arg11: memref<8x32xf32, #tpu.memory_space<vmem>>, %arg12: memref<8x1xf32, #tpu.memory_space<vmem>>, %arg13: memref<8x32xf32, #tpu.memory_space<vmem>>, %arg14: memref<8x1xf32, #tpu.memory_space<vmem>>, %arg15: memref<8x32x32xf32, #tpu.memory_space<vmem>>, %arg16: memref<8x1x32xf32, #tpu.memory_space<vmem>>, %arg17: memref<1x32xf32, #tpu.memory_space<vmem>>, %arg18: memref<8x32xf32, #tpu.memory_space<vmem>>, %arg19: memref<8x1xf32, #tpu.memory_space<vmem>>, %arg20: memref<8x32xf32, #tpu.memory_space<vmem>>, %arg21: memref<8x1xf32, #tpu.memory_space<vmem>>, %arg22: memref<8x32x32xf32, #tpu.memory_space<vmem>>, %arg23: memref<8x1x32xf32, #tpu.memory_space<vmem>>, %arg24: memref<1x32xf32, #tpu.memory_space<vmem>>, %arg25: memref<32x32xf32, #tpu.memory_space<vmem>>, %arg26: memref<1x32xf32, #tpu.memory_space<vmem>>, %arg27: memref<32x32xf32, #tpu.memory_space<vmem>>, %arg28: memref<1x32xf32, #tpu.memory_space<vmem>>, %arg29: memref<32x32xf32, #tpu.memory_space<vmem>>, %arg30: memref<1x32xf32, #tpu.memory_space<vmem>>, %arg31: memref<32x32xf32, #tpu.memory_space<vmem>>, %arg32: memref<1x32xf32, #tpu.memory_space<vmem>>, %arg33: memref<32x3xf32, #tpu.memory_space<vmem>>, %arg34: memref<32x3xf32, #tpu.memory_space<vmem>>, %arg35: memref<32x3xf32, #tpu.memory_space<vmem>>, %arg36: memref<1x3xf32, #tpu.memory_space<vmem>>, %arg37: memref<2x3xf32, #tpu.memory_space<vmem>>) attributes {dimension_semantics = [], scalar_prefetch = 0 : i64, scratch_operands = 0 : i64, tpu.core_type = #tpu.core_type<tc>} {
    %c0 = arith.constant 0 : index
    %c0_0 = arith.constant 0 : index
    %c0_1 = arith.constant 0 : index
    %0 = vector.load %arg0[%c0, %c0_0, %c0_1] : memref<2x8x32xf32, #tpu.memory_space<vmem>>, vector<2x8x32xf32>
    %c0_2 = arith.constant 0 : index
    %c0_3 = arith.constant 0 : index
    %c0_4 = arith.constant 0 : index
    %1 = vector.load %arg1[%c0_2, %c0_3, %c0_4] : memref<2x4x32xf32, #tpu.memory_space<vmem>>, vector<2x4x32xf32>
    %c0_5 = arith.constant 0 : index
    %c0_6 = arith.constant 0 : index
    %2 = vector.load %arg4[%c0_5, %c0_6] : memref<8x32xf32, #tpu.memory_space<vmem>>, vector<8x32xf32>
    %c0_7 = arith.constant 0 : index
    %c0_8 = arith.constant 0 : index
    %3 = vector.load %arg5[%c0_7, %c0_8] : memref<8x1xf32, #tpu.memory_space<vmem>>, vector<8x1xf32>
    %c0_9 = arith.constant 0 : index
    %c0_10 = arith.constant 0 : index
    %4 = vector.load %arg6[%c0_9, %c0_10] : memref<8x32xf32, #tpu.memory_space<vmem>>, vector<8x32xf32>
    %c0_11 = arith.constant 0 : index
    %c0_12 = arith.constant 0 : index
    %5 = vector.load %arg7[%c0_11, %c0_12] : memref<8x1xf32, #tpu.memory_space<vmem>>, vector<8x1xf32>
    %c0_13 = arith.constant 0 : index
    %c0_14 = arith.constant 0 : index
    %c0_15 = arith.constant 0 : index
    %6 = vector.load %arg8[%c0_13, %c0_14, %c0_15] : memref<8x32x32xf32, #tpu.memory_space<vmem>>, vector<8x32x32xf32>
    %c0_16 = arith.constant 0 : index
    %c0_17 = arith.constant 0 : index
    %c0_18 = arith.constant 0 : index
    %7 = vector.load %arg9[%c0_16, %c0_17, %c0_18] : memref<8x1x32xf32, #tpu.memory_space<vmem>>, vector<8x1x32xf32>
    %c0_19 = arith.constant 0 : index
    %c0_20 = arith.constant 0 : index
    %8 = vector.load %arg10[%c0_19, %c0_20] : memref<1x32xf32, #tpu.memory_space<vmem>>, vector<1x32xf32>
    %9 = vector.shape_cast %2 : vector<8x32xf32> to vector<1x8x32xf32>
    %10 = vector.shape_cast %9 : vector<1x8x32xf32> to vector<1x8x32xf32>
    %11 = vector.broadcast %10 : vector<1x8x32xf32> to vector<2x8x32xf32>
    %12 = vector.shape_cast %4 : vector<8x32xf32> to vector<1x8x32xf32>
    %13 = vector.shape_cast %12 : vector<1x8x32xf32> to vector<1x8x32xf32>
    %14 = vector.broadcast %13 : vector<1x8x32xf32> to vector<2x8x32xf32>
    "tpu.trace_start"() <{level = 10 : i32, message = "bhe,ble->bhl"}> : () -> ()
    %cst = arith.constant dense<0.000000e+00> : vector<2x8x8xf32>
    %15 = tpu.matmul %11, %0, %cst {dimension_numbers = #tpu.dot_dimension_numbers<[2], [2], [1], [1], [0, 0, 0, 1, 1, 1], [0], [0]>} : vector<2x8x32xf32>, vector<2x8x32xf32>, vector<2x8x8xf32> -> vector<2x8x8xf32>
    "tpu.trace_stop"() : () -> ()
    %16 = vector.shape_cast %3 : vector<8x1xf32> to vector<1x8x1xf32>
    %17 = vector.broadcast %16 : vector<1x8x1xf32> to vector<2x8x8xf32>
    %18 = arith.addf %15, %17 : vector<2x8x8xf32>
    "tpu.trace_start"() <{level = 10 : i32, message = "bhe,bqe->bhq"}> : () -> ()
    %cst_21 = arith.constant dense<0.000000e+00> : vector<2x8x8xf32>
    %19 = tpu.matmul %14, %0, %cst_21 {dimension_numbers = #tpu.dot_dimension_numbers<[2], [2], [1], [1], [0, 0, 0, 1, 1, 1], [0], [0]>} : vector<2x8x32xf32>, vector<2x8x32xf32>, vector<2x8x8xf32> -> vector<2x8x8xf32>
    "tpu.trace_stop"() : () -> ()
    %20 = vector.shape_cast %5 : vector<8x1xf32> to vector<1x8x1xf32>
    %21 = vector.broadcast %20 : vector<1x8x1xf32> to vector<2x8x8xf32>
    %22 = arith.addf %19, %21 : vector<2x8x8xf32>
    %23 = vector.shape_cast %22 : vector<2x8x8xf32> to vector<2x8x8x1xf32>
    %24 = vector.shape_cast %18 : vector<2x8x8xf32> to vector<2x8x1x8xf32>
    %25 = vector.broadcast %23 : vector<2x8x8x1xf32> to vector<2x8x8x8xf32>
    %26 = vector.broadcast %24 : vector<2x8x1x8xf32> to vector<2x8x8x8xf32>
    %27 = arith.addf %25, %26 : vector<2x8x8x8xf32>
    %28 = math.tanh %27 : vector<2x8x8x8xf32>
    %29 = math.exp %28 : vector<2x8x8x8xf32>
    %cst_22 = arith.constant dense<0.000000e+00> : vector<2x8x8xf32>
    %30 = vector.multi_reduction <add>, %29, %cst_22 [3] : vector<2x8x8x8xf32> to vector<2x8x8xf32>
    %31 = vector.shape_cast %30 : vector<2x8x8xf32> to vector<2x8x8x1xf32>
    %32 = tpu.reciprocal %31 {approx = true} : vector<2x8x8x1xf32> -> vector<2x8x8x1xf32>
    %33 = vector.broadcast %32 : vector<2x8x8x1xf32> to vector<2x8x8x8xf32>
    %34 = arith.mulf %29, %33 : vector<2x8x8x8xf32>
    %35 = vector.shape_cast %0 : vector<2x8x32xf32> to vector<2x1x8x32xf32>
    %36 = vector.shape_cast %35 : vector<2x1x8x32xf32> to vector<2x1x8x32xf32>
    %37 = vector.broadcast %36 : vector<2x1x8x32xf32> to vector<2x8x8x32xf32>
    %38 = vector.shape_cast %37 : vector<2x8x8x32xf32> to vector<16x8x32xf32>
    %39 = vector.shape_cast %6 : vector<8x32x32xf32> to vector<1x8x32x32xf32>
    %40 = vector.shape_cast %39 : vector<1x8x32x32xf32> to vector<1x8x32x32xf32>
    %41 = vector.broadcast %40 : vector<1x8x32x32xf32> to vector<2x8x32x32xf32>
    %42 = vector.shape_cast %41 : vector<2x8x32x32xf32> to vector<16x32x32xf32>
    %43 = vector.shape_cast %7 : vector<8x1x32xf32> to vector<1x8x1x32xf32>
    %44 = vector.shape_cast %43 : vector<1x8x1x32xf32> to vector<1x8x1x32xf32>
    %45 = vector.broadcast %44 : vector<1x8x1x32xf32> to vector<2x8x1x32xf32>
    %46 = vector.shape_cast %45 : vector<2x8x1x32xf32> to vector<16x1x32xf32>
    "tpu.trace_start"() <{level = 10 : i32, message = "gle,geo->glo"}> : () -> ()
    %cst_23 = arith.constant dense<0.000000e+00> : vector<16x8x32xf32>
    %47 = tpu.matmul %38, %42, %cst_23 {dimension_numbers = #tpu.dot_dimension_numbers<[2], [1], [1], [2], [0, 0, 0, 1, 1, 2], [0], [0]>} : vector<16x8x32xf32>, vector<16x32x32xf32>, vector<16x8x32xf32> -> vector<16x8x32xf32>
    "tpu.trace_stop"() : () -> ()
    %48 = vector.broadcast %46 : vector<16x1x32xf32> to vector<16x8x32xf32>
    %49 = arith.addf %47, %48 : vector<16x8x32xf32>
    %50 = vector.shape_cast %34 : vector<2x8x8x8xf32> to vector<16x8x8xf32>
    "tpu.trace_start"() <{level = 10 : i32, message = "gql,glo->gqo"}> : () -> ()
    %cst_24 = arith.constant dense<0.000000e+00> : vector<16x8x32xf32>
    %51 = tpu.matmul %50, %49, %cst_24 {dimension_numbers = #tpu.dot_dimension_numbers<[2], [1], [1], [2], [0, 0, 0, 1, 1, 2], [0], [0]>} : vector<16x8x8xf32>, vector<16x8x32xf32>, vector<16x8x32xf32> -> vector<16x8x32xf32>
    "tpu.trace_stop"() : () -> ()
    %52 = vector.shape_cast %51 : vector<16x8x32xf32> to vector<2x8x8x32xf32>
    %cst_25 = arith.constant dense<0.000000e+00> : vector<2x8x32xf32>
    %53 = vector.multi_reduction <add>, %52, %cst_25 [1] : vector<2x8x8x32xf32> to vector<2x8x32xf32>
    %54 = vector.shape_cast %8 : vector<1x32xf32> to vector<1x1x32xf32>
    %55 = vector.broadcast %54 : vector<1x1x32xf32> to vector<2x8x32xf32>
    %56 = arith.addf %53, %55 : vector<2x8x32xf32>
    %c0_26 = arith.constant 0 : index
    %c0_27 = arith.constant 0 : index
    %57 = vector.load %arg25[%c0_26, %c0_27] : memref<32x32xf32, #tpu.memory_space<vmem>>, vector<32x32xf32>
    %c0_28 = arith.constant 0 : index
    %c0_29 = arith.constant 0 : index
    %58 = vector.load %arg26[%c0_28, %c0_29] : memref<1x32xf32, #tpu.memory_space<vmem>>, vector<1x32xf32>
    %c0_30 = arith.constant 0 : index
    %c0_31 = arith.constant 0 : index
    %59 = vector.load %arg27[%c0_30, %c0_31] : memref<32x32xf32, #tpu.memory_space<vmem>>, vector<32x32xf32>
    %c0_32 = arith.constant 0 : index
    %c0_33 = arith.constant 0 : index
    %60 = vector.load %arg28[%c0_32, %c0_33] : memref<1x32xf32, #tpu.memory_space<vmem>>, vector<1x32xf32>
    %61 = vector.shape_cast %56 : vector<2x8x32xf32> to vector<16x32xf32>
    %cst_34 = arith.constant dense<0.000000e+00> : vector<16x32xf32>
    %62 = tpu.matmul %61, %57, %cst_34 {dimension_numbers = #tpu.dot_dimension_numbers<[1], [0], [0], [1], [0, 0, 1, 1], [], []>} : vector<16x32xf32>, vector<32x32xf32>, vector<16x32xf32> -> vector<16x32xf32>
    %63 = vector.broadcast %58 : vector<1x32xf32> to vector<16x32xf32>
    %64 = arith.addf %62, %63 : vector<16x32xf32>
    %cst_35 = arith.constant 0.000000e+00 : f32
    %65 = vector.broadcast %cst_35 : f32 to vector<16x32xf32>
    %66 = arith.maximumf %64, %65 : vector<16x32xf32>
    %cst_36 = arith.constant dense<0.000000e+00> : vector<16x32xf32>
    %67 = tpu.matmul %66, %59, %cst_36 {dimension_numbers = #tpu.dot_dimension_numbers<[1], [0], [0], [1], [0, 0, 1, 1], [], []>} : vector<16x32xf32>, vector<32x32xf32>, vector<16x32xf32> -> vector<16x32xf32>
    %68 = vector.broadcast %60 : vector<1x32xf32> to vector<16x32xf32>
    %69 = arith.addf %67, %68 : vector<16x32xf32>
    %70 = vector.shape_cast %69 : vector<16x32xf32> to vector<2x8x32xf32>
    %c0_37 = arith.constant 0 : index
    %c0_38 = arith.constant 0 : index
    %71 = vector.load %arg11[%c0_37, %c0_38] : memref<8x32xf32, #tpu.memory_space<vmem>>, vector<8x32xf32>
    %c0_39 = arith.constant 0 : index
    %c0_40 = arith.constant 0 : index
    %72 = vector.load %arg12[%c0_39, %c0_40] : memref<8x1xf32, #tpu.memory_space<vmem>>, vector<8x1xf32>
    %c0_41 = arith.constant 0 : index
    %c0_42 = arith.constant 0 : index
    %73 = vector.load %arg13[%c0_41, %c0_42] : memref<8x32xf32, #tpu.memory_space<vmem>>, vector<8x32xf32>
    %c0_43 = arith.constant 0 : index
    %c0_44 = arith.constant 0 : index
    %74 = vector.load %arg14[%c0_43, %c0_44] : memref<8x1xf32, #tpu.memory_space<vmem>>, vector<8x1xf32>
    %c0_45 = arith.constant 0 : index
    %c0_46 = arith.constant 0 : index
    %c0_47 = arith.constant 0 : index
    %75 = vector.load %arg15[%c0_45, %c0_46, %c0_47] : memref<8x32x32xf32, #tpu.memory_space<vmem>>, vector<8x32x32xf32>
    %c0_48 = arith.constant 0 : index
    %c0_49 = arith.constant 0 : index
    %c0_50 = arith.constant 0 : index
    %76 = vector.load %arg16[%c0_48, %c0_49, %c0_50] : memref<8x1x32xf32, #tpu.memory_space<vmem>>, vector<8x1x32xf32>
    %c0_51 = arith.constant 0 : index
    %c0_52 = arith.constant 0 : index
    %77 = vector.load %arg17[%c0_51, %c0_52] : memref<1x32xf32, #tpu.memory_space<vmem>>, vector<1x32xf32>
    %78 = vector.shape_cast %71 : vector<8x32xf32> to vector<1x8x32xf32>
    %79 = vector.shape_cast %78 : vector<1x8x32xf32> to vector<1x8x32xf32>
    %80 = vector.broadcast %79 : vector<1x8x32xf32> to vector<2x8x32xf32>
    %81 = vector.shape_cast %73 : vector<8x32xf32> to vector<1x8x32xf32>
    %82 = vector.shape_cast %81 : vector<1x8x32xf32> to vector<1x8x32xf32>
    %83 = vector.broadcast %82 : vector<1x8x32xf32> to vector<2x8x32xf32>
    "tpu.trace_start"() <{level = 10 : i32, message = "bhe,ble->bhl"}> : () -> ()
    %cst_53 = arith.constant dense<0.000000e+00> : vector<2x8x8xf32>
    %84 = tpu.matmul %80, %0, %cst_53 {dimension_numbers = #tpu.dot_dimension_numbers<[2], [2], [1], [1], [0, 0, 0, 1, 1, 1], [0], [0]>} : vector<2x8x32xf32>, vector<2x8x32xf32>, vector<2x8x8xf32> -> vector<2x8x8xf32>
    "tpu.trace_stop"() : () -> ()
    %85 = vector.shape_cast %72 : vector<8x1xf32> to vector<1x8x1xf32>
    %86 = vector.broadcast %85 : vector<1x8x1xf32> to vector<2x8x8xf32>
    %87 = arith.addf %84, %86 : vector<2x8x8xf32>
    "tpu.trace_start"() <{level = 10 : i32, message = "bhe,bqe->bhq"}> : () -> ()
    %cst_54 = arith.constant dense<0.000000e+00> : vector<2x8x4xf32>
    %88 = tpu.matmul %83, %1, %cst_54 {dimension_numbers = #tpu.dot_dimension_numbers<[2], [2], [1], [1], [0, 0, 0, 1, 1, 1], [0], [0]>} : vector<2x8x32xf32>, vector<2x4x32xf32>, vector<2x8x4xf32> -> vector<2x8x4xf32>
    "tpu.trace_stop"() : () -> ()
    %89 = vector.shape_cast %74 : vector<8x1xf32> to vector<1x8x1xf32>
    %90 = vector.broadcast %89 : vector<1x8x1xf32> to vector<2x8x4xf32>
    %91 = arith.addf %88, %90 : vector<2x8x4xf32>
    %92 = vector.shape_cast %91 : vector<2x8x4xf32> to vector<2x8x4x1xf32>
    %93 = vector.shape_cast %87 : vector<2x8x8xf32> to vector<2x8x1x8xf32>
    %94 = vector.broadcast %92 : vector<2x8x4x1xf32> to vector<2x8x4x8xf32>
    %95 = vector.broadcast %93 : vector<2x8x1x8xf32> to vector<2x8x4x8xf32>
    %96 = arith.addf %94, %95 : vector<2x8x4x8xf32>
    %97 = math.tanh %96 : vector<2x8x4x8xf32>
    %98 = math.exp %97 : vector<2x8x4x8xf32>
    %cst_55 = arith.constant dense<0.000000e+00> : vector<2x8x4xf32>
    %99 = vector.multi_reduction <add>, %98, %cst_55 [3] : vector<2x8x4x8xf32> to vector<2x8x4xf32>
    %100 = vector.shape_cast %99 : vector<2x8x4xf32> to vector<2x8x4x1xf32>
    %101 = tpu.reciprocal %100 {approx = true} : vector<2x8x4x1xf32> -> vector<2x8x4x1xf32>
    %102 = vector.broadcast %101 : vector<2x8x4x1xf32> to vector<2x8x4x8xf32>
    %103 = arith.mulf %98, %102 : vector<2x8x4x8xf32>
    %104 = vector.shape_cast %0 : vector<2x8x32xf32> to vector<2x1x8x32xf32>
    %105 = vector.shape_cast %104 : vector<2x1x8x32xf32> to vector<2x1x8x32xf32>
    %106 = vector.broadcast %105 : vector<2x1x8x32xf32> to vector<2x8x8x32xf32>
    %107 = vector.shape_cast %106 : vector<2x8x8x32xf32> to vector<16x8x32xf32>
    %108 = vector.shape_cast %75 : vector<8x32x32xf32> to vector<1x8x32x32xf32>
    %109 = vector.shape_cast %108 : vector<1x8x32x32xf32> to vector<1x8x32x32xf32>
    %110 = vector.broadcast %109 : vector<1x8x32x32xf32> to vector<2x8x32x32xf32>
    %111 = vector.shape_cast %110 : vector<2x8x32x32xf32> to vector<16x32x32xf32>
    %112 = vector.shape_cast %76 : vector<8x1x32xf32> to vector<1x8x1x32xf32>
    %113 = vector.shape_cast %112 : vector<1x8x1x32xf32> to vector<1x8x1x32xf32>
    %114 = vector.broadcast %113 : vector<1x8x1x32xf32> to vector<2x8x1x32xf32>
    %115 = vector.shape_cast %114 : vector<2x8x1x32xf32> to vector<16x1x32xf32>
    "tpu.trace_start"() <{level = 10 : i32, message = "gle,geo->glo"}> : () -> ()
    %cst_56 = arith.constant dense<0.000000e+00> : vector<16x8x32xf32>
    %116 = tpu.matmul %107, %111, %cst_56 {dimension_numbers = #tpu.dot_dimension_numbers<[2], [1], [1], [2], [0, 0, 0, 1, 1, 2], [0], [0]>} : vector<16x8x32xf32>, vector<16x32x32xf32>, vector<16x8x32xf32> -> vector<16x8x32xf32>
    "tpu.trace_stop"() : () -> ()
    %117 = vector.broadcast %115 : vector<16x1x32xf32> to vector<16x8x32xf32>
    %118 = arith.addf %116, %117 : vector<16x8x32xf32>
    %119 = vector.shape_cast %103 : vector<2x8x4x8xf32> to vector<16x4x8xf32>
    "tpu.trace_start"() <{level = 10 : i32, message = "gql,glo->gqo"}> : () -> ()
    %cst_57 = arith.constant dense<0.000000e+00> : vector<16x4x32xf32>
    %120 = tpu.matmul %119, %118, %cst_57 {dimension_numbers = #tpu.dot_dimension_numbers<[2], [1], [1], [2], [0, 0, 0, 1, 1, 2], [0], [0]>} : vector<16x4x8xf32>, vector<16x8x32xf32>, vector<16x4x32xf32> -> vector<16x4x32xf32>
    "tpu.trace_stop"() : () -> ()
    %121 = vector.shape_cast %120 : vector<16x4x32xf32> to vector<2x8x4x32xf32>
    %cst_58 = arith.constant dense<0.000000e+00> : vector<2x4x32xf32>
    %122 = vector.multi_reduction <add>, %121, %cst_58 [1] : vector<2x8x4x32xf32> to vector<2x4x32xf32>
    %123 = vector.shape_cast %77 : vector<1x32xf32> to vector<1x1x32xf32>
    %124 = vector.broadcast %123 : vector<1x1x32xf32> to vector<2x4x32xf32>
    %125 = arith.addf %122, %124 : vector<2x4x32xf32>
    %c0_59 = arith.constant 0 : index
    %c0_60 = arith.constant 0 : index
    %126 = vector.load %arg29[%c0_59, %c0_60] : memref<32x32xf32, #tpu.memory_space<vmem>>, vector<32x32xf32>
    %c0_61 = arith.constant 0 : index
    %c0_62 = arith.constant 0 : index
    %127 = vector.load %arg30[%c0_61, %c0_62] : memref<1x32xf32, #tpu.memory_space<vmem>>, vector<1x32xf32>
    %c0_63 = arith.constant 0 : index
    %c0_64 = arith.constant 0 : index
    %128 = vector.load %arg31[%c0_63, %c0_64] : memref<32x32xf32, #tpu.memory_space<vmem>>, vector<32x32xf32>
    %c0_65 = arith.constant 0 : index
    %c0_66 = arith.constant 0 : index
    %129 = vector.load %arg32[%c0_65, %c0_66] : memref<1x32xf32, #tpu.memory_space<vmem>>, vector<1x32xf32>
    %130 = vector.shape_cast %125 : vector<2x4x32xf32> to vector<8x32xf32>
    %cst_67 = arith.constant dense<0.000000e+00> : vector<8x32xf32>
    %131 = tpu.matmul %130, %126, %cst_67 {dimension_numbers = #tpu.dot_dimension_numbers<[1], [0], [0], [1], [0, 0, 1, 1], [], []>} : vector<8x32xf32>, vector<32x32xf32>, vector<8x32xf32> -> vector<8x32xf32>
    %132 = vector.broadcast %127 : vector<1x32xf32> to vector<8x32xf32>
    %133 = arith.addf %131, %132 : vector<8x32xf32>
    %cst_68 = arith.constant 0.000000e+00 : f32
    %134 = vector.broadcast %cst_68 : f32 to vector<8x32xf32>
    %135 = arith.maximumf %133, %134 : vector<8x32xf32>
    %cst_69 = arith.constant dense<0.000000e+00> : vector<8x32xf32>
    %136 = tpu.matmul %135, %128, %cst_69 {dimension_numbers = #tpu.dot_dimension_numbers<[1], [0], [0], [1], [0, 0, 1, 1], [], []>} : vector<8x32xf32>, vector<32x32xf32>, vector<8x32xf32> -> vector<8x32xf32>
    %137 = vector.broadcast %129 : vector<1x32xf32> to vector<8x32xf32>
    %138 = arith.addf %136, %137 : vector<8x32xf32>
    %139 = vector.shape_cast %138 : vector<8x32xf32> to vector<2x4x32xf32>
    %c0_70 = arith.constant 0 : index
    %c0_71 = arith.constant 0 : index
    %140 = vector.load %arg18[%c0_70, %c0_71] : memref<8x32xf32, #tpu.memory_space<vmem>>, vector<8x32xf32>
    %c0_72 = arith.constant 0 : index
    %c0_73 = arith.constant 0 : index
    %141 = vector.load %arg19[%c0_72, %c0_73] : memref<8x1xf32, #tpu.memory_space<vmem>>, vector<8x1xf32>
    %c0_74 = arith.constant 0 : index
    %c0_75 = arith.constant 0 : index
    %142 = vector.load %arg20[%c0_74, %c0_75] : memref<8x32xf32, #tpu.memory_space<vmem>>, vector<8x32xf32>
    %c0_76 = arith.constant 0 : index
    %c0_77 = arith.constant 0 : index
    %143 = vector.load %arg21[%c0_76, %c0_77] : memref<8x1xf32, #tpu.memory_space<vmem>>, vector<8x1xf32>
    %c0_78 = arith.constant 0 : index
    %c0_79 = arith.constant 0 : index
    %c0_80 = arith.constant 0 : index
    %144 = vector.load %arg22[%c0_78, %c0_79, %c0_80] : memref<8x32x32xf32, #tpu.memory_space<vmem>>, vector<8x32x32xf32>
    %c0_81 = arith.constant 0 : index
    %c0_82 = arith.constant 0 : index
    %c0_83 = arith.constant 0 : index
    %145 = vector.load %arg23[%c0_81, %c0_82, %c0_83] : memref<8x1x32xf32, #tpu.memory_space<vmem>>, vector<8x1x32xf32>
    %c0_84 = arith.constant 0 : index
    %c0_85 = arith.constant 0 : index
    %146 = vector.load %arg24[%c0_84, %c0_85] : memref<1x32xf32, #tpu.memory_space<vmem>>, vector<1x32xf32>
    %147 = vector.shape_cast %140 : vector<8x32xf32> to vector<1x8x32xf32>
    %148 = vector.shape_cast %147 : vector<1x8x32xf32> to vector<1x8x32xf32>
    %149 = vector.broadcast %148 : vector<1x8x32xf32> to vector<2x8x32xf32>
    %150 = vector.shape_cast %142 : vector<8x32xf32> to vector<1x8x32xf32>
    %151 = vector.shape_cast %150 : vector<1x8x32xf32> to vector<1x8x32xf32>
    %152 = vector.broadcast %151 : vector<1x8x32xf32> to vector<2x8x32xf32>
    "tpu.trace_start"() <{level = 10 : i32, message = "bhe,ble->bhl"}> : () -> ()
    %cst_86 = arith.constant dense<0.000000e+00> : vector<2x8x8xf32>
    %153 = tpu.matmul %149, %70, %cst_86 {dimension_numbers = #tpu.dot_dimension_numbers<[2], [2], [1], [1], [0, 0, 0, 1, 1, 1], [0], [0]>} : vector<2x8x32xf32>, vector<2x8x32xf32>, vector<2x8x8xf32> -> vector<2x8x8xf32>
    "tpu.trace_stop"() : () -> ()
    %154 = vector.shape_cast %141 : vector<8x1xf32> to vector<1x8x1xf32>
    %155 = vector.broadcast %154 : vector<1x8x1xf32> to vector<2x8x8xf32>
    %156 = arith.addf %153, %155 : vector<2x8x8xf32>
    "tpu.trace_start"() <{level = 10 : i32, message = "bhe,bqe->bhq"}> : () -> ()
    %cst_87 = arith.constant dense<0.000000e+00> : vector<2x8x4xf32>
    %157 = tpu.matmul %152, %139, %cst_87 {dimension_numbers = #tpu.dot_dimension_numbers<[2], [2], [1], [1], [0, 0, 0, 1, 1, 1], [0], [0]>} : vector<2x8x32xf32>, vector<2x4x32xf32>, vector<2x8x4xf32> -> vector<2x8x4xf32>
    "tpu.trace_stop"() : () -> ()
    %158 = vector.shape_cast %143 : vector<8x1xf32> to vector<1x8x1xf32>
    %159 = vector.broadcast %158 : vector<1x8x1xf32> to vector<2x8x4xf32>
    %160 = arith.addf %157, %159 : vector<2x8x4xf32>
    %161 = vector.shape_cast %160 : vector<2x8x4xf32> to vector<2x8x4x1xf32>
    %162 = vector.shape_cast %156 : vector<2x8x8xf32> to vector<2x8x1x8xf32>
    %163 = vector.broadcast %161 : vector<2x8x4x1xf32> to vector<2x8x4x8xf32>
    %164 = vector.broadcast %162 : vector<2x8x1x8xf32> to vector<2x8x4x8xf32>
    %165 = arith.addf %163, %164 : vector<2x8x4x8xf32>
    %166 = math.tanh %165 : vector<2x8x4x8xf32>
    %167 = math.exp %166 : vector<2x8x4x8xf32>
    %cst_88 = arith.constant dense<0.000000e+00> : vector<2x8x4xf32>
    %168 = vector.multi_reduction <add>, %167, %cst_88 [3] : vector<2x8x4x8xf32> to vector<2x8x4xf32>
    %169 = vector.shape_cast %168 : vector<2x8x4xf32> to vector<2x8x4x1xf32>
    %170 = tpu.reciprocal %169 {approx = true} : vector<2x8x4x1xf32> -> vector<2x8x4x1xf32>
    %171 = vector.broadcast %170 : vector<2x8x4x1xf32> to vector<2x8x4x8xf32>
    %172 = arith.mulf %167, %171 : vector<2x8x4x8xf32>
    %173 = vector.shape_cast %70 : vector<2x8x32xf32> to vector<2x1x8x32xf32>
    %174 = vector.shape_cast %173 : vector<2x1x8x32xf32> to vector<2x1x8x32xf32>
    %175 = vector.broadcast %174 : vector<2x1x8x32xf32> to vector<2x8x8x32xf32>
    %176 = vector.shape_cast %175 : vector<2x8x8x32xf32> to vector<16x8x32xf32>
    %177 = vector.shape_cast %144 : vector<8x32x32xf32> to vector<1x8x32x32xf32>
    %178 = vector.shape_cast %177 : vector<1x8x32x32xf32> to vector<1x8x32x32xf32>
    %179 = vector.broadcast %178 : vector<1x8x32x32xf32> to vector<2x8x32x32xf32>
    %180 = vector.shape_cast %179 : vector<2x8x32x32xf32> to vector<16x32x32xf32>
    %181 = vector.shape_cast %145 : vector<8x1x32xf32> to vector<1x8x1x32xf32>
    %182 = vector.shape_cast %181 : vector<1x8x1x32xf32> to vector<1x8x1x32xf32>
    %183 = vector.broadcast %182 : vector<1x8x1x32xf32> to vector<2x8x1x32xf32>
    %184 = vector.shape_cast %183 : vector<2x8x1x32xf32> to vector<16x1x32xf32>
    "tpu.trace_start"() <{level = 10 : i32, message = "gle,geo->glo"}> : () -> ()
    %cst_89 = arith.constant dense<0.000000e+00> : vector<16x8x32xf32>
    %185 = tpu.matmul %176, %180, %cst_89 {dimension_numbers = #tpu.dot_dimension_numbers<[2], [1], [1], [2], [0, 0, 0, 1, 1, 2], [0], [0]>} : vector<16x8x32xf32>, vector<16x32x32xf32>, vector<16x8x32xf32> -> vector<16x8x32xf32>
    "tpu.trace_stop"() : () -> ()
    %186 = vector.broadcast %184 : vector<16x1x32xf32> to vector<16x8x32xf32>
    %187 = arith.addf %185, %186 : vector<16x8x32xf32>
    %188 = vector.shape_cast %172 : vector<2x8x4x8xf32> to vector<16x4x8xf32>
    "tpu.trace_start"() <{level = 10 : i32, message = "gql,glo->gqo"}> : () -> ()
    %cst_90 = arith.constant dense<0.000000e+00> : vector<16x4x32xf32>
    %189 = tpu.matmul %188, %187, %cst_90 {dimension_numbers = #tpu.dot_dimension_numbers<[2], [1], [1], [2], [0, 0, 0, 1, 1, 2], [0], [0]>} : vector<16x4x8xf32>, vector<16x8x32xf32>, vector<16x4x32xf32> -> vector<16x4x32xf32>
    "tpu.trace_stop"() : () -> ()
    %190 = vector.shape_cast %189 : vector<16x4x32xf32> to vector<2x8x4x32xf32>
    %cst_91 = arith.constant dense<0.000000e+00> : vector<2x4x32xf32>
    %191 = vector.multi_reduction <add>, %190, %cst_91 [1] : vector<2x8x4x32xf32> to vector<2x4x32xf32>
    %192 = vector.shape_cast %146 : vector<1x32xf32> to vector<1x1x32xf32>
    %193 = vector.broadcast %192 : vector<1x1x32xf32> to vector<2x4x32xf32>
    %194 = arith.addf %191, %193 : vector<2x4x32xf32>
    %c0_92 = arith.constant 0 : index
    %c0_93 = arith.constant 0 : index
    %195 = vector.load %arg2[%c0_92, %c0_93] : memref<2x1xf32, #tpu.memory_space<vmem>>, vector<2x1xf32>
    %c0_94 = arith.constant 0 : index
    %c0_95 = arith.constant 0 : index
    %196 = vector.load %arg3[%c0_94, %c0_95] : memref<2x1xf32, #tpu.memory_space<vmem>>, vector<2x1xf32>
    %cst_96 = arith.constant dense<0.000000e+00> : vector<2x32xf32>
    %197 = vector.multi_reduction <add>, %70, %cst_96 [1] : vector<2x8x32xf32> to vector<2x32xf32>
    %198 = vector.broadcast %195 : vector<2x1xf32> to vector<2x32xf32>
    %199 = arith.mulf %197, %198 : vector<2x32xf32>
    %cst_97 = arith.constant dense<0.000000e+00> : vector<2x32xf32>
    %200 = vector.multi_reduction <add>, %194, %cst_97 [1] : vector<2x4x32xf32> to vector<2x32xf32>
    %201 = vector.broadcast %195 : vector<2x1xf32> to vector<2x32xf32>
    %202 = arith.mulf %200, %201 : vector<2x32xf32>
    %cst_98 = arith.constant dense<0.000000e+00> : vector<2x32xf32>
    %203 = vector.multi_reduction <add>, %139, %cst_98 [1] : vector<2x4x32xf32> to vector<2x32xf32>
    %204 = vector.broadcast %196 : vector<2x1xf32> to vector<2x32xf32>
    %205 = arith.mulf %203, %204 : vector<2x32xf32>
    %c0_99 = arith.constant 0 : index
    %c0_100 = arith.constant 0 : index
    %206 = vector.load %arg33[%c0_99, %c0_100] : memref<32x3xf32, #tpu.memory_space<vmem>>, vector<32x3xf32>
    %cst_101 = arith.constant dense<0.000000e+00> : vector<2x3xf32>
    %207 = tpu.matmul %199, %206, %cst_101 {dimension_numbers = #tpu.dot_dimension_numbers<[1], [0], [0], [1], [0, 0, 1, 1], [], []>} : vector<2x32xf32>, vector<32x3xf32>, vector<2x3xf32> -> vector<2x3xf32>
    %c0_102 = arith.constant 0 : index
    %c0_103 = arith.constant 0 : index
    %208 = vector.load %arg34[%c0_102, %c0_103] : memref<32x3xf32, #tpu.memory_space<vmem>>, vector<32x3xf32>
    %cst_104 = arith.constant dense<0.000000e+00> : vector<2x3xf32>
    %209 = tpu.matmul %202, %208, %cst_104 {dimension_numbers = #tpu.dot_dimension_numbers<[1], [0], [0], [1], [0, 0, 1, 1], [], []>} : vector<2x32xf32>, vector<32x3xf32>, vector<2x3xf32> -> vector<2x3xf32>
    %210 = arith.addf %207, %209 : vector<2x3xf32>
    %c0_105 = arith.constant 0 : index
    %c0_106 = arith.constant 0 : index
    %211 = vector.load %arg35[%c0_105, %c0_106] : memref<32x3xf32, #tpu.memory_space<vmem>>, vector<32x3xf32>
    %cst_107 = arith.constant dense<0.000000e+00> : vector<2x3xf32>
    %212 = tpu.matmul %205, %211, %cst_107 {dimension_numbers = #tpu.dot_dimension_numbers<[1], [0], [0], [1], [0, 0, 1, 1], [], []>} : vector<2x32xf32>, vector<32x3xf32>, vector<2x3xf32> -> vector<2x3xf32>
    %213 = arith.addf %210, %212 : vector<2x3xf32>
    %c0_108 = arith.constant 0 : index
    %c0_109 = arith.constant 0 : index
    %214 = vector.load %arg36[%c0_108, %c0_109] : memref<1x3xf32, #tpu.memory_space<vmem>>, vector<1x3xf32>
    %215 = vector.broadcast %214 : vector<1x3xf32> to vector<2x3xf32>
    %216 = arith.addf %213, %215 : vector<2x3xf32>
    %c0_110 = arith.constant 0 : index
    %c0_111 = arith.constant 0 : index
    %217 = vector.load %arg37[%c0_110, %c0_111] : memref<2x3xf32, #tpu.memory_space<vmem>>, vector<2x3xf32>
    tpu.vector_store %arg37[%c0_110, %c0_111], %216 {strides = array<i32>} : memref<2x3xf32, #tpu.memory_space<vmem>>, vector<2x3xf32>,
    return
  }
}

</mosaic_0001>

<bundles_post_ra>
// kernel: aen_glove_forward.1
= control target key start
LH: loop header
LB: loop body
LE: loop exit
PB: predicated region body
PF: predicated region fallthrough
CT: control target
= control target key end

     0   :  { %s4745_s6 = smov 1   ;;  %s4746_s10 = smov 2   ;;  %s5940_s0 = inlined_call_operand.smem [shape: u32[38], index: -1, kind: input, shape index: {}] }
   0x1   :  { %s4796_s5 = sld [smem:[%s5940_s0]]   ;;  %s4747_s14 = smov 3  }
   0x2   :  { %s4801_s9 = sld [smem:[%s5940_s0 + %s4745_s6]]   ;;  %s4748_s18 = smov 4  }
   0x3   :  { %s4806_s13 = sld [smem:[%s5940_s0 + %s4746_s10]]   ;;  %s4749_s22 = smov 5  }
   0x4   :  { %s4811_s17 = sld [smem:[%s5940_s0 + %s4747_s14]]   ;;  %s4750_s26 = smov 6  }
   0x5   :  { %s4816_s21 = sld [smem:[%s5940_s0 + %s4748_s18]]   ;;  %s4751_s30 = smov 7  }
   0x6   :  { %s4821_s25 = sld [smem:[%s5940_s0 + %s4749_s22]]   ;;  %s4752_s4 = smov 8  }
   0x7   :  { %s4826_s29 = sld [smem:[%s5940_s0 + %s4750_s26]]   ;;  %s4753_s10 = smov 9  }
   0x8   :  { %s4831_s3 = sld [smem:[%s5940_s0 + %s4751_s30]]   ;;  %s4754_s15 = smov 10  }
   0x9   :  { %5948 = sst [smem:[#allocation11_spill]] %s4806_s13  ;;  %s4755_s20 = smov 11  }
   0xa   :  { %5949 = sst [smem:[#allocation12_spill]] %s4811_s17  ;;  %s4756_s26 = smov 12  }
   0xb   :  { %s4836_s8 = sld [smem:[%s5940_s0 + %s4752_s4]]   ;;  %s4757_s1 = smov 13  }
   0xc   :  { %s4841_s14 = sld [smem:[%s5940_s0 + %s4753_s10]]   ;;  %s4758_s7 = smov 14  }
   0xd   :  { %s4846_s19 = sld [smem:[%s5940_s0 + %s4754_s15]]   ;;  %s4759_s15 = smov 15  }
   0xe   :  { %s4851_s24 = sld [smem:[%s5940_s0 + %s4755_s20]]   ;;  %s4760_s22 = smov 16  }
   0xf   :  { %s4856_s30 = sld [smem:[%s5940_s0 + %s4756_s26]]   ;;  %s4761_s28 = smov 17  }
  0x10   :  { %s4861_s6 = sld [smem:[%s5940_s0 + %s4757_s1]]  }
  0x11   :  { %s4866_s12 = sld [smem:[%s5940_s0 + %s4758_s7]]   ;;  %s4762_s7 = smov 18  }
  0x12   :  { %s4871_s20 = sld [smem:[%s5940_s0 + %s4759_s15]]   ;;  %s4763_s15 = smov 19  }
  0x13   :  { %5950 = sst [smem:[#allocation13_spill]] %s4846_s19 }
  0x14   :  { %s4876_s27 = sld [smem:[%s5940_s0 + %s4760_s22]]   ;;  %s4764_s22 = smov 20  }
  0x15   :  { %s4881_s4 = sld [smem:[%s5940_s0 + %s4761_s28]]   ;;  %s4765_s28 = smov 21  }
  0x16   :  { %s4886_s17 = sld [smem:[%s5940_s0 + %s4762_s7]]   ;;  %s4766_s7 = smov 22  }
  0x17   :  { %s4891_s13 = sld [smem:[%s5940_s0 + %s4763_s15]]   ;;  %s4767_s15 = smov 23  }
  0x1a   :  { %5951 = sst [smem:[#allocation14_spill]] %s4876_s27 }
  0x1b   :  { %5952 = sst [smem:[#allocation15_spill]] %s4881_s4 }
  0x1c   :  { %5953 = sst [smem:[#allocation16_spill]] %s4886_s17 }
  0x1d   :  { %5954 = sst [smem:[#allocation17_spill]] %s4891_s13 }
  0x1e   :  { %s4896_s27 = sld [smem:[%s5940_s0 + %s4764_s22]]   ;;  %s4768_s22 = smov 24  }
  0x1f   :  { %s4901_s4 = sld [smem:[%s5940_s0 + %s4765_s28]]   ;;  %s4769_s28 = smov 25  }
  0x20   :  { %s4906_s17 = sld [smem:[%s5940_s0 + %s4766_s7]]   ;;  %s4770_s7 = smov 26  }
  0x21   :  { %s4911_s13 = sld [smem:[%s5940_s0 + %s4767_s15]]   ;;  %s4771_s15 = smov 27  }
  0x22   :  { %s4926_s19 = sld [smem:[%s5940_s0 + %s4770_s7]]   ;;  %s4774_s7 = smov 30  }
  0x24   :  { %5955 = sst [smem:[#allocation18_spill]] %s4896_s27 }
  0x25   :  { %5956 = sst [smem:[#allocation19_spill]] %s4901_s4 }
  0x26   :  { %s4916_s27 = sld [smem:[%s5940_s0 + %s4768_s22]]   ;;  %s4772_s22 = smov 28  }
  0x27   :  { %5957 = sst [smem:[#allocation20_spill]] %s4911_s13 }
  0x28   :  { %s4921_s4 = sld [smem:[%s5940_s0 + %s4769_s28]]   ;;  %s4773_s28 = smov 29  }
  0x29   :  { %5960 = sst [smem:[#allocation23_spill]] %s4926_s19 }
  0x2a   :  { %s4931_s13 = sld [smem:[%s5940_s0 + %s4771_s15]]   ;;  %s4775_s15 = smov 31  }
  0x2b   :  { %s4946_s19 = sld [smem:[%s5940_s0 + %s4774_s7]]   ;;  %s4778_s7 = smov 34  }
  0x2c   :  { %5958 = sst [smem:[#allocation21_spill]] %s4916_s27 }
  0x2d   :  { %s4936_s27 = sld [smem:[%s5940_s0 + %s4772_s22]]   ;;  %s4776_s22 = smov 32  }
  0x2e   :  { %5959 = sst [smem:[#allocation22_spill]] %s4921_s4 }
  0x2f   :  { %s4941_s4 = sld [smem:[%s5940_s0 + %s4773_s28]]   ;;  %s4777_s28 = smov 33  }
  0x30   :  { %5961 = sst [smem:[#allocation24_spill]] %s4931_s13 }
  0x31   :  { %5964 = sst [smem:[#allocation27_spill]] %s4946_s19 }
  0x32   :  { %s4951_s13 = sld [smem:[%s5940_s0 + %s4775_s15]]   ;;  %s4779_s15 = smov 35  }
  0x33   :  { %5962 = sst [smem:[#allocation25_spill]] %s4936_s27 }
  0x34   :  { %s4956_s27 = sld [smem:[%s5940_s0 + %s4776_s22]]   ;;  %s4780_s22 = smov 36  }
  0x35   :  { %5963 = sst [smem:[#allocation26_spill]] %s4941_s4 }
  0x36   :  { %s4961_s4 = sld [smem:[%s5940_s0 + %s4777_s28]]   ;;  %s4781_s28 = smov 37  }
  0x37   :  { %s4966_s19 = sld [smem:[%s5940_s0 + %s4778_s7]]  }
  0x38   :  { %5965 = sst [smem:[#allocation28_spill]] %s4951_s13 }
  0x39   :  { %s4971_s13 = sld [smem:[%s5940_s0 + %s4779_s15]]  }
  0x3a   :  { %5966 = sst [smem:[#allocation29_spill]] %s4956_s27 }
  0x3b   :  { %s4976_s27 = sld [smem:[%s5940_s0 + %s4780_s22]]  }
  0x3c   :  { %5967 = sst [smem:[#allocation30_spill]] %s4961_s4 }
  0x3d   :  { %s4981_s4 = sld [smem:[%s5940_s0 + %s4781_s28]]  }
  0x3e   :  { %80 = vsyncpa [#allocation3], 0 }
  0x3f   :  { %81 = vsyncpa [#allocation6], 0 }
  0x40   :  { %82 = vsyncpa [#allocation4], 0  ;;  %s117_s7 = sshll.u32 %s4871_s20, 4  ;;  %s4782_s10 = smov [#allocation2]   ;;  %s118_s7 = int_to_ptr.hbm [resolvable:$true] %s117_s7 }
  0x41   :  { %s119_s11 = sshll.u32 %s4782_s10, 4  ;;  %s142_s15 = sshll.u32 %s4906_s17, 4  ;;  %s120_s11 = int_to_ptr.vmem [resolvable:$true] %s119_s11  ;;  %s143_s15 = int_to_ptr.hbm [resolvable:$true] %s142_s15 }
  0x42   :  { %s4667_s16 = sshra.s32 %s118_s7, 4  ;;  %s4671_s22 = scalar_lea.hbm %s4871_s20, 256  ;;  %s4668_s16 = int_to_ptr.hbm [resolvable:$true] %s4667_s16 }
  0x43   :  { %s4669_s18 = scalar_lea.hbm %s4668_s16, 256  ;;  %p4672_p1 = scmp.lt.s32.totalorder %s4668_s16, %s4871_s20 }
  0x44   :  { %p4670_p0 = scmp.ne.s32.totalorder %s4668_s16, %s4669_s18  ;;  %p4673_p2 = scmp.lt.s32.totalorder %s4671_s22, %s4669_s18 }
  0x46   :  { %p4674_p3 = por %p4673_p2, %p4672_p1 }
  0x48   :  { %p4675_p4 = pnand %p4674_p3, %p4670_p0 }
  0x4a   :  { %4678 = shalt.err (!%p4675_p4)
}
  0x4b   :  { %s4783_s0 = smov 128   ;;  %s4784_s23 = smov 8  }
  0x4c   :  { %125 = dma.hbm_to_vmem [thread:$0]  %s118_s7, 4096, %s120_s11, [#allocation3], %s4783_s0, %s4783_s0, %s4784_s23  }
  0x4d   :  { %s4785_s26 = smov [#allocation5]   ;;  %s4691_s1 = sshra.s32 %s143_s15, 4  ;;  %s4692_s1 = int_to_ptr.hbm [resolvable:$true] %s4691_s1 }
  0x4e   :  { %s144_s28 = sshll.u32 %s4785_s26, 4  ;;  %s4693_s2 = scalar_lea.hbm %s4692_s1, 256  ;;  %s145_s28 = int_to_ptr.vmem [resolvable:$true] %s144_s28 }
  0x4f   :  { %p4694_p5 = scmp.ne.s32.totalorder %s4692_s1, %s4693_s2  ;;  %s4695_s10 = scalar_lea.hbm %s4906_s17, 256 }
  0x50   :  { %p4696_p6 = scmp.lt.s32.totalorder %s4692_s1, %s4906_s17  ;;  %p4697_p7 = scmp.lt.s32.totalorder %s4695_s10, %s4693_s2 }
  0x52   :  { %p4698_p8 = por %p4697_p7, %p4696_p6 }
  0x54   :  { %p4699_p9 = pnand %p4698_p8, %p4694_p5 }
  0x56   :  { %4702 = shalt.err (!%p4699_p9)
}
  0x57   :  { %150 = dma.hbm_to_vmem [thread:$0]  %s143_s15, 4096, %s145_s28, [#allocation6], %s4783_s0, %s4783_s0, %s4784_s23  }
  0x58   :  { %4739 = dma.done.wait [#allocation3], 4096  }
  0x59   :  { %4740 = vsyncadd [#allocation3], 4294963200 }
  0x5a   :  { %4741 = dma.done.wait [#allocation6], 4096  }
  0x5b   :  { %4742 = vsyncadd [#allocation6], 4294963200  ;;  %v4786_v0 = vmov 0   ;;  %vm241_vm0 = vcmask 261120   ;;  %v4991_v1 = vld [vmem:[%s4796_s5] sm:$0xff]  ;;  %v4994_v2 = vld [vmem:[%s4796_s5 + $0x8] sm:$0xff]  ;;  %v340_v7 = vlaneseq }
  0x5c   :  { %4330 = vset.pattern.permute.xlu0 %v4786_v0  ;;  %4162 = vmatpush.xpose.msk.msra.mxu2 %vm241_vm0, %v4991_v1  ;;  %v193_v3 = vld [vmem:[%s4826_s29] sm:$0xff]  ;;  %v210_v30 = vld [vmem:[%s4836_s8 + $0x78] sm:$0xff]  ;;  %v209_v31 = vld [vmem:[%s4836_s8 + $0x70] sm:$0xff]  ;;  %vm563_vm1 = vcmask 64512   ;;  %s5968_s17 = sld [smem:[#allocation22_spill]]  ;;  %vm1838_vm2 = vcmask 60416  }
  0x5d   :  { %4164 = vmatpush.xpose.msk.msra.mxu3 %vm241_vm0, %v4994_v2  ;;  %v191_v4 = vld [vmem:[%s4816_s21] sm:$0xff]  ;;  %4158 = vmatpush.xpose.msk.msra.mxu0 %vm241_vm0, %v4991_v1  ;;  %v5012_v8 = vshrl.u32 %v340_v7, 7  ;;  %v208_v32 = vld [vmem:[%s4836_s8 + $0x68] sm:$0xff]  ;;  %v226_v36 = vld [vmem:[%s4836_s8 + $0xf8] sm:$0xff]  ;;  %s5970_s21 = sld [smem:[#allocation24_spill]]  ;;  %vm2631_vm3 = vcmask 257024  }
  0x5e   :  { %v194_v5 = vld [vmem:[%s4831_s3] sm:$0xff]  ;;  %4160 = vmatpush.xpose.msk.msra.mxu1 %vm241_vm0, %v4994_v2  ;;  %v225_v38 = vld [vmem:[%s4836_s8 + $0xf0] sm:$0xff]  ;;  %v224_v39 = vld [vmem:[%s4836_s8 + $0xe8] sm:$0xff]  ;;  %s5973_s29 = sld [smem:[#allocation25_spill]]  ;;  %vm4015_vm4 = vcmask 1041409   ;;  %s4110_s0 = sshll.u32 %s4981_s4, 4  ;;  %s4111_s0 = int_to_ptr.hbm [resolvable:$true] %s4110_s0 }
  0x5f   :  { %293 = vperm.xlu0 %4330, %v194_v5   ;;  %4163 = vmatmul.msk.f32.vlgmr.msra.gmra.mxu2 %vm241_vm0, %v193_v3  ;;  %v192_v6 = vld [vmem:[%s4821_s25] sm:$0xff]  ;;  %v206_v42 = vld [vmem:[%s4836_s8 + $0x58] sm:$0xff]  ;;  %v205_v44 = vld [vmem:[%s4836_s8 + $0x50] sm:$0xff]  ;;  %s5971_s25 = sld [smem:[#allocation23_spill]]  ;;  %vm4101_vm5 = vcmask 17408   ;;  %s4727_s23 = sshra.s32 %s4111_s0, 4  ;;  %s4728_s23 = int_to_ptr.hbm [resolvable:$true] %s4727_s23 }
  0x60   :  { %4165 = vmatmul.msk.f32.vlgmr.msra.gmra.mxu3 %vm241_vm0, %v193_v3  ;;  %4159 = vmatmul.msk.f32.vlgmr.msra.gmra.mxu0 %vm241_vm0, %v191_v4  ;;  %v207_v33 = vld [vmem:[%s4836_s8 + $0x60] sm:$0xff]  ;;  %v204_v47 = vld [vmem:[%s4836_s8 + $0x48] sm:$0xff]  ;;  %v222_v49 = vld [vmem:[%s4836_s8 + $0xd8] sm:$0xff]  ;;  %s5974_s3 = sld [smem:[#allocation16_spill]]  ;;  %s4729_s26 = scalar_lea.hbm %s4728_s23, 2 }
  0x61   :  { %4161 = vmatmul.msk.f32.vlgmr.msra.gmra.mxu1 %vm241_vm0, %v191_v4  ;;  %4332 = vset.pattern.permute.xlu2 %v5012_v8  ;;  %v223_v41 = vld [vmem:[%s4836_s8 + $0xe0] sm:$0xff]  ;;  %v221_v52 = vld [vmem:[%s4836_s8 + $0xd0] sm:$0xff]  ;;  %v220_v55 = vld [vmem:[%s4836_s8 + $0xc8] sm:$0xff]  ;;  %s5981_s20 = sld [smem:[#allocation29_spill]]  ;;  %p4730_p10 = scmp.ne.s32.totalorder %s4728_s23, %s4729_s26 }
  0x62   :  { %4331 = vset.pattern.permute.xlu1 %v5012_v8  ;;  %740 = vmatpush.msrb.mxu3 %v210_v30  ;;  %v203_v48 = vld [vmem:[%s4836_s8 + $0x40] sm:$0xff]  ;;  %v5052_v56 = vld [vmem:[%s4836_s8 + $0x18] sm:$0xff]  ;;  %v5061_v59 = vld [vmem:[%s4836_s8 + $0x10] sm:$0xff]  ;;  %s5982_s7 = sld [smem:[#allocation18_spill]]  ;;  %s4731_s28 = scalar_lea.hbm %s4981_s4, 2 }
  0x63   :  { %720 = vmatpush.msrb.mxu2 %v206_v42  ;;  %v219_v57 = vld [vmem:[%s4836_s8 + $0xc0] sm:$0xff]  ;;  %680 = vmatpush.msrb.mxu0 %v5052_v56  ;;  %v5065_v62 = vld [vmem:[%s4836_s8 + $0x8] sm:$0xff]  ;;  %v5081_v7 = vld [vmem:[%s4836_s8 + $0x38] sm:$0xff]  ;;  %s5983_s11 = sld [smem:[#allocation17_spill]]  ;;  %p4732_p11 = scmp.lt.s32.totalorder %s4728_s23, %s4981_s4 }
  0x64   :  { %741 = vmatpush.msrb.mxu3 %v209_v31  ;;  %v5074_v5 = vld [vmem:[%s4836_s8] sm:$0xff]  ;;  %700 = vmatpush.msrb.mxu1 %v5081_v7  ;;  %s5984_s15 = sld [smem:[#allocation11_spill]]  ;;  %p4733_p12 = scmp.lt.s32.totalorder %s4731_s28, %s4729_s26 }
  0x65   :  { %721 = vmatpush.msrb.mxu2 %v205_v44  ;;  %681 = vmatpush.msrb.mxu0 %v5061_v59  ;;  %s5985_s16 = sld [smem:[#allocation12_spill]] }
  0x66   :  { %742 = vmatpush.msrb.mxu3 %v208_v32  ;;  %s5986_s18 = sld [smem:[#allocation30_spill]]  ;;  %p4734_p13 = por %p4733_p12, %p4732_p11 }
  0x67   :  { %238 = vperm.xlu0 %4330, %v192_v6   ;;  %722 = vmatpush.msrb.mxu2 %v204_v47 }
  0x68   :  { %743 = vmatpush.msrb.mxu3 %v207_v33  ;;  %682 = vmatpush.msrb.mxu0 %v5065_v62  ;;  %p4735_p0 = pnand %p4734_p13, %p4730_p10 }
  0x69   :  { %4169 = vmatmul.msk.f32.vlgmr.msrb.gmra.mxu3 %vm241_vm0, %v4991_v1  ;;  %723 = vmatpush.msrb.mxu2 %v203_v48 }
  0x6a   :  { %820 = vmatpush.msra.mxu3 %v226_v36  ;;  %4168 = vmatmul.msk.f32.vlgmr.msrb.gmra.mxu2 %vm241_vm0, %v4991_v1 }
  0x6b   :  { %800 = vmatpush.msra.mxu2 %v222_v49  ;;  %683 = vmatpush.msrb.mxu0 %v5074_v5 }
  0x6c   :  { %821 = vmatpush.msra.mxu3 %v225_v38  ;;  %4166 = vmatmul.msk.f32.vlgmr.msrb.gmra.mxu0 %vm241_vm0, %v4991_v1 }
  0x6d   :  { %801 = vmatpush.msra.mxu2 %v221_v52 }
  0x6e   :  { %822 = vmatpush.msra.mxu3 %v224_v39 }
  0x6f   :  { %4333 = vset.pattern.permute.xlu0 %v5012_v8  ;;  %802 = vmatpush.msra.mxu2 %v220_v55 }
  0x70   :  { %823 = vmatpush.msra.mxu3 %v223_v41 }
  0x71   :  { %4173 = vmatmul.msk.f32.vlgmr.msra.gmra.mxu3 %vm241_vm0, %v4991_v1  ;;  %803 = vmatpush.msra.mxu2 %v219_v57 }
  0x72   :  { %900 = vmatpush.msrb.mxu3 %v210_v30  ;;  %4172 = vmatmul.msk.f32.vlgmr.msra.gmra.mxu2 %vm241_vm0, %v4991_v1 }
  0x73   :  { %880 = vmatpush.msrb.mxu2 %v206_v42  ;;  %v5141_v42 = vld [vmem:[%s4836_s8 + $0xa0] sm:$0xff] }
  0x74   :  { %901 = vmatpush.msrb.mxu3 %v209_v31 }
  0x75   :  { %881 = vmatpush.msrb.mxu2 %v205_v44 }
  0x76   :  { %902 = vmatpush.msrb.mxu3 %v208_v32  ;;  %v5122_v32 = vld [vmem:[%s4836_s8 + $0x88] sm:$0xff] }
  0x77   :  { %882 = vmatpush.msrb.mxu2 %v204_v47 }
  0x78   :  { %903 = vmatpush.msrb.mxu3 %v207_v33  ;;  %v5125_v33 = vld [vmem:[%s4836_s8 + $0xa8] sm:$0xff] }
  0x79   :  { %4177 = vmatmul.msk.f32.vlgmr.msrb.gmra.mxu3 %vm241_vm0, %v4994_v2  ;;  %883 = vmatpush.msrb.mxu2 %v203_v48 }
  0x7a   :  { %980 = vmatpush.msra.mxu3 %v226_v36  ;;  %4176 = vmatmul.msk.f32.vlgmr.msrb.gmra.mxu2 %vm241_vm0, %v4994_v2 }
  0x7b   :  { %960 = vmatpush.msra.mxu2 %v222_v49 }
  0x7c   :  { %981 = vmatpush.msra.mxu3 %v225_v38 }
  0x7d   :  { %961 = vmatpush.msra.mxu2 %v221_v52 }
  0x7e   :  { %982 = vmatpush.msra.mxu3 %v224_v39 }
  0x7f   :  { %962 = vmatpush.msra.mxu2 %v220_v55 }
  0x80   :  { %983 = vmatpush.msra.mxu3 %v223_v41  ;;  %v5138_v41 = vld [vmem:[%s4836_s8 + $0x80] sm:$0xff] }
  0x81   :  { %4181 = vmatmul.msk.f32.vlgmr.msra.gmra.mxu3 %vm241_vm0, %v4994_v2  ;;  %963 = vmatpush.msra.mxu2 %v219_v57 }
  0x82   :  { %4180 = vmatmul.msk.f32.vlgmr.msra.gmra.mxu2 %vm241_vm0, %v4994_v2 }
  0xd1   :  { %v294_v9 = vpop.permute.xlu0 %293 }
  0xd9   :  { %v5025_v34 = vpop.permute.xlu0 %238 }
  0xdd   :  { %v265_v35 = vpop.f32.mrf.mxu0 }
  0xde   :  { %v5029_v37 = vadd.f32 %v265_v35, %v5025_v34 }
  0xe0   :  { %v455_v40 = vrot.slane %v5029_v37, 3  ;;  %v459_v54 = vrot.slane %v5029_v37, 7  ;;  %v458_v4 = vrot.slane %v5029_v37, 6  ;;  %v454_v6 = vrot.slane %v5029_v37, 2 }
  0xe1   :  { %v467_v35 = vperm.slane %v5029_v37, 0  ;;  %v456_v49 = vrot.slane %v5029_v37, 4  ;;  %v457_v57 = vrot.slane %v5029_v37, 5 }
  0xe2   :  { %v316_v10 = vpop.f32.mrf.mxu2  ;;  %v470_v43 = vperm.slane %v455_v40, 0  ;;  %v474_v58 = vperm.slane %v459_v54, 0 }
  0xe3   :  { %v317_v11 = vadd.f32 %v316_v10, %v294_v9  ;;  %v336_v15 = vpop.f32.mrf.mxu3  ;;  %v5085_v10 = vld [vmem:[%s4836_s8 + $0x30] sm:$0xff] }
  0xe4   :  { %v337_v16 = vadd.f32 %v336_v15, %v294_v9  ;;  %v473_v9 = vperm.slane %v458_v4, 0  ;;  %701 = vmatpush.msrb.mxu1 %v5085_v10 }
  0xe5   :  { %v381_v12 = vperm.slane %v317_v11, 6  ;;  %v360_v13 = vperm.slane %v317_v11, 3  ;;  %v353_v14 = vperm.slane %v317_v11, 2  ;;  %v346_v18 = vperm.slane %v317_v11, 1 }
  0xe6   :  { %v395_v17 = vperm.slane %v337_v16, 0  ;;  %v339_v19 = vperm.slane %v317_v11, 0  ;;  %v437_v20 = vperm.slane %v337_v16, 6  ;;  %v388_v21 = vperm.slane %v317_v11, 7 }
  0xe7   :  { %386 = vperm.xlu0 %4333, %v381_v12   ;;  %365 = vperm.xlu2 %4332, %v360_v13   ;;  %v367_v22 = vperm.slane %v317_v11, 4  ;;  %v430_v23 = vperm.slane %v337_v16, 5  ;;  %v409_v24 = vperm.slane %v337_v16, 2  ;;  %v374_v25 = vperm.slane %v317_v11, 5  ;;  %v288_v11 = vpop.f32.mrf.mxu1 }
  0xe8   :  { %358 = vperm.xlu1 %4331, %v353_v14   ;;  %v402_v26 = vperm.slane %v337_v16, 1  ;;  %v416_v27 = vperm.slane %v337_v16, 3  ;;  %v444_v28 = vperm.slane %v337_v16, 7  ;;  %v423_v29 = vperm.slane %v337_v16, 4 }
  0xe9   :  { %v469_v13 = vperm.slane %v454_v6, 0 }
  0xef   :  { %400 = vperm.xlu0 %4333, %v395_v17   ;;  %351 = vperm.xlu2 %4332, %v346_v18   ;;  %v5091_v17 = vld [vmem:[%s4836_s8 + $0x28] sm:$0xff] }
  0xf0   :  { %344 = vperm.xlu1 %4331, %v339_v19   ;;  %702 = vmatpush.msrb.mxu1 %v5091_v17 }
  0xf7   :  { %442 = vperm.xlu0 %4333, %v437_v20   ;;  %393 = vperm.xlu2 %4332, %v388_v21   ;;  %v5095_v20 = vadd.f32 %v288_v11, %v5025_v34  ;;  %v5098_v21 = vld [vmem:[%s4836_s8 + $0x20] sm:$0xff] }
  0xf8   :  { %372 = vperm.xlu1 %4331, %v367_v22   ;;  %703 = vmatpush.msrb.mxu1 %v5098_v21  ;;  %v5104_v22 = vld [vmem:[%s4836_s8 + $0x98] sm:$0xff] }
  0xf9   :  { %4167 = vmatmul.msk.f32.vlgmr.msrb.gmra.mxu1 %vm241_vm0, %v4991_v1  ;;  %760 = vmatpush.msra.mxu0 %v5104_v22  ;;  %v465_v40 = vrot.slane %v5095_v20, 6  ;;  %v464_v54 = vrot.slane %v5095_v20, 5 }
  0xfb   :  { %v481_v47 = vperm.slane %v465_v40, 0  ;;  %v480_v4 = vperm.slane %v464_v54, 0  ;;  %v463_v40 = vrot.slane %v5095_v20, 4 }
  0xff   :  { %435 = vperm.xlu0 %4333, %v430_v23   ;;  %414 = vperm.xlu2 %4332, %v409_v24   ;;  %v5107_v23 = vld [vmem:[%s4836_s8 + $0xb8] sm:$0xff]  ;;  %v453_v24 = vrot.slane %v5029_v37, 1 }
 0x100   :  { %379 = vperm.xlu1 %4331, %v374_v25   ;;  %780 = vmatpush.msra.mxu1 %v5107_v23  ;;  %v475_v25 = vperm.slane %v5095_v20, 0 }
 0x101   :  { %v468_v38 = vperm.slane %v453_v24, 0  ;;  %v460_v24 = vrot.slane %v5095_v20, 1 }
 0x107   :  { %407 = vperm.xlu2 %4332, %v402_v26   ;;  %v5114_v26 = vld [vmem:[%s4836_s8 + $0x90] sm:$0xff] }
 0x108   :  { %421 = vperm.xlu1 %4331, %v416_v27   ;;  %v5117_v27 = vld [vmem:[%s4836_s8 + $0xb0] sm:$0xff]  ;;  %761 = vmatpush.msra.mxu0 %v5114_v26  ;;  %s5975_s8 = sld [smem:[#allocation26_spill]] }
 0x109   :  { %781 = vmatpush.msra.mxu1 %v5117_v27 }
 0x10a   :  { %762 = vmatpush.msra.mxu0 %v5122_v32 }
 0x10b   :  { %782 = vmatpush.msra.mxu1 %v5125_v33 }
 0x10c   :  { %763 = vmatpush.msra.mxu0 %v5138_v41 }
 0x10d   :  { %783 = vmatpush.msra.mxu1 %v5141_v42  ;;  %4170 = vmatmul.msk.f32.vlgmr.msra.gmra.mxu0 %vm241_vm0, %v4991_v1 }
 0x10e   :  { %4171 = vmatmul.msk.f32.vlgmr.msra.gmra.mxu1 %vm241_vm0, %v4991_v1  ;;  %840 = vmatpush.msrb.mxu0 %v5052_v56  ;;  %v471_v56 = vperm.slane %v456_v49, 0 }
 0x10f   :  { %449 = vperm.xlu2 %4332, %v444_v28   ;;  %860 = vmatpush.msrb.mxu1 %v5081_v7  ;;  %v472_v7 = vperm.slane %v457_v57, 0 }
 0x110   :  { %428 = vperm.xlu1 %4331, %v423_v29   ;;  %841 = vmatpush.msrb.mxu0 %v5061_v59 }
 0x111   :  { %861 = vmatpush.msrb.mxu1 %v5085_v10 }
 0x112   :  { %842 = vmatpush.msrb.mxu0 %v5065_v62 }
 0x113   :  { %862 = vmatpush.msrb.mxu1 %v5091_v17 }
 0x114   :  { %843 = vmatpush.msrb.mxu0 %v5074_v5  ;;  %v461_v5 = vrot.slane %v5095_v20, 2 }
 0x115   :  { %4174 = vmatmul.msk.f32.vlgmr.msrb.gmra.mxu0 %vm241_vm0, %v4994_v2  ;;  %863 = vmatpush.msrb.mxu1 %v5098_v21 }
 0x116   :  { %920 = vmatpush.msra.mxu0 %v5104_v22  ;;  %4175 = vmatmul.msk.f32.vlgmr.msrb.gmra.mxu1 %vm241_vm0, %v4994_v2  ;;  %v477_v17 = vperm.slane %v461_v5, 0 }
 0x117   :  { %4335 = vset.pattern.permute.xlu2 %v4786_v0  ;;  %940 = vmatpush.msra.mxu1 %v5107_v23 }
 0x118   :  { %4334 = vset.pattern.permute.xlu1 %v4786_v0  ;;  %921 = vmatpush.msra.mxu0 %v5114_v26 }
 0x119   :  { %941 = vmatpush.msra.mxu1 %v5117_v27 }
 0x11a   :  { %922 = vmatpush.msra.mxu0 %v5122_v32 }
 0x11b   :  { %942 = vmatpush.msra.mxu1 %v5125_v33 }
 0x11c   :  { %923 = vmatpush.msra.mxu0 %v5138_v41 }
 0x11d   :  { %4178 = vmatmul.msk.f32.vlgmr.msra.gmra.mxu0 %vm241_vm0, %v4994_v2  ;;  %943 = vmatpush.msra.mxu1 %v5141_v42 }
 0x11e   :  { %4179 = vmatmul.msk.f32.vlgmr.msra.gmra.mxu1 %vm241_vm0, %v4994_v2 }
 0x141   :  { %v366_v45 = vpop.permute.xlu2 %365 }
 0x142   :  { %v502_v46 = vadd.f32 %v470_v43, %v366_v45 }
 0x144   :  { %4377 = vtanh.f32 %v502_v46 }
 0x149   :  { %v5046_v50 = vpop.permute.xlu2 %351 }
 0x14a   :  { %v4378_v51 = vpop.eup %4377  ;;  %v500_v45 = vadd.f32 %v468_v38, %v5046_v50  ;;  %v476_v38 = vperm.slane %v460_v24, 0  ;;  %v5240_v24 = vld [vmem:[%s4841_s14 + $0x7] ss:$0 sm:$0xff] }
 0x14b   :  { %v537_v53 = vmul.f32 1.442695, %v4378_v51 }
 0x14d   :  { %4379 = vpow2.f32 %v537_v53 }
 0x151   :  { %v394_v60 = vpop.permute.xlu2 %393 }
 0x152   :  { %v506_v61 = vadd.f32 %v474_v58, %v394_v60 }
 0x153   :  { %v5067_v63 = vpop.eup %4379 }
 0x154   :  { %4381 = vtanh.f32 %v506_v61  ;;  %v573_v3 = vsel %vm563_vm1, %v5067_v63, 0.0 }
 0x155   :  { %574 = vadd.xlane.f32.xlu0 %v573_v3 }
 0x159   :  { %v387_v12 = vpop.permute.xlu0 %386  ;;  %v415_v62 = vpop.permute.xlu2 %414 }
 0x15a   :  { %v4382_v14 = vpop.eup %4381  ;;  %v505_v15 = vadd.f32 %v473_v9, %v387_v12  ;;  %v359_v16 = vpop.permute.xlu1 %358  ;;  %v509_v21 = vadd.f32 %v477_v17, %v415_v62 }
 0x15b   :  { %v545_v18 = vmul.f32 1.442695, %v4382_v14  ;;  %v501_v19 = vadd.f32 %v469_v13, %v359_v16 }
 0x15c   :  { %4383 = vtanh.f32 %v505_v15 }
 0x15d   :  { %4385 = vpow2.f32 %v545_v18  ;;  %v462_v18 = vrot.slane %v5095_v20, 3 }
 0x15e   :  { %4387 = vtanh.f32 %v501_v19 }
 0x15f   :  { %v478_v26 = vperm.slane %v462_v18, 0 }
 0x161   :  { %v401_v28 = vpop.permute.xlu0 %400 }
 0x162   :  { %v4384_v29 = vpop.eup %4383  ;;  %v507_v30 = vadd.f32 %v475_v25, %v401_v28  ;;  %v345_v31 = vpop.permute.xlu1 %344 }
 0x163   :  { %v5129_v34 = vpop.eup %4385  ;;  %v499_v44 = vadd.f32 %v467_v35, %v345_v31  ;;  %v543_v46 = vmul.f32 1.442695, %v4384_v29  ;;  %v408_v28 = vpop.permute.xlu2 %407 }
 0x164   :  { %v4388_v36 = vpop.eup %4387  ;;  %4389 = vtanh.f32 %v507_v30  ;;  %v585_v39 = vsel %vm563_vm1, %v5129_v34, 0.0  ;;  %v508_v42 = vadd.f32 %v476_v38, %v408_v28  ;;  %v4347_v28 = vld [vmem:[%s4841_s14 + $0x2] ss:$0 sm:$0xff]  ;;  %v685_v38 = vpop.f32.mrf.mxu0 }
 0x165   :  { %v535_v43 = vmul.f32 1.442695, %v4388_v36  ;;  %586 = vadd.xlane.f32.xlu0 %v585_v39 }
 0x167   :  { %4391 = vpow2.f32 %v535_v43 }
 0x168   :  { %4393 = vtanh.f32 %v499_v44  ;;  %v466_v44 = vrot.slane %v5095_v20, 7 }
 0x169   :  { %v443_v48 = vpop.permute.xlu0 %442  ;;  %4395 = vtanh.f32 %v500_v45 }
 0x16a   :  { %v4390_v50 = vpop.eup %4389  ;;  %v513_v51 = vadd.f32 %v481_v47, %v443_v48  ;;  %v373_v52 = vpop.permute.xlu1 %372  ;;  %4397 = vpow2.f32 %v543_v46  ;;  %v479_v46 = vperm.slane %v463_v40, 0 }
 0x16b   :  { %v547_v53 = vmul.f32 1.442695, %v4390_v50  ;;  %v503_v60 = vadd.f32 %v471_v56, %v373_v52  ;;  %v450_v52 = vpop.permute.xlu2 %449  ;;  %v482_v56 = vperm.slane %v466_v44, 0  ;;  %v4350_v44 = vld [vmem:[%s4841_s14 + $0x1] ss:$0 sm:$0xff] }
 0x16c   :  { %4399 = vtanh.f32 %v513_v51 }
 0x16d   :  { %v5158_v55 = vpop.eup %4391  ;;  %4401 = vpow2.f32 %v547_v53 }
 0x16e   :  { %v570_v58 = vsel %vm563_vm1, %v5158_v55, 0.0  ;;  %v4394_v59 = vpop.eup %4393 }
 0x16f   :  { %571 = vadd.xlane.f32.xlu1 %v570_v58  ;;  %v4396_v61 = vpop.eup %4395  ;;  %v531_v3 = vmul.f32 1.442695, %v4394_v59  ;;  %v514_v59 = vadd.f32 %v482_v56, %v450_v52 }
 0x170   :  { %v5170_v37 = vpop.eup %4397  ;;  %v533_v15 = vmul.f32 1.442695, %v4396_v61 }
 0x171   :  { %v436_v6 = vpop.permute.xlu0 %435  ;;  %4403 = vpow2.f32 %v531_v3  ;;  %v582_v19 = vsel %vm563_vm1, %v5170_v37, 0.0 }
 0x172   :  { %v4400_v9 = vpop.eup %4399  ;;  %v512_v10 = vadd.f32 %v480_v4, %v436_v6  ;;  %v380_v11 = vpop.permute.xlu1 %379  ;;  %4405 = vtanh.f32 %v503_v60 }
 0x173   :  { %v5175_v12 = vpop.eup %4401  ;;  %v559_v13 = vmul.f32 1.442695, %v4400_v9  ;;  %v504_v14 = vadd.f32 %v472_v7, %v380_v11 }
 0x174   :  { %4407 = vtanh.f32 %v512_v10  ;;  %v588_v16 = vsel %vm563_vm1, %v5175_v12, 0.0 }
 0x175   :  { %4409 = vpow2.f32 %v559_v13  ;;  %589 = vadd.xlane.f32.xlu0 %v588_v16 }
 0x176   :  { %4411 = vtanh.f32 %v504_v14 }
 0x177   :  { %583 = vadd.xlane.f32.xlu1 %v582_v19  ;;  %v5188_v22 = vpop.eup %4403  ;;  %4413 = vpow2.f32 %v533_v15  ;;  %v4345_v19 = vld [vmem:[%s4841_s14 + $0x3] ss:$0 sm:$0xff] }
 0x178   :  { %v4406_v23 = vpop.eup %4405  ;;  %v564_v25 = vsel %vm563_vm1, %v5188_v22, 0.0  ;;  %4415 = vtanh.f32 %v509_v21  ;;  %v745_v21 = vpop.f32.mrf.mxu3 }
 0x179   :  { %565 = vadd.xlane.f32.xlu2 %v564_v25  ;;  %v539_v35 = vmul.f32 1.442695, %v4406_v23  ;;  %v746_v23 = vadd.f32 %v4345_v19, %v745_v21 }
 0x17a   :  { %v4408_v27 = vpop.eup %4407  ;;  %v422_v29 = vpop.permute.xlu1 %421 }
 0x17b   :  { %v5196_v30 = vpop.eup %4409  ;;  %v557_v31 = vmul.f32 1.442695, %v4408_v27  ;;  %v510_v32 = vadd.f32 %v478_v26, %v422_v29  ;;  %1075 = vmatpush.msrb.mxu3 %v746_v23  ;;  %v725_v29 = vpop.f32.mrf.mxu2 }
 0x17c   :  { %v4412_v33 = vpop.eup %4411  ;;  %v606_v36 = vsel %vm563_vm1, %v5196_v30, 0.0 }
 0x17d   :  { %4417 = vpow2.f32 %v557_v31  ;;  %v541_v39 = vmul.f32 1.442695, %v4412_v33  ;;  %607 = vadd.xlane.f32.xlu0 %v606_v36  ;;  %v5201_v41 = vpop.eup %4413  ;;  %v726_v31 = vadd.f32 %v4347_v28, %v725_v29  ;;  %v4349_v36 = vld [vmem:[%s4841_s14 + $0x6] ss:$0 sm:$0xff] }
 0x17e   :  { %4419 = vtanh.f32 %v510_v32  ;;  %v4416_v43 = vpop.eup %4415  ;;  %v567_v45 = vsel %vm563_vm1, %v5201_v41, 0.0 }
 0x17f   :  { %4421 = vpow2.f32 %v541_v39  ;;  %v551_v51 = vmul.f32 1.442695, %v4416_v43  ;;  %1052 = vmatpush.msrb.mxu2 %v726_v31 }
 0x180   :  { %4423 = vpow2.f32 %v539_v35  ;;  %v825_v25 = vpop.f32.mrf.mxu3  ;;  %v4348_v35 = vld [vmem:[%s4841_s14] ss:$0 sm:$0xff] }
 0x181   :  { %568 = vadd.xlane.f32.xlu2 %v567_v45  ;;  %4425 = vtanh.f32 %v508_v42  ;;  %v826_v26 = vadd.f32 %v5240_v24, %v825_v25  ;;  %v686_v40 = vadd.f32 %v4348_v35, %v685_v38  ;;  %v705_v45 = vpop.f32.mrf.mxu1 }
 0x182   :  { %v429_v47 = vpop.permute.xlu1 %428 }
 0x183   :  { %v5206_v48 = vpop.eup %4417  ;;  %v511_v49 = vadd.f32 %v479_v46, %v429_v47  ;;  %1167 = vmatpush.msra.mxu3 %v826_v26  ;;  %v805_v39 = vpop.f32.mrf.mxu2  ;;  %1006 = vmatpush.msrb.mxu0 %v686_v40  ;;  %v706_v46 = vadd.f32 %v4350_v44, %v705_v45 }
 0x184   :  { %v4420_v50 = vpop.eup %4419  ;;  %v603_v53 = vsel %vm563_vm1, %v5206_v48, 0.0  ;;  %v806_v42 = vadd.f32 %v4349_v36, %v805_v39 }
 0x185   :  { %v5210_v54 = vpop.eup %4421  ;;  %v553_v20 = vmul.f32 1.442695, %v4420_v50  ;;  %4427 = vtanh.f32 %v511_v49  ;;  %604 = vadd.xlane.f32.xlu0 %v603_v53  ;;  %1029 = vmatpush.msrb.mxu1 %v706_v46  ;;  %v4351_v50 = vld [vmem:[%s4841_s14 + $0x4] ss:$0 sm:$0xff] }
 0x186   :  { %v5212_v57 = vpop.eup %4423  ;;  %v579_v58 = vsel %vm563_vm1, %v5210_v54, 0.0  ;;  %1144 = vmatpush.msra.mxu2 %v806_v42 }
 0x187   :  { %4429 = vpow2.f32 %v553_v20  ;;  %580 = vadd.xlane.f32.xlu1 %v579_v58  ;;  %v4426_v60 = vpop.eup %4425  ;;  %v576_v61 = vsel %vm563_vm1, %v5212_v57, 0.0 }
 0x188   :  { %4431 = vpow2.f32 %v551_v51  ;;  %v549_v3 = vmul.f32 1.442695, %v4426_v60  ;;  %v4352_v51 = vld [vmem:[%s4841_s14 + $0x5] ss:$0 sm:$0xff]  ;;  %s5976_s14 = sld [smem:[#allocation15_spill]] }
 0x189   :  { %577 = vadd.xlane.f32.xlu2 %v576_v61  ;;  %4433 = vtanh.f32 %v514_v59 }
 0x18a   :  { %v765_v52 = vpop.f32.mrf.mxu0 }
 0x18b   :  { %v4428_v62 = vpop.eup %4427  ;;  %v766_v53 = vadd.f32 %v4351_v50, %v765_v52  ;;  %v785_v56 = vpop.f32.mrf.mxu1 }
 0x18c   :  { %v555_v4 = vmul.f32 1.442695, %v4428_v62  ;;  %v786_v20 = vadd.f32 %v4352_v51, %v785_v56  ;;  %v885_v61 = vpop.f32.mrf.mxu2  ;;  %v905_v62 = vpop.f32.mrf.mxu3 }
 0x18d   :  { %v5218_v5 = vpop.eup %4429  ;;  %1098 = vmatpush.msra.mxu0 %v766_v53 }
 0x18e   :  { %v5220_v6 = vpop.eup %4431  ;;  %4435 = vpow2.f32 %v555_v4  ;;  %v597_v7 = vsel %vm563_vm1, %v5218_v5, 0.0  ;;  %1121 = vmatpush.msra.mxu1 %v786_v20  ;;  %v906_v4 = vadd.f32 %v4345_v19, %v905_v62  ;;  %v189_v20 = vld [vmem:[%s4801_s9] sm:$0xf] }
 0x18f   :  { %598 = vadd.xlane.f32.xlu1 %v597_v7  ;;  %4437 = vpow2.f32 %v549_v3  ;;  %v4434_v9 = vpop.eup %4433  ;;  %v594_v10 = vsel %vm563_vm1, %v5220_v6, 0.0 }
 0x190   :  { %v561_v13 = vmul.f32 1.442695, %v4434_v9 }
 0x191   :  { %595 = vadd.xlane.f32.xlu2 %v594_v10 }
 0x192   :  { %4439 = vpow2.f32 %v561_v13  ;;  %v845_v9 = vpop.f32.mrf.mxu0 }
 0x193   :  { %v865_v19 = vpop.f32.mrf.mxu1 }
 0x194   :  { %v5226_v11 = vpop.eup %4435  ;;  %v965_v13 = vpop.f32.mrf.mxu2  ;;  %v866_v26 = vadd.f32 %v4350_v44, %v865_v19 }
 0x195   :  { %v600_v14 = vsel %vm563_vm1, %v5226_v11, 0.0  ;;  %v5230_v15 = vpop.eup %4437 }
 0x196   :  { %v591_v16 = vsel %vm563_vm1, %v5230_v15, 0.0 }
 0x197   :  { %601 = vadd.xlane.f32.xlu1 %v600_v14 }
 0x198   :  { %v5234_v17 = vpop.eup %4439 }
 0x199   :  { %592 = vadd.xlane.f32.xlu2 %v591_v16  ;;  %v609_v18 = vsel %vm563_vm1, %v5234_v17, 0.0  ;;  %v966_v16 = vadd.f32 %v4349_v36, %v965_v13 }
 0x1a1   :  { %610 = vadd.xlane.f32.xlu2 %v609_v18 }
 0x1c8   :  { %v575_v27 = vpop.xlane.xlu0 %574 }
 0x1c9   :  { %4441 = vrcp.f32 %v575_v27 }
 0x1cf   :  { %v4442_v32 = vpop.eup %4441 }
 0x1d0   :  { %v631_v33 = vmul.f32 %v4442_v32, %v5067_v63  ;;  %v925_v32 = vpop.f32.mrf.mxu0 }
 0x1d1   :  { %v926_v39 = vadd.f32 %v4351_v50, %v925_v32 }
 0x1d2   :  { %4185 = vmatmul.msk.f32.vlgmr.msrb.gmra.mxu3 %vm563_vm1, %v631_v33  ;;  %v945_v33 = vpop.f32.mrf.mxu1 }
 0x1d3   :  { %1259 = vmatpush.msrb.mxu3 %v906_v4  ;;  %v946_v40 = vadd.f32 %v4352_v51, %v945_v33 }
 0x1d8   :  { %v587_v43 = vpop.xlane.xlu0 %586 }
 0x1d9   :  { %4443 = vrcp.f32 %v587_v43 }
 0x1df   :  { %v4444_v47 = vpop.eup %4443 }
 0x1e0   :  { %v635_v63 = vmul.f32 %v4444_v47, %v5129_v34  ;;  %v886_v34 = vadd.f32 %v4347_v28, %v885_v61  ;;  %v1392_v61 = vld [vmem:[%s5968_s17 + $0x8] sm:$0xff] }
 0x1e2   :  { %v572_v49 = vpop.xlane.xlu1 %571  ;;  %4189 = vmatmul.msk.f32.vlgmr.msra.gmra.mxu3 %vm563_vm1, %v635_v63 }
 0x1e3   :  { %4445 = vrcp.f32 %v572_v49  ;;  %v1468_v49 = vld [vmem:[%s4856_s30] sm:$0xff]  ;;  %s5978_s30 = sld [smem:[#allocation28_spill]] }
 0x1e4   :  { %1514 = vperm.xlu2 %4335, %v1468_v49  }
 0x1e8   :  { %v590_v27 = vpop.xlane.xlu0 %589 }
 0x1e9   :  { %v4446_v58 = vpop.eup %4445 }
 0x1ea   :  { %v630_v59 = vmul.f32 %v4446_v58, %v5158_v55  ;;  %v584_v60 = vpop.xlane.xlu1 %583  ;;  %v846_v55 = vadd.f32 %v4348_v35, %v845_v9  ;;  %v1467_v58 = vld [vmem:[%s4851_s24] sm:$0xff]  ;;  %s5977_s24 = sld [smem:[#allocation20_spill]] }
 0x1eb   :  { %4447 = vrcp.f32 %v584_v60  ;;  %v1469_v60 = vld [vmem:[%s4861_s6] sm:$0xff]  ;;  %s5979_s6 = sld [smem:[#allocation27_spill]] }
 0x1ec   :  { %4184 = vmatmul.msk.f32.vlgmr.msrb.gmra.mxu2 %vm563_vm1, %v630_v59  ;;  %v566_v3 = vpop.xlane.xlu2 %565  ;;  %4337 = vset.pattern.permute.xlu2 %v5012_v8  ;;  %v190_v59 = vld [vmem:[%s4801_s9 + $0x4] sm:$0xf]  ;;  %s5969_s9 = sld [smem:[#allocation13_spill]] }
 0x1ed   :  { %4449 = vrcp.f32 %v566_v3  ;;  %1236 = vmatpush.msrb.mxu2 %v886_v34  ;;  %v1391_v34 = vld [vmem:[%s5968_s17] sm:$0xff] }
 0x1f1   :  { %v4448_v7 = vpop.eup %4447 }
 0x1f2   :  { %v634_v10 = vmul.f32 %v4448_v7, %v5170_v37  ;;  %v985_v37 = vpop.f32.mrf.mxu3 }
 0x1f3   :  { %v4450_v14 = vpop.eup %4449  ;;  %v986_v31 = vadd.f32 %v5240_v24, %v985_v37  ;;  %v608_v24 = vpop.xlane.xlu0 %607 }
 0x1f4   :  { %4188 = vmatmul.msk.f32.vlgmr.msra.gmra.mxu2 %vm563_vm1, %v634_v10  ;;  %v628_v18 = vmul.f32 %v4450_v14, %v5188_v22  ;;  %v569_v21 = vpop.xlane.xlu2 %568 }
 0x1f5   :  { %4451 = vrcp.f32 %v569_v21  ;;  %1328 = vmatpush.msra.mxu2 %v966_v16  ;;  %1351 = vmatpush.msra.mxu3 %v986_v31 }
 0x1f6   :  { %4182 = vmatmul.msk.f32.vlgmr.msrb.gmra.mxu0 %vm563_vm1, %v628_v18 }
 0x1f7   :  { %1190 = vmatpush.msrb.mxu0 %v846_v55 }
 0x1fa   :  { %v581_v23 = vpop.xlane.xlu1 %580 }
 0x1fb   :  { %4453 = vrcp.f32 %v581_v23  ;;  %v4452_v25 = vpop.eup %4451  ;;  %v605_v50 = vpop.xlane.xlu0 %604 }
 0x1fc   :  { %v629_v28 = vmul.f32 %v4452_v25, %v5201_v41  ;;  %v578_v29 = vpop.xlane.xlu2 %577 }
 0x1fd   :  { %4455 = vrcp.f32 %v578_v29 }
 0x1fe   :  { %4183 = vmatmul.msk.f32.vlgmr.msrb.gmra.mxu1 %vm563_vm1, %v629_v28 }
 0x1ff   :  { %1213 = vmatpush.msrb.mxu1 %v866_v26 }
 0x201   :  { %v4454_v22 = vpop.eup %4453 }
 0x202   :  { %v599_v35 = vpop.xlane.xlu1 %598  ;;  %v633_v36 = vmul.f32 %v4454_v22, %v5210_v54  ;;  %v4353_v22 = vld [vmem:[%s5969_s9] ss:$0 sm:$0xff] }
 0x203   :  { %4457 = vrcp.f32 %v599_v35  ;;  %v4456_v38 = vpop.eup %4455 }
 0x204   :  { %4459 = vrcp.f32 %v590_v27  ;;  %v632_v41 = vmul.f32 %v4456_v38, %v5212_v57  ;;  %v596_v42 = vpop.xlane.xlu2 %595 }
 0x205   :  { %4461 = vrcp.f32 %v596_v42 }
 0x206   :  { %4186 = vmatmul.msk.f32.vlgmr.msra.gmra.mxu0 %vm563_vm1, %v632_v41  ;;  %4187 = vmatmul.msk.f32.vlgmr.msra.gmra.mxu1 %vm563_vm1, %v633_v36 }
 0x207   :  { %1282 = vmatpush.msra.mxu0 %v926_v39  ;;  %1305 = vmatpush.msra.mxu1 %v946_v40 }
 0x209   :  { %v4458_v43 = vpop.eup %4457 }
 0x20a   :  { %v4460_v54 = vpop.eup %4459  ;;  %v639_v44 = vmul.f32 %v4458_v43, %v5218_v5  ;;  %v602_v45 = vpop.xlane.xlu1 %601  ;;  %v1470_v5 = vld [vmem:[%s4866_s12] sm:$0xff]  ;;  %s5980_s12 = sld [smem:[#allocation19_spill]] }
 0x20b   :  { %4463 = vrcp.f32 %v602_v45  ;;  %v4462_v46 = vpop.eup %4461  ;;  %v636_v57 = vmul.f32 %v4460_v54, %v5175_v12  ;;  %1562 = vperm.xlu1 %4334, %v1470_v5  }
 0x20c   :  { %4193 = vmatmul.msk.f32.vlgmr.msrb.gmra.mxu3 %vm563_vm1, %v639_v44  ;;  %4465 = vrcp.f32 %v608_v24  ;;  %v638_v47 = vmul.f32 %v4462_v46, %v5220_v6  ;;  %v593_v63 = vpop.xlane.xlu2 %592 }
 0x20d   :  { %4204 = vmatpush.xpose.msk.msrb.mxu3 %vm241_vm0, %v4994_v2  ;;  %4467 = vrcp.f32 %v593_v63 }
 0x20e   :  { %4190 = vmatmul.msk.f32.vlgmr.msrb.gmra.mxu0 %vm563_vm1, %v636_v57  ;;  %4192 = vmatmul.msk.f32.vlgmr.msrb.gmra.mxu2 %vm563_vm1, %v638_v47  ;;  %4469 = vrcp.f32 %v605_v50 }
 0x20f   :  { %4202 = vmatpush.xpose.msk.msrb.mxu2 %vm241_vm0, %v4991_v1 }
 0x211   :  { %v4464_v12 = vpop.eup %4463 }
 0x212   :  { %v4466_v6 = vpop.eup %4465  ;;  %v640_v51 = vmul.f32 %v4464_v12, %v5226_v11 }
 0x213   :  { %v4468_v52 = vpop.eup %4467  ;;  %v642_v56 = vmul.f32 %v4466_v6, %v5196_v30  ;;  %4336 = vset.pattern.permute.xlu1 %v5012_v8 }
 0x214   :  { %v637_v2 = vmul.f32 %v4468_v52, %v5230_v15  ;;  %v611_v53 = vpop.xlane.xlu2 %610  ;;  %v4470_v1 = vpop.eup %4469 }
 0x215   :  { %4471 = vrcp.f32 %v611_v53  ;;  %v641_v30 = vmul.f32 %v4470_v1, %v5206_v48  ;;  %v1394_v48 = vld [vmem:[%s5968_s17 + $0x18] sm:$0xff] }
 0x216   :  { %4191 = vmatmul.msk.f32.vlgmr.msrb.gmra.mxu1 %vm563_vm1, %v637_v2  ;;  %4194 = vmatmul.msk.f32.vlgmr.msra.gmra.mxu0 %vm563_vm1, %v640_v51 }
 0x217   :  { %4196 = vmatmul.msk.f32.vlgmr.msra.gmra.mxu2 %vm563_vm1, %v642_v56  ;;  %1422 = vmatpush.msrb.mxu0 %v1394_v48 }
 0x218   :  { %4206 = vmatpush.xpose.msk.msra.mxu2 %vm241_vm0, %v189_v20 }
 0x21b   :  { %v4472_v11 = vpop.eup %4471 }
 0x21c   :  { %v643_v15 = vmul.f32 %v4472_v11, %v5234_v17  ;;  %v1393_v17 = vld [vmem:[%s5968_s17 + $0x10] sm:$0xff] }
 0x21d   :  { %1423 = vmatpush.msrb.mxu0 %v1393_v17 }
 0x21e   :  { %4195 = vmatmul.msk.f32.vlgmr.msra.gmra.mxu1 %vm563_vm1, %v641_v30  ;;  %4197 = vmatmul.msk.f32.vlgmr.msra.gmra.mxu3 %vm563_vm1, %v643_v15 }
 0x21f   :  { %4203 = vmatmul.msk.f32.vlgmr.msrb.gmra.mxu2 %vm241_vm0, %v1467_v58  ;;  %4208 = vmatpush.xpose.msk.msra.mxu3 %vm241_vm0, %v190_v59 }
 0x220   :  { %1424 = vmatpush.msrb.mxu0 %v1392_v61 }
 0x222   :  { %1425 = vmatpush.msrb.mxu0 %v1391_v34 }
 0x226   :  { %4205 = vmatmul.msk.f32.vlgmr.msrb.gmra.mxu3 %vm241_vm0, %v1467_v58 }
 0x227   :  { %4207 = vmatmul.msk.f32.vlgmr.msra.gmra.mxu2 %vm241_vm0, %v1469_v60 }
 0x22e   :  { %4209 = vmatmul.msk.f32.vlgmr.msra.gmra.mxu3 %vm241_vm0, %v1469_v60 }
 0x255   :  { %v1077_v14 = vpop.f32.mrf.mxu3 }
 0x256   :  { %v1361_v16 = vsel %vm241_vm0, %v1077_v14, 0.0 }
 0x265   :  { %v1169_v27 = vpop.f32.mrf.mxu3 }
 0x266   :  { %v1369_v32 = vsel %vm241_vm0, %v1169_v27, 0.0  ;;  %v1485_v27 = vld [vmem:[#allocation2 + $0x70] sm:$0xff] }
 0x26f   :  { %v1054_v3 = vpop.f32.mrf.mxu2 }
 0x270   :  { %v1359_v13 = vsel %vm241_vm0, %v1054_v3, 0.0 }
 0x273   :  { %v1008_v62 = vpop.f32.mrf.mxu0 }
 0x274   :  { %v1356_v7 = vsel %vm241_vm0, %v1008_v62, 0.0 }
 0x277   :  { %v1146_v25 = vpop.f32.mrf.mxu2 }
 0x278   :  { %v1367_v29 = vsel %vm241_vm0, %v1146_v25, 0.0  ;;  %v1482_v25 = vld [vmem:[#allocation2 + $0x58] sm:$0xff] }
 0x279   :  { %1995 = vmatpush.msrb.mxu2 %v1482_v25 }
 0x27b   :  { %v1031_v4 = vpop.f32.mrf.mxu1 }
 0x27c   :  { %v1357_v9 = vsel %vm241_vm0, %v1031_v4, 0.0 }
 0x27d   :  { %v1358_v10 = vadd.f32 %v1357_v9, %v1356_v7  ;;  %v1563_v20 = vpop.permute.xlu1 %1562 }
 0x27f   :  { %v1360_v55 = vadd.f32 %v1359_v13, %v1358_v10 }
 0x281   :  { %v1362_v21 = vadd.f32 %v1361_v16, %v1360_v55 }
 0x283   :  { %v1100_v18 = vpop.f32.mrf.mxu0  ;;  %v1123_v19 = vpop.f32.mrf.mxu1 }
 0x284   :  { %v1363_v23 = vsel %vm241_vm0, %v1100_v18, 0.0  ;;  %v1365_v37 = vsel %vm241_vm0, %v1123_v19, 0.0  ;;  %v1399_v18 = vld [vmem:[%s5970_s21 + $0x18] sm:$0xff]  ;;  %v1397_v19 = vld [vmem:[%s5970_s21 + $0x8] sm:$0xff] }
 0x285   :  { %v1364_v26 = vadd.f32 %v1363_v23, %v1362_v21  ;;  %1456 = vmatpush.msrb.mxu1 %v1399_v18  ;;  %v1398_v21 = vld [vmem:[%s5970_s21 + $0x10] sm:$0xff]  ;;  %v1396_v23 = vld [vmem:[%s5970_s21] sm:$0xff] }
 0x287   :  { %v1366_v28 = vadd.f32 %v1365_v37, %v1364_v26  ;;  %1457 = vmatpush.msrb.mxu1 %v1398_v21  ;;  %v1486_v26 = vld [vmem:[#allocation2 + $0x78] sm:$0xff]  ;;  %v1481_v37 = vld [vmem:[#allocation2 + $0x50] sm:$0xff] }
 0x288   :  { %2015 = vmatpush.msrb.mxu3 %v1486_v26  ;;  %1996 = vmatpush.msrb.mxu2 %v1481_v37 }
 0x289   :  { %v1368_v31 = vadd.f32 %v1367_v29, %v1366_v28  ;;  %1458 = vmatpush.msrb.mxu1 %v1397_v19  ;;  %v5334_v28 = vld [vmem:[%s5971_s25] ss:$0 sm:$0xff]  ;;  %v1480_v29 = vld [vmem:[#allocation2 + $0x48] sm:$0xff] }
 0x28a   :  { %2016 = vmatpush.msrb.mxu3 %v1485_v27  ;;  %1997 = vmatpush.msrb.mxu2 %v1480_v29 }
 0x28b   :  { %v1370_v33 = vadd.f32 %v1369_v32, %v1368_v31  ;;  %v1192_v36 = vpop.f32.mrf.mxu0  ;;  %1459 = vmatpush.msrb.mxu1 %v1396_v23  ;;  %v1484_v31 = vld [vmem:[#allocation2 + $0x68] sm:$0xff] }
 0x28c   :  { %v1371_v40 = vsel %vm241_vm0, %v1192_v36, 0.0  ;;  %2017 = vmatpush.msrb.mxu3 %v1484_v31  ;;  %v5341_v36 = vld [vmem:[#allocation2 + $0x40] sm:$0xff] }
 0x28d   :  { %v1389_v35 = vadd.f32 %v4353_v22, %v1370_v33  ;;  %1998 = vmatpush.msrb.mxu2 %v5341_v36 }
 0x28f   :  { %4198 = vmatmul.msk.f32.vlgmr.msrb.gmra.mxu0 %vm241_vm0, %v1389_v35  ;;  %v1261_v42 = vpop.f32.mrf.mxu3  ;;  %v5339_v35 = vld [vmem:[#allocation2 + $0x18] sm:$0xff] }
 0x290   :  { %v1376_v45 = vsel %vm241_vm0, %v1261_v42, 0.0  ;;  %1955 = vmatpush.msra.mxu0 %v5339_v35  ;;  %v5355_v42 = vld [vmem:[#allocation2 + $0xd8] sm:$0xff] }
 0x291   :  { %v1238_v38 = vpop.f32.mrf.mxu2  ;;  %2075 = vmatpush.msra.mxu2 %v5355_v42 }
 0x292   :  { %v1374_v43 = vsel %vm241_vm0, %v1238_v38, 0.0  ;;  %v5343_v38 = vld [vmem:[#allocation2 + $0x60] sm:$0xff] }
 0x293   :  { %v1215_v39 = vpop.f32.mrf.mxu1  ;;  %v1284_v44 = vpop.f32.mrf.mxu0  ;;  %2018 = vmatpush.msrb.mxu3 %v5343_v38 }
 0x294   :  { %v1372_v41 = vsel %vm241_vm0, %v1215_v39, 0.0  ;;  %v1378_v57 = vsel %vm241_vm0, %v1284_v44, 0.0  ;;  %v5368_v44 = vld [vmem:[#allocation2 + $0xf0] sm:$0xff] }
 0x295   :  { %v1373_v24 = vadd.f32 %v1372_v41, %v1371_v40  ;;  %v5349_v40 = vld [vmem:[%s4796_s5] sm:$0xff]  ;;  %v5353_v41 = vld [vmem:[#allocation2 + $0x10] sm:$0xff] }
 0x296   :  { %4212 = vmatmul.msk.f32.vlgmr.msrb.gmra.mxu2 %vm241_vm0, %v5349_v40  ;;  %4213 = vmatmul.msk.f32.vlgmr.msrb.gmra.mxu3 %vm241_vm0, %v5349_v40 }
 0x297   :  { %v1375_v54 = vadd.f32 %v1374_v43, %v1373_v24  ;;  %v5357_v24 = vld [vmem:[#allocation2 + $0xf8] sm:$0xff]  ;;  %1956 = vmatpush.msra.mxu0 %v5353_v41  ;;  %v5364_v43 = vld [vmem:[#allocation2 + $0x8] sm:$0xff] }
 0x298   :  { %2095 = vmatpush.msra.mxu3 %v5357_v24 }
 0x299   :  { %v1377_v46 = vadd.f32 %v1376_v45, %v1375_v54  ;;  %v5366_v54 = vld [vmem:[#allocation2 + $0xd0] sm:$0xff]  ;;  %1957 = vmatpush.msra.mxu0 %v5364_v43 }
 0x29a   :  { %v1330_v47 = vpop.f32.mrf.mxu2  ;;  %2076 = vmatpush.msra.mxu2 %v5366_v54  ;;  %2096 = vmatpush.msra.mxu3 %v5368_v44 }
 0x29b   :  { %v1379_v63 = vadd.f32 %v1378_v57, %v1377_v46  ;;  %v1307_v5 = vpop.f32.mrf.mxu1  ;;  %v1382_v50 = vsel %vm241_vm0, %v1330_v47, 0.0  ;;  %v5373_v46 = vld [vmem:[#allocation2] sm:$0xff]  ;;  %v5375_v57 = vld [vmem:[#allocation2 + $0xc8] sm:$0xff] }
 0x29c   :  { %v1380_v49 = vsel %vm241_vm0, %v1307_v5, 0.0  ;;  %v5377_v47 = vld [vmem:[#allocation2 + $0xe8] sm:$0xff]  ;;  %1958 = vmatpush.msra.mxu0 %v5373_v46  ;;  %2077 = vmatpush.msra.mxu2 %v5375_v57  ;;  %v5384_v5 = vld [vmem:[#allocation2 + $0xc0] sm:$0xff] }
 0x29d   :  { %v1381_v12 = vadd.f32 %v1380_v49, %v1379_v63  ;;  %v5382_v63 = vld [vmem:[#allocation2 + $0x38] sm:$0xff]  ;;  %v5386_v49 = vld [vmem:[#allocation2 + $0xe0] sm:$0xff]  ;;  %2097 = vmatpush.msra.mxu3 %v5377_v47 }
 0x29e   :  { %1975 = vmatpush.msra.mxu1 %v5382_v63  ;;  %2078 = vmatpush.msra.mxu2 %v5384_v5 }
 0x29f   :  { %v1383_v51 = vadd.f32 %v1382_v50, %v1381_v12  ;;  %v5397_v50 = vld [vmem:[#allocation2 + $0x30] sm:$0xff]  ;;  %2098 = vmatpush.msra.mxu3 %v5386_v49  ;;  %4216 = vmatmul.msk.f32.vlgmr.msra.gmra.mxu2 %vm241_vm0, %v5349_v40 }
 0x2a0   :  { %4217 = vmatmul.msk.f32.vlgmr.msra.gmra.mxu3 %vm241_vm0, %v5349_v40  ;;  %1976 = vmatpush.msra.mxu1 %v5397_v50 }
 0x2a1   :  { %v1353_v6 = vpop.f32.mrf.mxu3  ;;  %2155 = vmatpush.msrb.mxu2 %v1482_v25  ;;  %2175 = vmatpush.msrb.mxu3 %v1486_v26 }
 0x2a2   :  { %v1384_v52 = vsel %vm241_vm0, %v1353_v6, 0.0  ;;  %v5322_v2 = vpop.f32.mrf.mxu2  ;;  %v5405_v6 = vld [vmem:[#allocation2 + $0x28] sm:$0xff] }
 0x2a3   :  { %v1385_v53 = vadd.f32 %v1384_v52, %v1383_v51  ;;  %1977 = vmatpush.msra.mxu1 %v5405_v6  ;;  %2156 = vmatpush.msrb.mxu2 %v1481_v37 }
 0x2a4   :  { %2176 = vmatpush.msrb.mxu3 %v1485_v27 }
 0x2a5   :  { %v1390_v56 = vadd.f32 %v4353_v22, %v1385_v53  ;;  %v5336_v22 = vpop.permute.xlu2 %1514  ;;  %2157 = vmatpush.msrb.mxu2 %v1480_v29 }
 0x2a6   :  { %v5390_v12 = vadd.f32 %v5322_v2, %v5336_v22  ;;  %v5410_v2 = vld [vmem:[#allocation2 + $0x20] sm:$0xff]  ;;  %2177 = vmatpush.msrb.mxu3 %v1484_v31 }
 0x2a7   :  { %4199 = vmatmul.msk.f32.gmra.mxu0 %vm241_vm0, %v1390_v56  ;;  %1978 = vmatpush.msra.mxu1 %v5410_v2  ;;  %v5413_v56 = vld [vmem:[#allocation2 + $0x98] sm:$0xff] }
 0x2a8   :  { %v1728_v51 = vrot.slane %v5390_v12, 1  ;;  %v1729_v52 = vrot.slane %v5390_v12, 2  ;;  %2035 = vmatpush.msrb.mxu0 %v5413_v56  ;;  %2158 = vmatpush.msrb.mxu2 %v5341_v36  ;;  %v1733_v18 = vrot.slane %v5390_v12, 6 }
 0x2a9   :  { %v5325_v30 = vpop.f32.mrf.mxu3  ;;  %2178 = vmatpush.msrb.mxu3 %v5343_v38 }
 0x2aa   :  { %v1588_v1 = vpop.f32.mrf.mxu2  ;;  %2235 = vmatpush.msra.mxu2 %v5355_v42  ;;  %v5459_v26 = vadd.f32 %v5325_v30, %v5336_v22  ;;  %v1748_v27 = vperm.slane %v1733_v18, 0  ;;  %v1731_v22 = vrot.slane %v5390_v12, 4 }
 0x2ab   :  { %v1589_v11 = vadd.f32 %v1588_v1, %v1563_v20  ;;  %v1743_v1 = vperm.slane %v1728_v51, 0  ;;  %2255 = vmatpush.msra.mxu3 %v5357_v24 }
 0x2ac   :  { %2236 = vmatpush.msra.mxu2 %v5366_v54  ;;  %v1746_v54 = vperm.slane %v1731_v22, 0 }
 0x2ad   :  { %v1628_v15 = vperm.slane %v1589_v11, 2  ;;  %v1621_v58 = vperm.slane %v1589_v11, 1  ;;  %v1614_v59 = vperm.slane %v1589_v11, 0  ;;  %v1635_v60 = vperm.slane %v1589_v11, 3  ;;  %2256 = vmatpush.msra.mxu3 %v5368_v44 }
 0x2ae   :  { %v1663_v48 = vperm.slane %v1589_v11, 7  ;;  %v1656_v61 = vperm.slane %v1589_v11, 6  ;;  %v1642_v62 = vperm.slane %v1589_v11, 4  ;;  %v1649_v4 = vperm.slane %v1589_v11, 5  ;;  %2237 = vmatpush.msra.mxu2 %v5375_v57 }
 0x2af   :  { %1633 = vperm.xlu0 %4333, %v1628_v15   ;;  %1626 = vperm.xlu2 %4337, %v1621_v58   ;;  %v1744_v11 = vperm.slane %v1729_v52, 0  ;;  %v5419_v15 = vld [vmem:[#allocation2 + $0x90] sm:$0xff] }
 0x2b0   :  { %1619 = vperm.xlu1 %4336, %v1614_v59   ;;  %4210 = vmatmul.msk.f32.vlgmr.msra.gmra.mxu0 %vm241_vm0, %v5349_v40  ;;  %v5421_v58 = vld [vmem:[#allocation2 + $0xb0] sm:$0xff] }
 0x2b1   :  { %v1611_v17 = vpop.f32.mrf.mxu3  ;;  %2036 = vmatpush.msrb.mxu0 %v5419_v15  ;;  %2257 = vmatpush.msra.mxu3 %v5377_v47 }
 0x2b2   :  { %v1612_v34 = vadd.f32 %v1611_v17, %v1563_v20  ;;  %v5415_v20 = vld [vmem:[#allocation2 + $0xb8] sm:$0xff]  ;;  %v1742_v17 = vperm.slane %v5390_v12, 0  ;;  %2238 = vmatpush.msra.mxu2 %v5384_v5 }
 0x2b3   :  { %2258 = vmatpush.msra.mxu3 %v5386_v49 }
 0x2b4   :  { %v1670_v3 = vperm.slane %v1612_v34, 0  ;;  %v1684_v7 = vperm.slane %v1612_v34, 2  ;;  %v1712_v9 = vperm.slane %v1612_v34, 6  ;;  %v1691_v10 = vperm.slane %v1612_v34, 3 }
 0x2b5   :  { %v1677_v13 = vperm.slane %v1612_v34, 1  ;;  %v1705_v14 = vperm.slane %v1612_v34, 5  ;;  %v1698_v55 = vperm.slane %v1612_v34, 4  ;;  %v1719_v16 = vperm.slane %v1612_v34, 7 }
 0x2b7   :  { %1640 = vperm.xlu0 %4333, %v1635_v60   ;;  %1668 = vperm.xlu2 %4337, %v1663_v48   ;;  %v1734_v60 = vrot.slane %v5390_v12, 7 }
 0x2b8   :  { %1661 = vperm.xlu1 %4336, %v1656_v61  }
 0x2bf   :  { %1647 = vperm.xlu0 %4333, %v1642_v62   ;;  %1675 = vperm.xlu2 %4337, %v1670_v3   ;;  %v5428_v62 = vld [vmem:[%s4796_s5 + $0x8] sm:$0xff]  ;;  %v5434_v3 = vld [vmem:[#allocation2 + $0x88] sm:$0xff]  ;;  %s5972_s5 = sld [smem:[#allocation14_spill]] }
 0x2c0   :  { %1654 = vperm.xlu1 %4336, %v1649_v4   ;;  %4220 = vmatmul.msk.f32.vlgmr.msrb.gmra.mxu2 %vm241_vm0, %v5428_v62  ;;  %v5436_v4 = vld [vmem:[#allocation2 + $0xa8] sm:$0xff] }
 0x2c1   :  { %4221 = vmatmul.msk.f32.vlgmr.msrb.gmra.mxu3 %vm241_vm0, %v5428_v62  ;;  %2037 = vmatpush.msrb.mxu0 %v5434_v3 }
 0x2c7   :  { %1689 = vperm.xlu0 %4333, %v1684_v7   ;;  %1717 = vperm.xlu2 %4337, %v1712_v9  }
 0x2c8   :  { %1696 = vperm.xlu1 %4336, %v1691_v10   ;;  %v1730_v10 = vrot.slane %v5390_v12, 3  ;;  %4224 = vmatmul.msk.f32.vlgmr.msra.gmra.mxu2 %vm241_vm0, %v5428_v62 }
 0x2c9   :  { %4225 = vmatmul.msk.f32.vlgmr.msra.gmra.mxu3 %vm241_vm0, %v5428_v62 }
 0x2ca   :  { %v1745_v25 = vperm.slane %v1730_v10, 0 }
 0x2cf   :  { %1682 = vperm.xlu0 %4333, %v1677_v13   ;;  %1710 = vperm.xlu2 %4337, %v1705_v14   ;;  %v5443_v13 = vld [vmem:[#allocation2 + $0x80] sm:$0xff] }
 0x2d0   :  { %1703 = vperm.xlu1 %4336, %v1698_v55   ;;  %v5445_v14 = vld [vmem:[#allocation2 + $0xa0] sm:$0xff]  ;;  %v1749_v55 = vperm.slane %v1734_v60, 0  ;;  %2038 = vmatpush.msrb.mxu0 %v5443_v13 }
 0x2d1   :  { %4214 = vmatmul.msk.f32.vlgmr.msrb.gmra.mxu0 %vm241_vm0, %v5349_v40 }
 0x2d2   :  { %2115 = vmatpush.msra.mxu0 %v5339_v35  ;;  %v1750_v35 = vperm.slane %v5459_v26, 0 }
 0x2d4   :  { %2116 = vmatpush.msra.mxu0 %v5353_v41 }
 0x2d6   :  { %2117 = vmatpush.msra.mxu0 %v5364_v43 }
 0x2d7   :  { %1724 = vperm.xlu0 %4333, %v1719_v16   ;;  %4339 = vset.pattern.permute.xlu2 %v4786_v0 }
 0x2d8   :  { %2118 = vmatpush.msra.mxu0 %v5373_v46 }
 0x2d9   :  { %4218 = vmatmul.msk.f32.vlgmr.msra.gmra.mxu0 %vm241_vm0, %v5428_v62 }
 0x2da   :  { %2195 = vmatpush.msrb.mxu0 %v5413_v56 }
 0x2dc   :  { %2196 = vmatpush.msrb.mxu0 %v5419_v15 }
 0x2de   :  { %2197 = vmatpush.msrb.mxu0 %v5434_v3 }
 0x2df   :  { %4338 = vset.pattern.permute.xlu0 %v4786_v0 }
 0x2e0   :  { %2198 = vmatpush.msrb.mxu0 %v5443_v13 }
 0x2e1   :  { %4222 = vmatmul.msk.f32.vlgmr.msrb.gmra.mxu0 %vm241_vm0, %v5428_v62 }
 0x309   :  { %v1627_v45 = vpop.permute.xlu2 %1626 }
 0x30a   :  { %v1775_v59 = vadd.f32 %v1743_v1, %v1627_v45  ;;  %v1740_v45 = vrot.slane %v5459_v26, 6  ;;  %v1736_v1 = vrot.slane %v5459_v26, 2 }
 0x30c   :  { %v1427_v32 = vpop.f32.mrf.mxu0  ;;  %v1756_v56 = vperm.slane %v1740_v45, 0 }
 0x30d   :  { %v1428_v33 = vadd.f32 %v5334_v28, %v1427_v32 }
 0x30f   :  { %v1433_v39 = vmax.f32 %v1428_v33, 0.0 }
 0x311   :  { %4200 = vmatmul.msk.f32.vlgmr.msrb.gmra.mxu1 %vm241_vm0, %v1433_v39  ;;  %v1669_v53 = vpop.permute.xlu2 %1668  ;;  %v1732_v39 = vrot.slane %v5390_v12, 5 }
 0x312   :  { %2055 = vmatpush.msrb.mxu1 %v5415_v20  ;;  %v1781_v21 = vadd.f32 %v1749_v55, %v1669_v53 }
 0x313   :  { %v1747_v41 = vperm.slane %v1732_v39, 0 }
 0x314   :  { %2056 = vmatpush.msrb.mxu1 %v5421_v58 }
 0x316   :  { %2057 = vmatpush.msrb.mxu1 %v5436_v4 }
 0x318   :  { %2058 = vmatpush.msrb.mxu1 %v5445_v14 }
 0x319   :  { %v1676_v23 = vpop.permute.xlu2 %1675 }
 0x31a   :  { %v1782_v24 = vadd.f32 %v1750_v35, %v1676_v23 }
 0x321   :  { %v1634_v48 = vpop.permute.xlu0 %1633  ;;  %v1718_v5 = vpop.permute.xlu2 %1717 }
 0x322   :  { %v1776_v61 = vadd.f32 %v1744_v11, %v1634_v48  ;;  %v1620_v34 = vpop.permute.xlu1 %1619 }
 0x323   :  { %v1774_v7 = vadd.f32 %v1742_v17, %v1620_v34  ;;  %v1752_v17 = vperm.slane %v1736_v1, 0  ;;  %v1739_v34 = vrot.slane %v5459_v26, 5 }
 0x324   :  { %4473 = vtanh.f32 %v1776_v61  ;;  %v1430_v9 = vpop.f32.mrf.mxu0 }
 0x325   :  { %4475 = vtanh.f32 %v1775_v59  ;;  %v1431_v16 = vadd.f32 %v5334_v28, %v1430_v9  ;;  %v1737_v59 = vrot.slane %v5459_v26, 3 }
 0x326   :  { %4477 = vtanh.f32 %v1774_v7 }
 0x327   :  { %v1434_v19 = vmax.f32 %v1431_v16, 0.0  ;;  %4479 = vtanh.f32 %v1781_v21  ;;  %v1753_v7 = vperm.slane %v1737_v59, 0 }
 0x329   :  { %v1641_v37 = vpop.permute.xlu0 %1640  ;;  %4201 = vmatmul.msk.f32.gmra.mxu1 %vm241_vm0, %v1434_v19  ;;  %v1711_v18 = vpop.permute.xlu2 %1710  ;;  %v1735_v19 = vrot.slane %v5459_v26, 1 }
 0x32a   :  { %v4474_v28 = vpop.eup %4473  ;;  %v1777_v29 = vadd.f32 %v1745_v25, %v1641_v37  ;;  %v1662_v31 = vpop.permute.xlu1 %1661  ;;  %v1738_v37 = vrot.slane %v5459_v26, 4 }
 0x32b   :  { %v4476_v32 = vpop.eup %4475  ;;  %v1810_v33 = vmul.f32 1.442695, %v4474_v28  ;;  %v1780_v36 = vadd.f32 %v1748_v27, %v1662_v31  ;;  %v1751_v31 = vperm.slane %v1735_v19, 0 }
 0x32c   :  { %v4478_v30 = vpop.eup %4477  ;;  %4481 = vtanh.f32 %v1777_v29  ;;  %v1808_v42 = vmul.f32 1.442695, %v4476_v32 }
 0x32d   :  { %4483 = vpow2.f32 %v1810_v33  ;;  %v1806_v38 = vmul.f32 1.442695, %v4478_v30  ;;  %v4480_v44 = vpop.eup %4479  ;;  %v1754_v33 = vperm.slane %v1738_v37, 0  ;;  %v1960_v19 = vpop.f32.mrf.mxu0 }
 0x32e   :  { %4485 = vtanh.f32 %v1780_v36  ;;  %v1820_v60 = vmul.f32 1.442695, %v4480_v44 }
 0x32f   :  { %4487 = vpow2.f32 %v1806_v38 }
 0x330   :  { %4489 = vpow2.f32 %v1808_v42 }
 0x331   :  { %v1648_v57 = vpop.permute.xlu0 %1647  ;;  %4211 = vmatmul.msk.f32.vlgmr.msra.gmra.mxu1 %vm241_vm0, %v5349_v40  ;;  %4491 = vtanh.f32 %v1782_v24 }
 0x332   :  { %v4482_v47 = vpop.eup %4481  ;;  %v1778_v43 = vadd.f32 %v1746_v54, %v1648_v57  ;;  %v1655_v49 = vpop.permute.xlu1 %1654  ;;  %2135 = vmatpush.msra.mxu1 %v5382_v63  ;;  %v1741_v54 = vrot.slane %v5459_v26, 7 }
 0x333   :  { %v5484_v46 = vpop.eup %4483  ;;  %v1812_v12 = vmul.f32 1.442695, %v4482_v47  ;;  %v1779_v51 = vadd.f32 %v1747_v41, %v1655_v49 }
 0x334   :  { %v4486_v52 = vpop.eup %4485  ;;  %4493 = vtanh.f32 %v1778_v43  ;;  %v1845_v53 = vsel %vm1838_vm2, %v5484_v46, 0.0  ;;  %2136 = vmatpush.msra.mxu1 %v5397_v50  ;;  %v1788_v50 = vadd.f32 %v1756_v56, %v1718_v5  ;;  %v1757_v5 = vperm.slane %v1741_v54, 0 }
 0x335   :  { %v5491_v63 = vpop.eup %4487  ;;  %4495 = vpow2.f32 %v1812_v12  ;;  %v1818_v11 = vmul.f32 1.442695, %v4486_v52  ;;  %1846 = vadd.xlane.f32.xlu1 %v1845_v53 }
 0x336   :  { %4497 = vtanh.f32 %v1779_v51  ;;  %v1839_v48 = vsel %vm1838_vm2, %v5491_v63, 0.0  ;;  %2137 = vmatpush.msra.mxu1 %v5405_v6  ;;  %v5498_v15 = vpop.eup %4489 }
 0x337   :  { %4499 = vpow2.f32 %v1818_v11  ;;  %1840 = vadd.xlane.f32.xlu0 %v1839_v48  ;;  %v4492_v61 = vpop.eup %4491  ;;  %v1842_v21 = vsel %vm1838_vm2, %v5498_v15, 0.0 }
 0x338   :  { %2138 = vmatpush.msra.mxu1 %v5410_v2  ;;  %4501 = vpow2.f32 %v1820_v60  ;;  %v1822_v27 = vmul.f32 1.442695, %v4492_v61 }
 0x339   :  { %v1690_v9 = vpop.permute.xlu0 %1689  ;;  %4215 = vmatmul.msk.f32.vlgmr.msrb.gmra.mxu1 %vm241_vm0, %v5349_v40  ;;  %4503 = vtanh.f32 %v1788_v50 }
 0x33a   :  { %v4494_v6 = vpop.eup %4493  ;;  %v1697_v3 = vpop.permute.xlu1 %1696  ;;  %v1784_v10 = vadd.f32 %v1752_v17, %v1690_v9  ;;  %2215 = vmatpush.msrb.mxu1 %v5415_v20  ;;  %v1755_v20 = vperm.slane %v1739_v34, 0 }
 0x33b   :  { %v5508_v2 = vpop.eup %4495  ;;  %v1814_v13 = vmul.f32 1.442695, %v4494_v6  ;;  %v1785_v55 = vadd.f32 %v1753_v7, %v1697_v3 }
 0x33c   :  { %v4498_v16 = vpop.eup %4497  ;;  %4505 = vtanh.f32 %v1784_v10  ;;  %v1848_v40 = vsel %vm1838_vm2, %v5508_v2, 0.0  ;;  %2216 = vmatpush.msrb.mxu1 %v5421_v58  ;;  %v1787_v29 = vadd.f32 %v1755_v20, %v1711_v18  ;;  %v4357_v18 = vld [vmem:[%s5972_s5 + $0x2] ss:$0 sm:$0xff] }
 0x33d   :  { %v5516_v23 = vpop.eup %4499  ;;  %4507 = vpow2.f32 %v1814_v13  ;;  %v1816_v25 = vmul.f32 1.442695, %v4498_v16  ;;  %1849 = vadd.xlane.f32.xlu2 %v1848_v40  ;;  %1843 = vadd.xlane.f32.xlu1 %v1842_v21  ;;  %v4356_v16 = vld [vmem:[%s5972_s5] ss:$0 sm:$0xff]  ;;  %v4358_v40 = vld [vmem:[%s5972_s5 + $0x3] ss:$0 sm:$0xff]  ;;  %v2000_v21 = vpop.f32.mrf.mxu2 }
 0x33e   :  { %4509 = vtanh.f32 %v1785_v55  ;;  %v1857_v28 = vsel %vm1838_vm2, %v5516_v23, 0.0  ;;  %2217 = vmatpush.msrb.mxu1 %v5436_v4  ;;  %v5522_v58 = vpop.eup %4501  ;;  %v2001_v20 = vadd.f32 %v4357_v18, %v2000_v21  ;;  %v1961_v37 = vadd.f32 %v4356_v16, %v1960_v19 }
 0x33f   :  { %4511 = vpow2.f32 %v1816_v25  ;;  %1858 = vadd.xlane.f32.xlu0 %v1857_v28  ;;  %v4504_v32 = vpop.eup %4503  ;;  %v1860_v24 = vsel %vm1838_vm2, %v5522_v58, 0.0  ;;  %v2020_v25 = vpop.f32.mrf.mxu3  ;;  %v4360_v28 = vld [vmem:[%s5972_s5 + $0x6] ss:$0 sm:$0xff] }
 0x340   :  { %2218 = vmatpush.msrb.mxu1 %v5445_v14  ;;  %4513 = vpow2.f32 %v1822_v27  ;;  %v1834_v41 = vmul.f32 1.442695, %v4504_v32  ;;  %v2021_v27 = vadd.f32 %v4358_v40, %v2020_v25  ;;  %2327 = vmatpush.msrb.mxu2 %v2001_v20 }
 0x341   :  { %v1683_v36 = vpop.permute.xlu0 %1682  ;;  %4219 = vmatmul.msk.f32.vlgmr.msra.gmra.mxu1 %vm241_vm0, %v5428_v62  ;;  %4515 = vtanh.f32 %v1787_v29  ;;  %2281 = vmatpush.msra.mxu0 %v1961_v37  ;;  %v5577_v29 = vld [vmem:[%s5972_s5 + $0x7] ss:$0 sm:$0xff] }
 0x342   :  { %v4506_v30 = vpop.eup %4505  ;;  %v1704_v22 = vpop.permute.xlu1 %1703  ;;  %v1783_v35 = vadd.f32 %v1751_v31, %v1683_v36  ;;  %2350 = vmatpush.msrb.mxu3 %v2021_v27 }
 0x343   :  { %v5527_v38 = vpop.eup %4507  ;;  %v1826_v4 = vmul.f32 1.442695, %v4506_v30  ;;  %v1786_v39 = vadd.f32 %v1754_v33, %v1704_v22  ;;  %v5583_v22 = vld [vmem:[%s5972_s5 + $0x4] ss:$0 sm:$0xff] }
 0x344   :  { %v4510_v42 = vpop.eup %4509  ;;  %4517 = vtanh.f32 %v1783_v35  ;;  %v1851_v14 = vsel %vm1838_vm2, %v5527_v38, 0.0 }
 0x345   :  { %v5534_v44 = vpop.eup %4511  ;;  %v1828_v45 = vmul.f32 1.442695, %v4510_v42  ;;  %4519 = vpow2.f32 %v1826_v4  ;;  %1852 = vadd.xlane.f32.xlu2 %v1851_v14  ;;  %1861 = vadd.xlane.f32.xlu1 %v1860_v24  ;;  %v2080_v31 = vpop.f32.mrf.mxu2  ;;  %v4359_v24 = vld [vmem:[%s5972_s5 + $0x1] ss:$0 sm:$0xff] }
 0x346   :  { %4521 = vtanh.f32 %v1786_v39  ;;  %v1854_v57 = vsel %vm1838_vm2, %v5534_v44, 0.0  ;;  %v5538_v47 = vpop.eup %4513  ;;  %v2081_v32 = vadd.f32 %v4360_v28, %v2080_v31 }
 0x347   :  { %4523 = vpow2.f32 %v1828_v45  ;;  %1855 = vadd.xlane.f32.xlu0 %v1854_v57  ;;  %v4516_v43 = vpop.eup %4515  ;;  %v1863_v56 = vsel %vm1838_vm2, %v5538_v47, 0.0  ;;  %v2100_v33 = vpop.f32.mrf.mxu3 }
 0x348   :  { %4525 = vpow2.f32 %v1834_v41  ;;  %v1832_v60 = vmul.f32 1.442695, %v4516_v43  ;;  %v2101_v30 = vadd.f32 %v5577_v29, %v2100_v33  ;;  %2419 = vmatpush.msra.mxu2 %v2081_v32 }
 0x349   :  { %v1725_v49 = vpop.permute.xlu0 %1724  ;;  %4223 = vmatmul.msk.f32.vlgmr.msrb.gmra.mxu1 %vm241_vm0, %v5428_v62 }
 0x34a   :  { %v4518_v26 = vpop.eup %4517  ;;  %v1789_v12 = vadd.f32 %v1757_v5, %v1725_v49  ;;  %2442 = vmatpush.msra.mxu3 %v2101_v30 }
 0x34b   :  { %v5542_v51 = vpop.eup %4519  ;;  %v1824_v52 = vmul.f32 1.442695, %v4518_v26 }
 0x34c   :  { %v4522_v53 = vpop.eup %4521  ;;  %4527 = vtanh.f32 %v1789_v12  ;;  %v1869_v1 = vsel %vm1838_vm2, %v5542_v51, 0.0 }
 0x34d   :  { %v5548_v11 = vpop.eup %4523  ;;  %v1830_v59 = vmul.f32 1.442695, %v4522_v53  ;;  %4529 = vpow2.f32 %v1824_v52  ;;  %1870 = vadd.xlane.f32.xlu2 %v1869_v1  ;;  %1864 = vadd.xlane.f32.xlu1 %v1863_v56  ;;  %v2160_v54 = vpop.f32.mrf.mxu2 }
 0x34e   :  { %v1872_v62 = vsel %vm1838_vm2, %v5548_v11, 0.0  ;;  %v5552_v48 = vpop.eup %4525  ;;  %v2040_v4 = vpop.f32.mrf.mxu0  ;;  %v2161_v43 = vadd.f32 %v4357_v18, %v2160_v54 }
 0x34f   :  { %4531 = vpow2.f32 %v1830_v59  ;;  %1873 = vadd.xlane.f32.xlu0 %v1872_v62  ;;  %v1881_v7 = vsel %vm1838_vm2, %v5552_v48, 0.0  ;;  %v2041_v39 = vadd.f32 %v5583_v22, %v2040_v4  ;;  %v4363_v59 = vld [vmem:[%s5972_s5 + $0x5] ss:$0 sm:$0xff]  ;;  %v2180_v62 = vpop.f32.mrf.mxu3 }
 0x350   :  { %4533 = vpow2.f32 %v1832_v60 }
 0x351   :  { %2373 = vmatpush.msrb.mxu0 %v2041_v39 }
 0x352   :  { %v4528_v50 = vpop.eup %4527 }
 0x353   :  { %v5554_v17 = vpop.eup %4529  ;;  %v1836_v61 = vmul.f32 1.442695, %v4528_v50 }
 0x354   :  { %v1866_v34 = vsel %vm1838_vm2, %v5554_v17, 0.0 }
 0x355   :  { %v5560_v9 = vpop.eup %4531  ;;  %4535 = vpow2.f32 %v1836_v61  ;;  %1867 = vadd.xlane.f32.xlu2 %v1866_v34  ;;  %1882 = vadd.xlane.f32.xlu1 %v1881_v7  ;;  %v2240_v60 = vpop.f32.mrf.mxu2 }
 0x356   :  { %v1875_v6 = vsel %vm1838_vm2, %v5560_v9, 0.0  ;;  %v5564_v3 = vpop.eup %4533  ;;  %v2120_v57 = vpop.f32.mrf.mxu0  ;;  %v2241_v18 = vadd.f32 %v4360_v28, %v2240_v60  ;;  %v2761_v60 = vld [vmem:[#allocation5 + $0x98] sm:$0xff] }
 0x357   :  { %1876 = vadd.xlane.f32.xlu0 %v1875_v6  ;;  %v1878_v55 = vsel %vm1838_vm2, %v5564_v3, 0.0  ;;  %v2121_v53 = vadd.f32 %v4356_v16, %v2120_v57 }
 0x35b   :  { %v5566_v10 = vpop.eup %4535 }
 0x35c   :  { %v1884_v13 = vsel %vm1838_vm2, %v5566_v10, 0.0 }
 0x35d   :  { %1885 = vadd.xlane.f32.xlu2 %v1884_v13  ;;  %1879 = vadd.xlane.f32.xlu1 %v1878_v55  ;;  %v2181_v13 = vadd.f32 %v4358_v40, %v2180_v62 }
 0x35e   :  { %v2200_v20 = vpop.f32.mrf.mxu0 }
 0x35f   :  { %v2201_v30 = vadd.f32 %v5583_v22, %v2200_v20 }
 0x38e   :  { %v5579_v36 = vpop.f32.mrf.mxu1 }
 0x3a6   :  { %v5585_v35 = vpop.f32.mrf.mxu1 }
 0x3a8   :  { %v1847_v42 = vpop.xlane.xlu1 %1846 }
 0x3a9   :  { %4537 = vrcp.f32 %v1847_v42 }
 0x3aa   :  { %v1841_v14 = vpop.xlane.xlu0 %1840 }
 0x3ab   :  { %4539 = vrcp.f32 %v1841_v14 }
 0x3ae   :  { %v1980_v45 = vpop.f32.mrf.mxu1 }
 0x3af   :  { %v4538_v41 = vpop.eup %4537  ;;  %v1981_v5 = vadd.f32 %v4359_v24, %v1980_v45 }
 0x3b0   :  { %v1905_v49 = vmul.f32 %v4538_v41, %v5484_v46  ;;  %v1844_v26 = vpop.xlane.xlu1 %1843  ;;  %v1850_v12 = vpop.xlane.xlu2 %1849 }
 0x3b1   :  { %v4540_v52 = vpop.eup %4539  ;;  %4541 = vrcp.f32 %v1844_v26  ;;  %2304 = vmatpush.msra.mxu1 %v1981_v5 }
 0x3b2   :  { %v1903_v1 = vmul.f32 %v4540_v52, %v5491_v63  ;;  %v1859_v56 = vpop.xlane.xlu0 %1858  ;;  %4543 = vrcp.f32 %v1850_v12  ;;  %4228 = vmatmul.msk.f32.vlgmr.msrb.gmra.mxu2 %vm563_vm1, %v1905_v49  ;;  %v2745_v12 = vld [vmem:[#allocation5 + $0x18] sm:$0xff] }
 0x3b3   :  { %4545 = vrcp.f32 %v1859_v56  ;;  %2511 = vmatpush.msrb.mxu2 %v2161_v43  ;;  %v2742_v56 = vld [vmem:[#allocation5] sm:$0xff] }
 0x3b4   :  { %4226 = vmatmul.msk.f32.vlgmr.msra.gmra.mxu0 %vm563_vm1, %v1903_v1 }
 0x3b5   :  { %2465 = vmatpush.msra.mxu0 %v2121_v53  ;;  %v2744_v53 = vld [vmem:[#allocation5 + $0x10] sm:$0xff] }
 0x3b6   :  { %v2060_v46 = vpop.f32.mrf.mxu1 }
 0x3b7   :  { %v4542_v50 = vpop.eup %4541  ;;  %v2061_v61 = vadd.f32 %v4363_v59, %v2060_v46  ;;  %v2749_v46 = vld [vmem:[#allocation5 + $0x38] sm:$0xff] }
 0x3b8   :  { %v4544_v34 = vpop.eup %4543  ;;  %v1904_v7 = vmul.f32 %v4542_v50, %v5498_v15  ;;  %v1862_v6 = vpop.xlane.xlu1 %1861  ;;  %v2748_v50 = vld [vmem:[#allocation5 + $0x30] sm:$0xff] }
 0x3b9   :  { %v1853_v63 = vpop.xlane.xlu2 %1852  ;;  %v4546_v55 = vpop.eup %4545  ;;  %v1906_v16 = vmul.f32 %v4544_v34, %v5508_v2  ;;  %4547 = vrcp.f32 %v1862_v6  ;;  %2396 = vmatpush.msrb.mxu1 %v2061_v61  ;;  %v2760_v61 = vld [vmem:[#allocation5 + $0x90] sm:$0xff]  ;;  %v2747_v34 = vld [vmem:[#allocation5 + $0x28] sm:$0xff]  ;;  %v2765_v6 = vld [vmem:[#allocation5 + $0xb8] sm:$0xff] }
 0x3ba   :  { %v1909_v21 = vmul.f32 %v4546_v55, %v5516_v23  ;;  %v1856_v19 = vpop.xlane.xlu0 %1855  ;;  %4549 = vrcp.f32 %v1853_v63  ;;  %4227 = vmatmul.msk.f32.vlgmr.msra.gmra.mxu1 %vm563_vm1, %v1904_v7  ;;  %v2260_v15 = vpop.f32.mrf.mxu3  ;;  %v2746_v7 = vld [vmem:[#allocation5 + $0x20] sm:$0xff]  ;;  %v2764_v63 = vld [vmem:[#allocation5 + $0xb0] sm:$0xff] }
 0x3bb   :  { %4551 = vrcp.f32 %v1856_v19  ;;  %4229 = vmatmul.msk.f32.vlgmr.msrb.gmra.mxu3 %vm563_vm1, %v1906_v16  ;;  %v2261_v31 = vadd.f32 %v5577_v29, %v2260_v15  ;;  %v2762_v55 = vld [vmem:[#allocation5 + $0xa0] sm:$0xff] }
 0x3bc   :  { %4232 = vmatmul.msk.f32.vlgmr.msra.gmra.mxu2 %vm563_vm1, %v1909_v21  ;;  %2534 = vmatpush.msrb.mxu3 %v2181_v13  ;;  %v2763_v13 = vld [vmem:[#allocation5 + $0xa8] sm:$0xff] }
 0x3bd   :  { %2603 = vmatpush.msra.mxu2 %v2241_v18 }
 0x3be   :  { %v2140_v40 = vpop.f32.mrf.mxu1 }
 0x3bf   :  { %v4548_v2 = vpop.eup %4547  ;;  %v2141_v25 = vadd.f32 %v4359_v24, %v2140_v40 }
 0x3c0   :  { %v4550_v37 = vpop.eup %4549  ;;  %v1910_v27 = vmul.f32 %v4548_v2, %v5522_v58  ;;  %v1865_v23 = vpop.xlane.xlu1 %1864  ;;  %v4355_v58 = vld [vmem:[%s5973_s29] ss:$0 sm:$0xff] }
 0x3c1   :  { %v1871_v28 = vpop.xlane.xlu2 %1870  ;;  %v4552_v32 = vpop.eup %4551  ;;  %v1907_v33 = vmul.f32 %v4550_v37, %v5527_v38  ;;  %4553 = vrcp.f32 %v1865_v23  ;;  %2488 = vmatpush.msra.mxu1 %v2141_v25  ;;  %v5612_v57 = vadd.f32 %v4355_v58, %v5579_v36  ;;  %v5616_v43 = vadd.f32 %v4355_v58, %v5585_v35 }
 0x3c2   :  { %v1908_v4 = vmul.f32 %v4552_v32, %v5534_v44  ;;  %v1874_v39 = vpop.xlane.xlu0 %1873  ;;  %4555 = vrcp.f32 %v1871_v28 }
 0x3c3   :  { %4557 = vrcp.f32 %v1874_v39  ;;  %4230 = vmatmul.msk.f32.vlgmr.msrb.gmra.mxu0 %vm563_vm1, %v1907_v33  ;;  %4233 = vmatmul.msk.f32.vlgmr.msra.gmra.mxu3 %vm563_vm1, %v1910_v27  ;;  %v2670_v39 = vld [vmem:[%s5975_s8 + $0x18] sm:$0xff] }
 0x3c4   :  { %4231 = vmatmul.msk.f32.vlgmr.msrb.gmra.mxu1 %vm563_vm1, %v1908_v4  ;;  %2626 = vmatpush.msra.mxu3 %v2261_v31 }
 0x3c5   :  { %2557 = vmatpush.msrb.mxu0 %v2201_v30 }
 0x3c6   :  { %v2220_v29 = vpop.f32.mrf.mxu1 }
 0x3c7   :  { %v4554_v38 = vpop.eup %4553  ;;  %v2221_v42 = vadd.f32 %v4363_v59, %v2220_v29 }
 0x3c8   :  { %v4556_v14 = vpop.eup %4555  ;;  %v1911_v22 = vmul.f32 %v4554_v38, %v5538_v47  ;;  %v1883_v24 = vpop.xlane.xlu1 %1882 }
 0x3c9   :  { %v1868_v44 = vpop.xlane.xlu2 %1867  ;;  %v4558_v54 = vpop.eup %4557  ;;  %v1913_v45 = vmul.f32 %v4556_v14, %v5542_v51  ;;  %4559 = vrcp.f32 %v1883_v24  ;;  %2580 = vmatpush.msrb.mxu1 %v2221_v42  ;;  %v4364_v42 = vld [vmem:[%s5976_s14] ss:$0 sm:$0xff]  ;;  %v2669_v24 = vld [vmem:[%s5975_s8 + $0x10] sm:$0xff] }
 0x3ca   :  { %v1914_v41 = vmul.f32 %v4558_v54, %v5548_v11  ;;  %v1877_v5 = vpop.xlane.xlu0 %1876  ;;  %4561 = vrcp.f32 %v1868_v44  ;;  %v2668_v44 = vld [vmem:[%s5975_s8 + $0x8] sm:$0xff] }
 0x3cb   :  { %4563 = vrcp.f32 %v1877_v5  ;;  %4234 = vmatmul.msk.f32.vlgmr.msra.gmra.mxu0 %vm563_vm1, %v1911_v22  ;;  %4236 = vmatmul.msk.f32.vlgmr.msrb.gmra.mxu2 %vm563_vm1, %v1913_v45 }
 0x3cc   :  { %4237 = vmatmul.msk.f32.vlgmr.msrb.gmra.mxu3 %vm563_vm1, %v1914_v41  ;;  %4244 = vmatpush.xpose.msk.msrb.mxu2 %vm241_vm0, %v5612_v57  ;;  %v2667_v41 = vld [vmem:[%s5975_s8] sm:$0xff] }
 0x3cd   :  { %4246 = vmatpush.xpose.msk.msrb.mxu3 %vm241_vm0, %v5616_v43  ;;  %2700 = vmatpush.msra.mxu0 %v2670_v39 }
 0x3cf   :  { %v4560_v47 = vpop.eup %4559  ;;  %2701 = vmatpush.msra.mxu0 %v2669_v24  ;;  %v2751_v24 = vld [vmem:[#allocation5 + $0x48] sm:$0xff] }
 0x3d0   :  { %v4562_v51 = vpop.eup %4561  ;;  %v1917_v11 = vmul.f32 %v4560_v47, %v5552_v48  ;;  %v1880_v36 = vpop.xlane.xlu1 %1879  ;;  %v2743_v48 = vld [vmem:[#allocation5 + $0x8] sm:$0xff] }
 0x3d1   :  { %v1886_v35 = vpop.xlane.xlu2 %1885  ;;  %v4564_v49 = vpop.eup %4563  ;;  %v1912_v26 = vmul.f32 %v4562_v51, %v5554_v17  ;;  %4565 = vrcp.f32 %v1880_v36  ;;  %2702 = vmatpush.msra.mxu0 %v2668_v44  ;;  %v2756_v44 = vld [vmem:[#allocation5 + $0x70] sm:$0xff] }
 0x3d2   :  { %v1915_v52 = vmul.f32 %v4564_v49, %v5560_v9  ;;  %4567 = vrcp.f32 %v1886_v35  ;;  %v2738_v9 = vld [vmem:[%s5974_s3] sm:$0xff] }
 0x3d3   :  { %4235 = vmatmul.msk.f32.vlgmr.msra.gmra.mxu1 %vm563_vm1, %v1912_v26  ;;  %4240 = vmatmul.msk.f32.vlgmr.msra.gmra.mxu2 %vm563_vm1, %v1917_v11 }
 0x3d4   :  { %4238 = vmatmul.msk.f32.vlgmr.msrb.gmra.mxu0 %vm563_vm1, %v1915_v52  ;;  %3229 = vmatpush.msra.mxu2 %v2745_v12 }
 0x3d5   :  { %2703 = vmatpush.msra.mxu0 %v2667_v41  ;;  %v2739_v41 = vld [vmem:[%s5983_s11] sm:$0xff] }
 0x3d6   :  { %3230 = vmatpush.msra.mxu2 %v2744_v53  ;;  %2785 = vperm.xlu2 %4339, %v2739_v41  }
 0x3d7   :  { %v4566_v1 = vpop.eup %4565 }
 0x3d8   :  { %v4568_v59 = vpop.eup %4567  ;;  %v1916_v17 = vmul.f32 %v4566_v1, %v5564_v3  ;;  %3231 = vmatpush.msra.mxu2 %v2743_v48  ;;  %v2759_v3 = vld [vmem:[#allocation5 + $0x88] sm:$0xff] }
 0x3d9   :  { %v1918_v62 = vmul.f32 %v4568_v59, %v5566_v10  ;;  %v2758_v10 = vld [vmem:[#allocation5 + $0x80] sm:$0xff] }
 0x3da   :  { %3232 = vmatpush.msra.mxu2 %v2742_v56 }
 0x3db   :  { %4239 = vmatmul.msk.f32.vlgmr.msrb.gmra.mxu1 %vm563_vm1, %v1916_v17  ;;  %4241 = vmatmul.msk.f32.vlgmr.msra.gmra.mxu3 %vm563_vm1, %v1918_v62 }
 0x3dc   :  { %4245 = vmatmul.msk.f32.vlgmr.msrb.gmra.mxu2 %vm241_vm0, %v2738_v9  ;;  %3249 = vmatpush.msra.mxu3 %v2749_v46 }
 0x3dd   :  { %3309 = vmatpush.msrb.mxu2 %v2761_v60 }
 0x3de   :  { %3250 = vmatpush.msra.mxu3 %v2748_v50  ;;  %4340 = vset.pattern.permute.xlu2 %v5012_v8 }
 0x3df   :  { %3310 = vmatpush.msrb.mxu2 %v2760_v61 }
 0x3e0   :  { %3251 = vmatpush.msra.mxu3 %v2747_v34 }
 0x3e1   :  { %3311 = vmatpush.msrb.mxu2 %v2759_v3 }
 0x3e2   :  { %3252 = vmatpush.msra.mxu3 %v2746_v7 }
 0x3e3   :  { %4247 = vmatmul.msk.f32.vlgmr.msrb.gmra.mxu3 %vm241_vm0, %v2738_v9  ;;  %3312 = vmatpush.msrb.mxu2 %v2758_v10 }
 0x3e4   :  { %4252 = vmatmul.msk.f32.vlgmr.msra.gmra.mxu2 %vm241_vm0, %v5612_v57  ;;  %3329 = vmatpush.msrb.mxu3 %v2765_v6 }
 0x3e5   :  { %3389 = vmatpush.msra.mxu2 %v2745_v12 }
 0x3e6   :  { %3330 = vmatpush.msrb.mxu3 %v2764_v63 }
 0x3e7   :  { %3390 = vmatpush.msra.mxu2 %v2744_v53 }
 0x3e8   :  { %3331 = vmatpush.msrb.mxu3 %v2763_v13 }
 0x3e9   :  { %3391 = vmatpush.msra.mxu2 %v2743_v48 }
 0x3ea   :  { %3332 = vmatpush.msrb.mxu3 %v2762_v55 }
 0x3eb   :  { %4253 = vmatmul.msk.f32.vlgmr.msra.gmra.mxu3 %vm241_vm0, %v5612_v57  ;;  %3392 = vmatpush.msra.mxu2 %v2742_v56 }
 0x3ec   :  { %4256 = vmatmul.msk.f32.vlgmr.msrb.gmra.mxu2 %vm241_vm0, %v5612_v57  ;;  %3409 = vmatpush.msra.mxu3 %v2749_v46 }
 0x3ed   :  { %3469 = vmatpush.msrb.mxu2 %v2761_v60 }
 0x3ee   :  { %3410 = vmatpush.msra.mxu3 %v2748_v50 }
 0x3ef   :  { %3470 = vmatpush.msrb.mxu2 %v2760_v61 }
 0x3f0   :  { %3411 = vmatpush.msra.mxu3 %v2747_v34 }
 0x3f1   :  { %3471 = vmatpush.msrb.mxu2 %v2759_v3 }
 0x3f2   :  { %3412 = vmatpush.msra.mxu3 %v2746_v7  ;;  %v5678_v7 = vld [vmem:[%s5977_s24] ss:$0 sm:$0xff] }
 0x3f3   :  { %4257 = vmatmul.msk.f32.vlgmr.msrb.gmra.mxu3 %vm241_vm0, %v5612_v57  ;;  %3472 = vmatpush.msrb.mxu2 %v2758_v10 }
 0x3f4   :  { %4260 = vmatmul.msk.f32.vlgmr.msra.gmra.mxu2 %vm241_vm0, %v5616_v43  ;;  %3489 = vmatpush.msrb.mxu3 %v2765_v6 }
 0x3f6   :  { %3490 = vmatpush.msrb.mxu3 %v2764_v63  ;;  %v2675_v63 = vld [vmem:[%s5978_s30 + $0x18] sm:$0xff] }
 0x3f7   :  { %2727 = vmatpush.msra.mxu1 %v2675_v63 }
 0x3f8   :  { %3491 = vmatpush.msrb.mxu3 %v2763_v13 }
 0x3fa   :  { %3492 = vmatpush.msrb.mxu3 %v2762_v55 }
 0x3fb   :  { %4261 = vmatmul.msk.f32.vlgmr.msra.gmra.mxu3 %vm241_vm0, %v5616_v43 }
 0x3fc   :  { %4264 = vmatmul.msk.f32.vlgmr.msrb.gmra.mxu2 %vm241_vm0, %v5616_v43 }
 0x403   :  { %4265 = vmatmul.msk.f32.vlgmr.msrb.gmra.mxu3 %vm241_vm0, %v5616_v43 }
 0x431   :  { %v2283_v16 = vpop.f32.mrf.mxu0 }
 0x432   :  { %v2632_v15 = vsel %vm2631_vm3, %v2283_v16, 0.0  ;;  %v5685_v16 = vld [vmem:[%s5977_s24 + $0x1] ss:$0 sm:$0xff] }
 0x435   :  { %v2329_v21 = vpop.f32.mrf.mxu2 }
 0x436   :  { %v2635_v20 = vsel %vm2631_vm3, %v2329_v21, 0.0 }
 0x437   :  { %v2306_v18 = vpop.f32.mrf.mxu1 }
 0x438   :  { %v2633_v19 = vsel %vm2631_vm3, %v2306_v18, 0.0  ;;  %v5689_v18 = vld [vmem:[%s5977_s24 + $0x4] ss:$0 sm:$0xff] }
 0x439   :  { %v2634_v40 = vadd.f32 %v2633_v19, %v2632_v15 }
 0x43b   :  { %v2636_v25 = vadd.f32 %v2635_v20, %v2634_v40  ;;  %v5694_v20 = vld [vmem:[%s5977_s24 + $0x5] ss:$0 sm:$0xff] }
 0x43e   :  { %v2352_v2 = vpop.f32.mrf.mxu3 }
 0x43f   :  { %v2637_v37 = vsel %vm2631_vm3, %v2352_v2, 0.0  ;;  %v2421_v32 = vpop.f32.mrf.mxu2 }
 0x440   :  { %v2638_v27 = vadd.f32 %v2637_v37, %v2636_v25  ;;  %v2375_v23 = vpop.f32.mrf.mxu0  ;;  %v2643_v58 = vsel %vm2631_vm3, %v2421_v32, 0.0  ;;  %v2674_v37 = vld [vmem:[%s5978_s30 + $0x10] sm:$0xff] }
 0x441   :  { %v2639_v28 = vsel %vm2631_vm3, %v2375_v23, 0.0  ;;  %v2398_v31 = vpop.f32.mrf.mxu1  ;;  %2728 = vmatpush.msra.mxu1 %v2674_v37  ;;  %v2672_v23 = vld [vmem:[%s5978_s30] sm:$0xff] }
 0x442   :  { %v2640_v33 = vadd.f32 %v2639_v28, %v2638_v27  ;;  %v2641_v30 = vsel %vm2631_vm3, %v2398_v31, 0.0  ;;  %v2673_v27 = vld [vmem:[%s5978_s30 + $0x8] sm:$0xff]  ;;  %v4369_v28 = vld [vmem:[%s5979_s6] ss:$0 sm:$0xff] }
 0x443   :  { %2729 = vmatpush.msra.mxu1 %v2673_v27 }
 0x444   :  { %v2642_v4 = vadd.f32 %v2641_v30, %v2640_v33  ;;  %v2741_v30 = vld [vmem:[%s5980_s12] sm:$0xff] }
 0x445   :  { %2730 = vmatpush.msra.mxu1 %v2672_v23  ;;  %2839 = vperm.xlu0 %4338, %v2741_v30  }
 0x446   :  { %v2444_v29 = vpop.f32.mrf.mxu3  ;;  %v2644_v38 = vadd.f32 %v2643_v58, %v2642_v4  ;;  %v4370_v4 = vld [vmem:[%s5981_s20] ss:$0 sm:$0xff] }
 0x447   :  { %v2645_v14 = vsel %vm2631_vm3, %v2444_v29, 0.0  ;;  %v2753_v29 = vld [vmem:[#allocation5 + $0x58] sm:$0xff] }
 0x448   :  { %v2646_v22 = vadd.f32 %v2645_v14, %v2644_v38  ;;  %v2467_v45 = vpop.f32.mrf.mxu0  ;;  %v2757_v14 = vld [vmem:[#allocation5 + $0x78] sm:$0xff] }
 0x449   :  { %v2647_v51 = vsel %vm2631_vm3, %v2467_v45, 0.0  ;;  %v2755_v45 = vld [vmem:[#allocation5 + $0x68] sm:$0xff] }
 0x44a   :  { %v2665_v54 = vadd.f32 %v4364_v42, %v2646_v22  ;;  %v2752_v22 = vld [vmem:[#allocation5 + $0x50] sm:$0xff] }
 0x44c   :  { %2682 = vst [vmem:[#allocation1] ss:$2 sm:$0xff] %v2665_v54  ;;  %v2750_v54 = vld [vmem:[#allocation5 + $0x40] sm:$0xff] }
 0x44d   :  { %4341 = vset.pattern.permute.xlu0 %v5012_v8 }
 0x44e   :  { %v2513_v5 = vpop.f32.mrf.mxu2 }
 0x44f   :  { %v2536_v36 = vpop.f32.mrf.mxu3  ;;  %v2650_v49 = vsel %vm2631_vm3, %v2513_v5, 0.0  ;;  %v2769_v5 = vld [vmem:[#allocation5 + $0xd8] sm:$0xff] }
 0x450   :  { %v2490_v47 = vpop.f32.mrf.mxu1  ;;  %v2652_v52 = vsel %vm2631_vm3, %v2536_v36, 0.0  ;;  %v2767_v36 = vld [vmem:[#allocation5 + $0xc8] sm:$0xff] }
 0x451   :  { %v2648_v11 = vsel %vm2631_vm3, %v2490_v47, 0.0  ;;  %v2559_v12 = vpop.f32.mrf.mxu0  ;;  %v2754_v47 = vld [vmem:[#allocation5 + $0x60] sm:$0xff] }
 0x452   :  { %v2649_v35 = vadd.f32 %v2648_v11, %v2647_v51  ;;  %v2654_v1 = vsel %vm2631_vm3, %v2559_v12, 0.0  ;;  %v2773_v51 = vld [vmem:[#allocation5 + $0xf8] sm:$0xff]  ;;  %v2768_v11 = vld [vmem:[#allocation5 + $0xd0] sm:$0xff]  ;;  %v2770_v12 = vld [vmem:[#allocation5 + $0xe0] sm:$0xff] }
 0x454   :  { %v2651_v26 = vadd.f32 %v2650_v49, %v2649_v35  ;;  %v2772_v35 = vld [vmem:[#allocation5 + $0xf0] sm:$0xff]  ;;  %v2766_v49 = vld [vmem:[#allocation5 + $0xc0] sm:$0xff] }
 0x456   :  { %v2653_v53 = vadd.f32 %v2652_v52, %v2651_v26  ;;  %v2605_v48 = vpop.f32.mrf.mxu2  ;;  %v2771_v26 = vld [vmem:[#allocation5 + $0xe8] sm:$0xff] }
 0x457   :  { %v2658_v9 = vsel %vm2631_vm3, %v2605_v48, 0.0 }
 0x458   :  { %v2655_v56 = vadd.f32 %v2654_v1, %v2653_v53  ;;  %v2582_v59 = vpop.f32.mrf.mxu1 }
 0x459   :  { %v2656_v17 = vsel %vm2631_vm3, %v2582_v59, 0.0 }
 0x45a   :  { %v2657_v62 = vadd.f32 %v2656_v17, %v2655_v56  ;;  %v5735_v17 = vld [vmem:[%s5977_s24 + $0x2] ss:$0 sm:$0xff] }
 0x45c   :  { %v2659_v60 = vadd.f32 %v2658_v9, %v2657_v62  ;;  %v5738_v62 = vld [vmem:[%s5977_s24 + $0x3] ss:$0 sm:$0xff] }
 0x45e   :  { %v2628_v46 = vpop.f32.mrf.mxu3 }
 0x45f   :  { %v2660_v50 = vsel %vm2631_vm3, %v2628_v46, 0.0  ;;  %v5675_v61 = vpop.f32.mrf.mxu2 }
 0x460   :  { %v2661_v34 = vadd.f32 %v2660_v50, %v2659_v60 }
 0x462   :  { %v2666_v3 = vadd.f32 %v4364_v42, %v2661_v34  ;;  %v2740_v42 = vld [vmem:[%s5982_s7] sm:$0xff] }
 0x464   :  { %2684 = vst [vmem:[#allocation1 + $0x1] ss:$2 sm:$0xff] %v2666_v3 }
 0x466   :  { %v5680_v10 = vpop.f32.mrf.mxu3 }
 0x467   :  { %v3234_v6 = vpop.f32.mrf.mxu2 }
 0x468   :  { %v3235_v13 = vadd.f32 %v5678_v7, %v3234_v6 }
 0x46a   :  { %3555 = vmatpush.msra.mxu2 %v3235_v13  ;;  %v5743_v13 = vld [vmem:[%s5977_s24 + $0x6] ss:$0 sm:$0xff] }
 0x46b   :  { %v2685_v55 = vld.sshfl [vmem:[#allocation1] sm:$0xff pattern:$0x75316420] }
 0x46c   :  { %4242 = vmatmul.msk.f32.vlgmr.msra.gmra.mxu0 %vm241_vm0, %v2685_v55  ;;  %v5746_v55 = vld [vmem:[%s5977_s24 + $0x7] ss:$0 sm:$0xff] }
 0x46e   :  { %v3254_v21 = vpop.f32.mrf.mxu3 }
 0x46f   :  { %v3255_v19 = vadd.f32 %v5685_v16, %v3254_v21  ;;  %v3314_v15 = vpop.f32.mrf.mxu2 }
 0x470   :  { %v3315_v40 = vadd.f32 %v5689_v18, %v3314_v15 }
 0x471   :  { %3578 = vmatpush.msra.mxu3 %v3255_v19 }
 0x472   :  { %3647 = vmatpush.msrb.mxu2 %v3315_v40 }
 0x476   :  { %v3334_v2 = vpop.f32.mrf.mxu3 }
 0x477   :  { %v3335_v25 = vadd.f32 %v5694_v20, %v3334_v2 }
 0x479   :  { %3670 = vmatpush.msrb.mxu3 %v3335_v25 }
 0x4b7   :  { %v2840_v8 = vpop.permute.xlu0 %2839 }
 0x4e9   :  { %v2705_v31 = vpop.f32.mrf.mxu0 }
 0x4ea   :  { %v2706_v32 = vadd.f32 %v4369_v28, %v2705_v31 }
 0x4ec   :  { %v2708_v33 = vmax.f32 %v2706_v32, 0.0 }
 0x4ee   :  { %4243 = vmatmul.msk.f32.vlgmr.msra.gmra.mxu1 %vm241_vm0, %v2708_v33 }
 0x56b   :  { %v2732_v39 = vpop.f32.mrf.mxu1 }
 0x56c   :  { %v5705_v58 = vadd.f32 %v4370_v4, %v2732_v39  ;;  %v2786_v4 = vpop.permute.xlu2 %2785 }
 0x56d   :  { %v5754_v39 = vadd.f32 %v5675_v61, %v2786_v4 }
 0x56e   :  { %v2736_v38 = vrot.slane %v5705_v58, 4  ;;  %4248 = vmatpush.xpose.msk.msrb.mxu0 %vm241_vm0, %v5705_v58 }
 0x56f   :  { %v3004_v41 = vrot.slane %v5754_v39, 2 }
 0x570   :  { %4250 = vmatpush.xpose.msk.msrb.mxu1 %vm241_vm0, %v2736_v38 }
 0x571   :  { %4249 = vmatmul.msk.f32.vlgmr.msrb.gmra.mxu0 %vm241_vm0, %v2740_v42  ;;  %v3019_v61 = vperm.slane %v3004_v41, 0 }
 0x572   :  { %3269 = vmatpush.msra.mxu0 %v2753_v29 }
 0x573   :  { %4251 = vmatmul.msk.f32.vlgmr.msrb.gmra.mxu1 %vm241_vm0, %v2740_v42 }
 0x574   :  { %3289 = vmatpush.msra.mxu1 %v2757_v14  ;;  %3270 = vmatpush.msra.mxu0 %v2752_v22 }
 0x576   :  { %3271 = vmatpush.msra.mxu0 %v2751_v24  ;;  %3290 = vmatpush.msra.mxu1 %v2756_v44 }
 0x578   :  { %3272 = vmatpush.msra.mxu0 %v2750_v54  ;;  %3291 = vmatpush.msra.mxu1 %v2755_v45 }
 0x579   :  { %4254 = vmatmul.msk.f32.vlgmr.msra.gmra.mxu0 %vm241_vm0, %v5612_v57 }
 0x57a   :  { %3349 = vmatpush.msrb.mxu0 %v2769_v5  ;;  %3292 = vmatpush.msra.mxu1 %v2754_v47 }
 0x57b   :  { %4255 = vmatmul.msk.f32.vlgmr.msra.gmra.mxu1 %vm241_vm0, %v5612_v57 }
 0x57c   :  { %3369 = vmatpush.msrb.mxu1 %v2773_v51  ;;  %3350 = vmatpush.msrb.mxu0 %v2768_v11 }
 0x57e   :  { %3351 = vmatpush.msrb.mxu0 %v2767_v36  ;;  %3370 = vmatpush.msrb.mxu1 %v2772_v35 }
 0x580   :  { %3352 = vmatpush.msrb.mxu0 %v2766_v49  ;;  %3371 = vmatpush.msrb.mxu1 %v2771_v26 }
 0x581   :  { %4258 = vmatmul.msk.f32.vlgmr.msrb.gmra.mxu0 %vm241_vm0, %v5612_v57 }
 0x582   :  { %3429 = vmatpush.msra.mxu0 %v2753_v29  ;;  %3372 = vmatpush.msrb.mxu1 %v2770_v12  ;;  %v3003_v29 = vrot.slane %v5754_v39, 1 }
 0x583   :  { %4259 = vmatmul.msk.f32.vlgmr.msrb.gmra.mxu1 %vm241_vm0, %v5612_v57 }
 0x584   :  { %3449 = vmatpush.msra.mxu1 %v2757_v14  ;;  %3430 = vmatpush.msra.mxu0 %v2752_v22  ;;  %v3018_v42 = vperm.slane %v3003_v29, 0 }
 0x586   :  { %3431 = vmatpush.msra.mxu0 %v2751_v24  ;;  %3450 = vmatpush.msra.mxu1 %v2756_v44 }
 0x588   :  { %3432 = vmatpush.msra.mxu0 %v2750_v54  ;;  %3451 = vmatpush.msra.mxu1 %v2755_v45 }
 0x589   :  { %4262 = vmatmul.msk.f32.vlgmr.msra.gmra.mxu0 %vm241_vm0, %v5616_v43 }
 0x58a   :  { %3509 = vmatpush.msrb.mxu0 %v2769_v5  ;;  %3452 = vmatpush.msra.mxu1 %v2754_v47  ;;  %v5763_v47 = vadd.f32 %v5680_v10, %v2786_v4 }
 0x58b   :  { %4263 = vmatmul.msk.f32.vlgmr.msra.gmra.mxu1 %vm241_vm0, %v5616_v43 }
 0x58c   :  { %3529 = vmatpush.msrb.mxu1 %v2773_v51  ;;  %3510 = vmatpush.msrb.mxu0 %v2768_v11  ;;  %v3017_v51 = vperm.slane %v5754_v39, 0  ;;  %v3015_v41 = vrot.slane %v5763_v47, 6 }
 0x58e   :  { %3511 = vmatpush.msrb.mxu0 %v2767_v36  ;;  %3530 = vmatpush.msrb.mxu1 %v2772_v35  ;;  %v3005_v35 = vrot.slane %v5754_v39, 3 }
 0x590   :  { %3512 = vmatpush.msrb.mxu0 %v2766_v49  ;;  %3531 = vmatpush.msrb.mxu1 %v2771_v26  ;;  %v3025_v26 = vperm.slane %v5763_v47, 0 }
 0x591   :  { %4266 = vmatmul.msk.f32.vlgmr.msrb.gmra.mxu0 %vm241_vm0, %v5616_v43 }
 0x592   :  { %3532 = vmatpush.msrb.mxu1 %v2770_v12  ;;  %v3006_v12 = vrot.slane %v5754_v39, 4 }
 0x593   :  { %4267 = vmatmul.msk.f32.vlgmr.msrb.gmra.mxu1 %vm241_vm0, %v5616_v43 }
 0x594   :  { %v3021_v10 = vperm.slane %v3006_v12, 0  ;;  %v3031_v12 = vperm.slane %v3015_v41, 0 }
 0x5ee   :  { %v2864_v52 = vpop.f32.mrf.mxu0 }
 0x5ef   :  { %v2865_v53 = vadd.f32 %v2864_v52, %v2840_v8  ;;  %v3020_v52 = vperm.slane %v3005_v35, 0 }
 0x5f0   :  { %v2886_v48 = vpop.f32.mrf.mxu1 }
 0x5f1   :  { %v2910_v1 = vperm.slane %v2865_v53, 3  ;;  %v2896_v56 = vperm.slane %v2865_v53, 1  ;;  %v2889_v59 = vperm.slane %v2865_v53, 0  ;;  %v2887_v9 = vadd.f32 %v2886_v48, %v2840_v8 }
 0x5f2   :  { %v2903_v3 = vperm.slane %v2865_v53, 2  ;;  %v2917_v6 = vperm.slane %v2865_v53, 4  ;;  %v2924_v25 = vperm.slane %v2865_v53, 5  ;;  %v2931_v23 = vperm.slane %v2865_v53, 6 }
 0x5f3   :  { %2915 = vperm.xlu0 %4341, %v2910_v1   ;;  %2901 = vperm.xlu2 %4340, %v2896_v56   ;;  %v2973_v63 = vperm.slane %v2887_v9, 4  ;;  %v2945_v2 = vperm.slane %v2887_v9, 0  ;;  %v2966_v37 = vperm.slane %v2887_v9, 3  ;;  %v2952_v27 = vperm.slane %v2887_v9, 1 }
 0x5f4   :  { %2894 = vperm.xlu1 %4336, %v2889_v59   ;;  %v2959_v28 = vperm.slane %v2887_v9, 2  ;;  %v2938_v31 = vperm.slane %v2865_v53, 7  ;;  %v2987_v32 = vperm.slane %v2887_v9, 6  ;;  %v2980_v33 = vperm.slane %v2887_v9, 5 }
 0x5f5   :  { %v2994_v30 = vperm.slane %v2887_v9, 7  ;;  %v3010_v59 = vrot.slane %v5763_v47, 1 }
 0x5f6   :  { %v3274_v46 = vpop.f32.mrf.mxu0 }
 0x5f7   :  { %v3275_v60 = vadd.f32 %v5735_v17, %v3274_v46 }
 0x5f8   :  { %v3294_v50 = vpop.f32.mrf.mxu1 }
 0x5f9   :  { %v3295_v34 = vadd.f32 %v5738_v62, %v3294_v50  ;;  %3601 = vmatpush.msra.mxu0 %v3275_v60 }
 0x5fb   :  { %2908 = vperm.xlu2 %4340, %v2903_v3   ;;  %3624 = vmatpush.msra.mxu1 %v3295_v34  ;;  %v3007_v34 = vrot.slane %v5754_v39, 5  ;;  %v3026_v3 = vperm.slane %v3010_v59, 0 }
 0x5fc   :  { %2922 = vperm.xlu1 %4336, %v2917_v6   ;;  %2978 = vperm.xlu0 %4341, %v2973_v63  }
 0x5fe   :  { %v3354_v21 = vpop.f32.mrf.mxu0 }
 0x5ff   :  { %v3355_v19 = vadd.f32 %v5743_v13, %v3354_v21  ;;  %v3011_v21 = vrot.slane %v5763_v47, 2 }
 0x600   :  { %v3374_v15 = vpop.f32.mrf.mxu1 }
 0x601   :  { %v3375_v40 = vadd.f32 %v5746_v55, %v3374_v15  ;;  %3693 = vmatpush.msrb.mxu0 %v3355_v19  ;;  %v3022_v19 = vperm.slane %v3007_v34, 0 }
 0x603   :  { %3716 = vmatpush.msrb.mxu1 %v3375_v40  ;;  %2950 = vperm.xlu2 %4340, %v2945_v2  }
 0x604   :  { %2929 = vperm.xlu1 %4336, %v2924_v25   ;;  %2971 = vperm.xlu0 %4341, %v2966_v37   ;;  %v3013_v25 = vrot.slane %v5763_v47, 4 }
 0x60b   :  { %2957 = vperm.xlu2 %4340, %v2952_v27  }
 0x60c   :  { %2936 = vperm.xlu1 %4336, %v2931_v23   ;;  %4344 = vset.pattern.permute.xlu0 %v4786_v0 }
 0x613   :  { %2964 = vperm.xlu2 %4340, %v2959_v28  }
 0x614   :  { %2943 = vperm.xlu1 %4336, %v2938_v31  }
 0x61b   :  { %2992 = vperm.xlu2 %4340, %v2987_v32  }
 0x61c   :  { %2985 = vperm.xlu1 %4336, %v2980_v33   ;;  %v3027_v33 = vperm.slane %v3011_v21, 0  ;;  %v3014_v21 = vrot.slane %v5763_v47, 5 }
 0x623   :  { %4342 = vset.pattern.permute.xlu2 %v4786_v0 }
 0x624   :  { %2999 = vperm.xlu1 %4336, %v2994_v30   ;;  %v3008_v30 = vrot.slane %v5754_v39, 6 }
 0x62c   :  { %4343 = vset.pattern.permute.xlu1 %v4786_v0 }
 0x64d   :  { %v2902_v14 = vpop.permute.xlu2 %2901 }
 0x64e   :  { %v3050_v22 = vadd.f32 %v3018_v42, %v2902_v14  ;;  %v3029_v42 = vperm.slane %v3013_v25, 0 }
 0x650   :  { %4569 = vtanh.f32 %v3050_v22 }
 0x655   :  { %v2909_v54 = vpop.permute.xlu2 %2908 }
 0x656   :  { %v4570_v24 = vpop.eup %4569  ;;  %v3051_v36 = vadd.f32 %v3019_v61, %v2909_v54 }
 0x657   :  { %v3083_v44 = vmul.f32 1.442695, %v4570_v24 }
 0x659   :  { %4571 = vpow2.f32 %v3083_v44  ;;  %v3023_v44 = vperm.slane %v3008_v30, 0 }
 0x65d   :  { %v2951_v5 = vpop.permute.xlu2 %2950 }
 0x65e   :  { %v3057_v53 = vadd.f32 %v3025_v26, %v2951_v5  ;;  %v3009_v26 = vrot.slane %v5754_v39, 7 }
 0x65f   :  { %v5757_v45 = vpop.eup %4571 }
 0x660   :  { %v3116_v0 = vsel %vm1838_vm2, %v5757_v45, 0.0 }
 0x661   :  { %3117 = vadd.xlane.f32.xlu2 %v3116_v0 }
 0x665   :  { %v2916_v8 = vpop.permute.xlu0 %2915  ;;  %v2958_v1 = vpop.permute.xlu2 %2957 }
 0x666   :  { %v2895_v11 = vpop.permute.xlu1 %2894  ;;  %v3052_v48 = vadd.f32 %v3020_v52, %v2916_v8  ;;  %v3058_v63 = vadd.f32 %v3026_v3, %v2958_v1 }
 0x667   :  { %v3049_v49 = vadd.f32 %v3017_v51, %v2895_v11  ;;  %v3012_v11 = vrot.slane %v5763_v47, 3 }
 0x669   :  { %4573 = vtanh.f32 %v3049_v49 }
 0x66a   :  { %4575 = vtanh.f32 %v3051_v36 }
 0x66b   :  { %4577 = vtanh.f32 %v3057_v53 }
 0x66c   :  { %4579 = vtanh.f32 %v3052_v48 }
 0x66d   :  { %v2965_v37 = vpop.permute.xlu2 %2964 }
 0x66e   :  { %v2923_v56 = vpop.permute.xlu1 %2922  ;;  %v2979_v32 = vpop.permute.xlu0 %2978  ;;  %v3059_v14 = vadd.f32 %v3027_v33, %v2965_v37 }
 0x66f   :  { %v3053_v9 = vadd.f32 %v3021_v10, %v2923_v56  ;;  %v4574_v46 = vpop.eup %4573  ;;  %v3061_v24 = vadd.f32 %v3029_v42, %v2979_v32  ;;  %v3028_v10 = vperm.slane %v3012_v11, 0  ;;  %v3016_v42 = vrot.slane %v5763_v47, 7 }
 0x670   :  { %v4576_v60 = vpop.eup %4575  ;;  %v3081_v50 = vmul.f32 1.442695, %v4574_v46 }
 0x671   :  { %4581 = vtanh.f32 %v3053_v9  ;;  %v3085_v6 = vmul.f32 1.442695, %v4576_v60  ;;  %v4578_v15 = vpop.eup %4577  ;;  %v3024_v9 = vperm.slane %v3009_v26, 0 }
 0x672   :  { %4583 = vpow2.f32 %v3081_v50  ;;  %v4580_v2 = vpop.eup %4579  ;;  %v3097_v4 = vmul.f32 1.442695, %v4578_v15 }
 0x673   :  { %4585 = vpow2.f32 %v3085_v6  ;;  %v3087_v22 = vmul.f32 1.442695, %v4580_v2 }
 0x674   :  { %4587 = vtanh.f32 %v3058_v63 }
 0x675   :  { %v2993_v49 = vpop.permute.xlu2 %2992 }
 0x676   :  { %v2930_v40 = vpop.permute.xlu1 %2929  ;;  %v2972_v48 = vpop.permute.xlu0 %2971  ;;  %v3063_v56 = vadd.f32 %v3031_v12, %v2993_v49 }
 0x677   :  { %v3054_v27 = vadd.f32 %v3022_v19, %v2930_v40  ;;  %v4582_v23 = vpop.eup %4581  ;;  %v3060_v46 = vadd.f32 %v3028_v10, %v2972_v48 }
 0x678   :  { %v5773_v28 = vpop.eup %4583  ;;  %v3089_v31 = vmul.f32 1.442695, %v4582_v23 }
 0x679   :  { %4589 = vtanh.f32 %v3054_v27  ;;  %v3113_v29 = vsel %vm1838_vm2, %v5773_v28, 0.0  ;;  %v5778_v54 = vpop.eup %4585  ;;  %v3030_v27 = vperm.slane %v3014_v21, 0 }
 0x67a   :  { %4591 = vpow2.f32 %v3089_v31  ;;  %3114 = vadd.xlane.f32.xlu0 %v3113_v29  ;;  %v4588_v61 = vpop.eup %4587  ;;  %v3119_v52 = vsel %vm1838_vm2, %v5778_v54, 0.0 }
 0x67b   :  { %4593 = vpow2.f32 %v3097_v4  ;;  %v3099_v53 = vmul.f32 1.442695, %v4588_v61 }
 0x67c   :  { %4595 = vtanh.f32 %v3059_v14 }
 0x67d   :  { %4597 = vpow2.f32 %v3087_v22 }
 0x67e   :  { %v2937_v0 = vpop.permute.xlu1 %2936  ;;  %4599 = vtanh.f32 %v3061_v24 }
 0x67f   :  { %v3055_v5 = vadd.f32 %v3023_v44, %v2937_v0  ;;  %v4590_v51 = vpop.eup %4589  ;;  %v3032_v0 = vperm.slane %v3016_v42, 0 }
 0x680   :  { %v5782_v36 = vpop.eup %4591  ;;  %v3091_v35 = vmul.f32 1.442695, %v4590_v51 }
 0x681   :  { %4601 = vtanh.f32 %v3055_v5  ;;  %v3125_v8 = vsel %vm1838_vm2, %v5782_v36, 0.0  ;;  %v5789_v1 = vpop.eup %4593 }
 0x682   :  { %4603 = vpow2.f32 %v3091_v35  ;;  %3126 = vadd.xlane.f32.xlu1 %v3125_v8  ;;  %3120 = vadd.xlane.f32.xlu0 %v3119_v52  ;;  %v4596_v59 = vpop.eup %4595  ;;  %v3137_v2 = vsel %vm1838_vm2, %v5789_v1, 0.0 }
 0x683   :  { %v5791_v39 = vpop.eup %4597  ;;  %4605 = vpow2.f32 %v3099_v53  ;;  %v3101_v40 = vmul.f32 1.442695, %v4596_v59 }
 0x684   :  { %v4600_v50 = vpop.eup %4599  ;;  %4607 = vtanh.f32 %v3063_v56  ;;  %v3122_v19 = vsel %vm1838_vm2, %v5791_v39, 0.0 }
 0x685   :  { %v3105_v25 = vmul.f32 1.442695, %v4600_v50  ;;  %v3940_v50 = vld [vmem:[%s5984_s15] sm:$0x3] }
 0x686   :  { %v2944_v60 = vpop.permute.xlu1 %2943 }
 0x687   :  { %v3056_v34 = vadd.f32 %v3024_v9, %v2944_v60  ;;  %v4602_v3 = vpop.eup %4601 }
 0x688   :  { %v5793_v6 = vpop.eup %4603  ;;  %v3093_v63 = vmul.f32 1.442695, %v4602_v3 }
 0x689   :  { %4609 = vtanh.f32 %v3056_v34  ;;  %v3128_v15 = vsel %vm1838_vm2, %v5793_v6, 0.0  ;;  %v5802_v37 = vpop.eup %4605  ;;  %v3941_v34 = vld [vmem:[%s5985_s16] sm:$0x3] }
 0x68a   :  { %4611 = vtanh.f32 %v3060_v46  ;;  %3123 = vadd.xlane.f32.xlu1 %v3122_v19  ;;  %3129 = vadd.xlane.f32.xlu2 %v3128_v15  ;;  %v4608_v23 = vpop.eup %4607  ;;  %v3140_v22 = vsel %vm1838_vm2, %v5802_v37, 0.0 }
 0x68b   :  { %4613 = vpow2.f32 %v3093_v63  ;;  %3138 = vadd.xlane.f32.xlu0 %v3137_v2  ;;  %v3109_v24 = vmul.f32 1.442695, %v4608_v23  ;;  %v3414_v63 = vpop.f32.mrf.mxu3  ;;  %v3394_v2 = vpop.f32.mrf.mxu2 }
 0x68c   :  { %4615 = vpow2.f32 %v3101_v40  ;;  %v3415_v15 = vadd.f32 %v5685_v16, %v3414_v63 }
 0x68d   :  { %4617 = vpow2.f32 %v3105_v25 }
 0x68e   :  { %v2986_v31 = vpop.permute.xlu1 %2985 }
 0x68f   :  { %v4610_v32 = vpop.eup %4609  ;;  %v3062_v33 = vadd.f32 %v3030_v27, %v2986_v31 }
 0x690   :  { %v4612_v30 = vpop.eup %4611  ;;  %v3095_v4 = vmul.f32 1.442695, %v4610_v32  ;;  %v3395_v32 = vadd.f32 %v5678_v7, %v3394_v2 }
 0x691   :  { %v5804_v29 = vpop.eup %4613  ;;  %4619 = vtanh.f32 %v3062_v33  ;;  %v3103_v44 = vmul.f32 1.442695, %v4612_v30  ;;  %v3434_v33 = vpop.f32.mrf.mxu0 }
 0x692   :  { %4621 = vpow2.f32 %v3095_v4  ;;  %v3131_v14 = vsel %vm1838_vm2, %v5804_v29, 0.0  ;;  %3141 = vadd.xlane.f32.xlu1 %v3140_v22  ;;  %v5811_v41 = vpop.eup %4615  ;;  %v3435_v7 = vadd.f32 %v5735_v17, %v3434_v33 }
 0x693   :  { %3132 = vadd.xlane.f32.xlu2 %v3131_v14  ;;  %v5813_v61 = vpop.eup %4617  ;;  %4623 = vpow2.f32 %v3109_v24  ;;  %v3143_v12 = vsel %vm1838_vm2, %v5811_v41, 0.0 }
 0x694   :  { %4625 = vpow2.f32 %v3103_v44  ;;  %v3149_v26 = vsel %vm1838_vm2, %v5813_v61, 0.0  ;;  %v3454_v44 = vpop.f32.mrf.mxu1 }
 0x696   :  { %v3000_v5 = vpop.permute.xlu1 %2999 }
 0x697   :  { %v4620_v51 = vpop.eup %4619  ;;  %v3064_v47 = vadd.f32 %v3032_v0, %v3000_v5  ;;  %v3494_v0 = vpop.f32.mrf.mxu3 }
 0x698   :  { %v5815_v11 = vpop.eup %4621  ;;  %v3107_v35 = vmul.f32 1.442695, %v4620_v51 }
 0x699   :  { %4627 = vtanh.f32 %v3064_v47  ;;  %v3134_v49 = vsel %vm1838_vm2, %v5815_v11, 0.0  ;;  %v5823_v8 = vpop.eup %4623 }
 0x69a   :  { %4629 = vpow2.f32 %v3107_v35  ;;  %3135 = vadd.xlane.f32.xlu0 %v3134_v49  ;;  %3144 = vadd.xlane.f32.xlu1 %v3143_v12  ;;  %v5825_v52 = vpop.eup %4625  ;;  %v3155_v9 = vsel %vm1838_vm2, %v5823_v8, 0.0  ;;  %v3455_v35 = vadd.f32 %v5738_v62, %v3454_v44  ;;  %v3495_v12 = vadd.f32 %v5694_v20, %v3494_v0 }
 0x69b   :  { %3150 = vadd.xlane.f32.xlu2 %v3149_v26  ;;  %v3146_v59 = vsel %vm1838_vm2, %v5825_v52, 0.0  ;;  %v3949_v26 = vsel %vm241_vm0, %v5616_v43, 0.0  ;;  %v3942_v62 = vsel %vm241_vm0, %v5612_v57, 0.0 }
 0x69f   :  { %v4628_v53 = vpop.eup %4627 }
 0x6a0   :  { %v5827_v48 = vpop.eup %4629  ;;  %v3111_v10 = vmul.f32 1.442695, %v4628_v53 }
 0x6a1   :  { %v3152_v56 = vsel %vm1838_vm2, %v5827_v48, 0.0 }
 0x6a2   :  { %4631 = vpow2.f32 %v3111_v10  ;;  %3153 = vadd.xlane.f32.xlu0 %v3152_v56  ;;  %3156 = vadd.xlane.f32.xlu1 %v3155_v9 }
 0x6a3   :  { %3147 = vadd.xlane.f32.xlu2 %v3146_v59  ;;  %v3943_v59 = vrot.slane %v3942_v62, 4 }
 0x6a8   :  { %v5835_v46 = vpop.eup %4631 }
 0x6a9   :  { %v3158_v60 = vsel %vm1838_vm2, %v5835_v46, 0.0 }
 0x6aa   :  { %3159 = vadd.xlane.f32.xlu0 %v3158_v60 }
 0x6bb   :  { %3958 = vperm.xlu2 %4342, %v3940_v50   ;;  %3997 = vperm.xlu1 %4343, %v3941_v34   ;;  %v4007_v50 = vld [vmem:[%s5986_s18 + $0x18] sm:$0xff]  ;;  %v3944_v34 = vadd.f32 %v3943_v59, %v3942_v62 }
 0x6d4   :  { %v3118_v3 = vpop.xlane.xlu2 %3117 }
 0x6d5   :  { %4633 = vrcp.f32 %v3118_v3  ;;  %v3534_v3 = vpop.f32.mrf.mxu1 }
 0x6d6   :  { %v3535_v2 = vadd.f32 %v5746_v55, %v3534_v3  ;;  %v3988_v55 = vsel %vm2631_vm3, %v2736_v38, 0.0 }
 0x6db   :  { %v4634_v21 = vpop.eup %4633 }
 0x6dc   :  { %v3178_v19 = vmul.f32 %v4634_v21, %v5757_v45  ;;  %v3474_v45 = vpop.f32.mrf.mxu2 }
 0x6dd   :  { %v3475_v22 = vadd.f32 %v5689_v18, %v3474_v45 }
 0x6de   :  { %4269 = vmatmul.msk.f32.vlgmr.msra.gmra.mxu3 %vm563_vm1, %v3178_v19  ;;  %v4005_v19 = vld [vmem:[%s5986_s18 + $0x8] sm:$0xff] }
 0x6df   :  { %3762 = vmatpush.msra.mxu3 %v3415_v15 }
 0x6ed   :  { %v3115_v40 = vpop.xlane.xlu0 %3114 }
 0x6ee   :  { %4635 = vrcp.f32 %v3115_v40 }
 0x6f4   :  { %v4636_v25 = vpop.eup %4635 }
 0x6f5   :  { %v3177_v27 = vmul.f32 %v4636_v25, %v5773_v28  ;;  %v3127_v23 = vpop.xlane.xlu1 %3126  ;;  %v3121_v31 = vpop.xlane.xlu0 %3120 }
 0x6f6   :  { %4637 = vrcp.f32 %v3127_v23 }
 0x6f7   :  { %4639 = vrcp.f32 %v3121_v31  ;;  %4268 = vmatmul.msk.f32.vlgmr.msra.gmra.mxu2 %vm563_vm1, %v3177_v27  ;;  %v3945_v31 = vrot.slane %v3944_v34, 2 }
 0x6f8   :  { %3739 = vmatpush.msra.mxu2 %v3395_v32 }
 0x6f9   :  { %v3946_v33 = vadd.f32 %v3945_v31, %v3944_v34 }
 0x6fb   :  { %v3947_v0 = vrot.slane %v3946_v33, 1 }
 0x6fc   :  { %v4638_v16 = vpop.eup %4637 }
 0x6fd   :  { %v4640_v30 = vpop.eup %4639  ;;  %v3181_v4 = vmul.f32 %v4638_v16, %v5782_v36  ;;  %v3124_v42 = vpop.xlane.xlu1 %3123  ;;  %v4068_v16 = vld [vmem:[%s4971_s13 + $0x18] sm:$0xff] }
 0x6fe   :  { %v3130_v14 = vpop.xlane.xlu2 %3129  ;;  %v3179_v28 = vmul.f32 %v4640_v30, %v5778_v54  ;;  %4641 = vrcp.f32 %v3124_v42  ;;  %v3139_v24 = vpop.xlane.xlu0 %3138  ;;  %v3989_v30 = vrot.slane %v3988_v55, 4  ;;  %v4066_v42 = vld [vmem:[%s4971_s13 + $0x8] sm:$0xff] }
 0x6ff   :  { %4643 = vrcp.f32 %v3139_v24  ;;  %4272 = vmatmul.msk.f32.vlgmr.msrb.gmra.mxu2 %vm563_vm1, %v3181_v4 }
 0x700   :  { %4645 = vrcp.f32 %v3130_v14  ;;  %4270 = vmatmul.msk.f32.vlgmr.msra.gmra.mxu0 %vm563_vm1, %v3179_v28  ;;  %3831 = vmatpush.msrb.mxu2 %v3475_v22 }
 0x701   :  { %3785 = vmatpush.msra.mxu0 %v3435_v7  ;;  %v4065_v7 = vld [vmem:[%s4971_s13] sm:$0xff] }
 0x704   :  { %v4642_v36 = vpop.eup %4641 }
 0x705   :  { %v4644_v5 = vpop.eup %4643  ;;  %v3180_v18 = vmul.f32 %v4642_v36, %v5791_v39  ;;  %v3142_v51 = vpop.xlane.xlu1 %3141 }
 0x706   :  { %v3133_v54 = vpop.xlane.xlu2 %3132  ;;  %v4646_v47 = vpop.eup %4645  ;;  %v3185_v17 = vmul.f32 %v4644_v5, %v5789_v1  ;;  %4647 = vrcp.f32 %v3142_v51  ;;  %v3950_v1 = vrot.slane %v3949_v26, 4  ;;  %v3990_v5 = vadd.f32 %v3989_v30, %v3988_v55 }
 0x707   :  { %v3182_v49 = vmul.f32 %v4646_v47, %v5793_v6  ;;  %4649 = vrcp.f32 %v3133_v54  ;;  %4271 = vmatmul.msk.f32.vlgmr.msra.gmra.mxu1 %vm563_vm1, %v3180_v18  ;;  %v3514_v6 = vpop.f32.mrf.mxu0 }
 0x708   :  { %4276 = vmatmul.msk.f32.vlgmr.msra.gmra.mxu2 %vm563_vm1, %v3185_v17  ;;  %3808 = vmatpush.msra.mxu1 %v3455_v35  ;;  %v3951_v60 = vadd.f32 %v3950_v1, %v3949_v26  ;;  %v3515_v57 = vadd.f32 %v5743_v13, %v3514_v6  ;;  %v3991_v17 = vrot.slane %v3990_v5, 2 }
 0x709   :  { %4273 = vmatmul.msk.f32.vlgmr.msrb.gmra.mxu3 %vm563_vm1, %v3182_v49 }
 0x70a   :  { %3854 = vmatpush.msrb.mxu3 %v3495_v12  ;;  %v3952_v63 = vrot.slane %v3951_v60, 2  ;;  %v3992_v1 = vadd.f32 %v3991_v17, %v3990_v5 }
 0x70c   :  { %v4648_v39 = vpop.eup %4647  ;;  %v3953_v45 = vadd.f32 %v3952_v63, %v3951_v60  ;;  %v3993_v6 = vrot.slane %v3992_v1, 1 }
 0x70d   :  { %v3136_v53 = vpop.xlane.xlu0 %3135  ;;  %v4650_v10 = vpop.eup %4649  ;;  %v3186_v43 = vmul.f32 %v4648_v39, %v5802_v37  ;;  %v4006_v37 = vld [vmem:[%s5986_s18 + $0x10] sm:$0xff] }
 0x70e   :  { %4651 = vrcp.f32 %v3136_v53  ;;  %v3145_v20 = vpop.xlane.xlu1 %3144  ;;  %v3151_v56 = vpop.xlane.xlu2 %3150  ;;  %v3183_v9 = vmul.f32 %v4650_v10, %v5804_v29  ;;  %v3954_v4 = vrot.slane %v3953_v45, 1 }
 0x70f   :  { %4653 = vrcp.f32 %v3145_v20 }
 0x710   :  { %4655 = vrcp.f32 %v3151_v56  ;;  %4274 = vmatmul.msk.f32.vlgmr.msrb.gmra.mxu0 %vm563_vm1, %v3183_v9  ;;  %v3955_v51 = vadd.f32 %v3954_v4, %v3953_v45 }
 0x711   :  { %4277 = vmatmul.msk.f32.vlgmr.msra.gmra.mxu3 %vm563_vm1, %v3186_v43  ;;  %3877 = vmatpush.msrb.mxu0 %v3515_v57  ;;  %v3994_v43 = vadd.f32 %v3993_v6, %v3992_v1 }
 0x712   :  { %4057 = vmatpush.msra.mxu3 %v4007_v50 }
 0x714   :  { %v4652_v21 = vpop.eup %4651  ;;  %4058 = vmatpush.msra.mxu3 %v4006_v37 }
 0x715   :  { %v4654_v15 = vpop.eup %4653  ;;  %v3184_v29 = vmul.f32 %v4652_v21, %v5815_v11  ;;  %v3154_v13 = vpop.xlane.xlu0 %3153  ;;  %v4004_v11 = vld [vmem:[%s5986_s18] sm:$0xff] }
 0x716   :  { %v4656_v40 = vpop.eup %4655  ;;  %v3187_v25 = vmul.f32 %v4654_v15, %v5811_v41  ;;  %4657 = vrcp.f32 %v3154_v13  ;;  %v3157_v27 = vpop.xlane.xlu1 %3156  ;;  %4059 = vmatpush.msra.mxu3 %v4005_v19  ;;  %v4067_v41 = vld [vmem:[%s4971_s13 + $0x10] sm:$0xff]  ;;  %s5987_s13 = sld [smem:[#allocation21_spill]] }
 0x717   :  { %v3148_v23 = vpop.xlane.xlu2 %3147  ;;  %v3189_v32 = vmul.f32 %v4656_v40, %v5813_v61  ;;  %4659 = vrcp.f32 %v3157_v27  ;;  %4275 = vmatmul.msk.f32.vlgmr.msrb.gmra.mxu1 %vm563_vm1, %v3184_v29  ;;  %v3981_v61 = vsel %vm2631_vm3, %v5705_v58, 0.0 }
 0x718   :  { %4661 = vrcp.f32 %v3148_v23  ;;  %3900 = vmatpush.msrb.mxu1 %v3535_v2  ;;  %4278 = vmatmul.msk.f32.vlgmr.msra.gmra.mxu0 %vm563_vm1, %v3187_v25  ;;  %v3982_v22 = vrot.slane %v3981_v61, 4 }
 0x719   :  { %4280 = vmatmul.msk.f32.vlgmr.msrb.gmra.mxu2 %vm563_vm1, %v3189_v32  ;;  %4060 = vmatpush.msra.mxu3 %v4004_v11 }
 0x71a   :  { %4087 = vmatpush.msra.mxu0 %v4068_v16 }
 0x71c   :  { %v4658_v14 = vpop.eup %4657  ;;  %4088 = vmatpush.msra.mxu0 %v4067_v41  ;;  %v4375_v4 = vld [vmem:[%s5987_s13] ss:$0 sm:$0xff] }
 0x71d   :  { %v4660_v38 = vpop.eup %4659  ;;  %v3190_v28 = vmul.f32 %v4658_v14, %v5827_v48  ;;  %v3160_v24 = vpop.xlane.xlu0 %3159  ;;  %v3983_v48 = vadd.f32 %v3982_v22, %v3981_v61  ;;  %v4010_v22 = vld [vmem:[%s4966_s19 + $0x10] sm:$0xff] }
 0x71e   :  { %v4662_v44 = vpop.eup %4661  ;;  %v3191_v36 = vmul.f32 %v4660_v38, %v5823_v8  ;;  %4663 = vrcp.f32 %v3160_v24  ;;  %4089 = vmatpush.msra.mxu0 %v4066_v42  ;;  %v3948_v8 = vadd.f32 %v3947_v0, %v3946_v33  ;;  %v4011_v38 = vld [vmem:[%s4966_s19 + $0x18] sm:$0xff] }
 0x71f   :  { %v5892_v58 = vpop.permute.xlu2 %3958  ;;  %v3188_v18 = vmul.f32 %v4662_v44, %v5825_v52  ;;  %4281 = vmatmul.msk.f32.vlgmr.msrb.gmra.mxu3 %vm563_vm1, %v3190_v28  ;;  %v3984_v12 = vrot.slane %v3983_v48, 2  ;;  %4031 = vmatpush.msra.mxu2 %v4011_v38 }
 0x720   :  { %v3960_v54 = vrot.slane %v5892_v58, 1  ;;  %4090 = vmatpush.msra.mxu0 %v4065_v7  ;;  %v3963_v52 = vmul.f32 %v5892_v58, %v3948_v8  ;;  %v4009_v7 = vld [vmem:[%s4966_s19 + $0x8] sm:$0xff] }
 0x721   :  { %4279 = vmatmul.msk.f32.vlgmr.msra.gmra.mxu1 %vm563_vm1, %v3188_v18  ;;  %4282 = vmatmul.msk.f32.vlgmr.msrb.gmra.mxu0 %vm563_vm1, %v3191_v36  ;;  %v3985_v39 = vadd.f32 %v3984_v12, %v3983_v48  ;;  %v4008_v36 = vld [vmem:[%s4966_s19] sm:$0xff]  ;;  %s4787_s19 = smov [#allocation7]  }
 0x722   :  { %v3964_v47 = vmul.f32 %v3960_v54, %v3955_v51  ;;  %4032 = vmatpush.msra.mxu2 %v4010_v22  ;;  %s4108_s22 = sshll.u32 %s4787_s19, 4  ;;  %s4109_s22 = int_to_ptr.vmem [resolvable:$true] %s4108_s22 }
 0x723   :  { %v3986_v53 = vrot.slane %v3985_v39, 1 }
 0x724   :  { %v4041_v35 = vrot.slane %v3964_v47, 7  ;;  %v4664_v49 = vpop.eup %4663  ;;  %4033 = vmatpush.msra.mxu2 %v4009_v7 }
 0x725   :  { %v3192_v26 = vmul.f32 %v4664_v49, %v5835_v46  ;;  %v3987_v56 = vadd.f32 %v3986_v53, %v3985_v39 }
 0x726   :  { %v4042_v62 = vsel %vm4015_vm4, %v4041_v35, %v3963_v52  ;;  %4034 = vmatpush.msra.mxu2 %v4008_v36 }
 0x727   :  { %4285 = vmatmul.msk.f32.vlgmr.msra.gmra.mxu3 %vm241_vm0, %v4042_v62 }
 0x729   :  { %4283 = vmatmul.msk.f32.vlgmr.msrb.gmra.mxu1 %vm563_vm1, %v3192_v26 }
 0x72d   :  { %v3998_v10 = vpop.permute.xlu1 %3997 }
 0x72e   :  { %v3999_v20 = vrot.slane %v3998_v10, 1  ;;  %v4002_v9 = vmul.f32 %v3998_v10, %v3987_v56 }
 0x730   :  { %v4003_v59 = vmul.f32 %v3999_v20, %v3994_v43 }
 0x732   :  { %v4071_v60 = vrot.slane %v4003_v59, 7 }
 0x734   :  { %v4072_v46 = vsel %vm4015_vm4, %v4071_v60, %v4002_v9 }
 0x735   :  { %4286 = vmatmul.msk.f32.vlgmr.msra.gmra.mxu0 %vm241_vm0, %v4072_v46 }
 0x761   :  { %v3580_v50 = vpop.f32.mrf.mxu3 }
 0x762   :  { %v3906_v3 = vsel %vm2631_vm3, %v3580_v50, 0.0 }
 0x77a   :  { %v3557_v57 = vpop.f32.mrf.mxu2 }
 0x77b   :  { %v3905_v34 = vsel %vm2631_vm3, %v3557_v57, 0.0 }
 0x77c   :  { %v3907_v63 = vadd.f32 %v3906_v3, %v3905_v34 }
 0x77d   :  { %v3603_v37 = vpop.f32.mrf.mxu0 }
 0x77e   :  { %v3908_v19 = vsel %vm2631_vm3, %v3603_v37, 0.0 }
 0x77f   :  { %v3909_v29 = vadd.f32 %v3908_v19, %v3907_v63 }
 0x782   :  { %v3649_v13 = vpop.f32.mrf.mxu2 }
 0x783   :  { %v3912_v27 = vsel %vm2631_vm3, %v3649_v13, 0.0 }
 0x784   :  { %v3626_v21 = vpop.f32.mrf.mxu1 }
 0x785   :  { %v3910_v15 = vsel %vm2631_vm3, %v3626_v21, 0.0 }
 0x786   :  { %v3911_v40 = vadd.f32 %v3910_v15, %v3909_v29 }
 0x788   :  { %v3913_v31 = vadd.f32 %v3912_v27, %v3911_v40 }
 0x78b   :  { %v3741_v41 = vpop.f32.mrf.mxu2 }
 0x78c   :  { %v3672_v2 = vpop.f32.mrf.mxu3  ;;  %v3920_v14 = vsel %vm2631_vm3, %v3741_v41, 0.0 }
 0x78d   :  { %v3695_v25 = vpop.f32.mrf.mxu0  ;;  %v3914_v23 = vsel %vm2631_vm3, %v3672_v2, 0.0  ;;  %v4376_v2 = vld [vmem:[%s4976_s27] ss:$0 sm:$0xff] }
 0x78e   :  { %v3915_v32 = vadd.f32 %v3914_v23, %v3913_v31  ;;  %v3916_v45 = vsel %vm2631_vm3, %v3695_v25, 0.0 }
 0x790   :  { %v3917_v61 = vadd.f32 %v3916_v45, %v3915_v32 }
 0x794   :  { %v3718_v11 = vpop.f32.mrf.mxu1  ;;  %v3764_v16 = vpop.f32.mrf.mxu3 }
 0x795   :  { %v3918_v55 = vsel %vm2631_vm3, %v3718_v11, 0.0  ;;  %v3921_v33 = vsel %vm2631_vm3, %v3764_v16, 0.0  ;;  %v3787_v42 = vpop.f32.mrf.mxu0 }
 0x796   :  { %v3919_v30 = vadd.f32 %v3918_v55, %v3917_v61  ;;  %v3922_v28 = vadd.f32 %v3921_v33, %v3920_v14  ;;  %v3923_v24 = vsel %vm2631_vm3, %v3787_v42, 0.0 }
 0x798   :  { %v3938_v44 = vadd.f32 %v4375_v4, %v3919_v30  ;;  %v3924_v0 = vadd.f32 %v3923_v24, %v3922_v28 }
 0x79a   :  { %v3965_v48 = vsel %vm2631_vm3, %v3938_v44, 0.0 }
 0x79b   :  { %v3966_v52 = vrot.slane %v3965_v48, 4 }
 0x79c   :  { %v3833_v5 = vpop.f32.mrf.mxu2 }
 0x79d   :  { %v3927_v8 = vsel %vm2631_vm3, %v3833_v5, 0.0  ;;  %v3967_v6 = vadd.f32 %v3966_v52, %v3965_v48 }
 0x79e   :  { %v3810_v18 = vpop.f32.mrf.mxu1  ;;  %v3879_v35 = vpop.f32.mrf.mxu0 }
 0x79f   :  { %v3925_v51 = vsel %vm2631_vm3, %v3810_v18, 0.0  ;;  %v3931_v62 = vsel %vm2631_vm3, %v3879_v35, 0.0  ;;  %v3968_v20 = vrot.slane %v3967_v6, 2 }
 0x7a0   :  { %v3926_v47 = vadd.f32 %v3925_v51, %v3924_v0 }
 0x7a1   :  { %v3969_v9 = vadd.f32 %v3968_v20, %v3967_v6 }
 0x7a2   :  { %v3856_v17 = vpop.f32.mrf.mxu3  ;;  %v3928_v49 = vadd.f32 %v3927_v8, %v3926_v47 }
 0x7a3   :  { %v3929_v26 = vsel %vm2631_vm3, %v3856_v17, 0.0  ;;  %v3970_v57 = vrot.slane %v3969_v9, 1 }
 0x7a4   :  { %v3930_v12 = vadd.f32 %v3929_v26, %v3928_v49 }
 0x7a5   :  { %v3971_v37 = vadd.f32 %v3970_v57, %v3969_v9 }
 0x7a6   :  { %v3902_v1 = vpop.f32.mrf.mxu1  ;;  %v3932_v39 = vadd.f32 %v3931_v62, %v3930_v12 }
 0x7a7   :  { %v3933_v53 = vsel %vm2631_vm3, %v3902_v1, 0.0  ;;  %v3979_v21 = vmul.f32 %v3971_v37, %v5892_v58 }
 0x7a8   :  { %v3934_v10 = vadd.f32 %v3933_v53, %v3932_v39 }
 0x7aa   :  { %v3939_v43 = vadd.f32 %v4375_v4, %v3934_v10  ;;  %v4062_v29 = vpop.f32.mrf.mxu3 }
 0x7ac   :  { %v3972_v56 = vsel %vm2631_vm3, %v3939_v43, 0.0 }
 0x7ad   :  { %v3973_v59 = vrot.slane %v3972_v56, 4 }
 0x7af   :  { %v3974_v60 = vadd.f32 %v3973_v59, %v3972_v56 }
 0x7b1   :  { %v3975_v46 = vrot.slane %v3974_v60, 2 }
 0x7b2   :  { %v4092_v25 = vpop.f32.mrf.mxu0 }
 0x7b3   :  { %v3976_v50 = vadd.f32 %v3975_v46, %v3974_v60 }
 0x7b5   :  { %v3977_v34 = vrot.slane %v3976_v50, 1 }
 0x7b7   :  { %v3978_v3 = vadd.f32 %v3977_v34, %v3976_v50 }
 0x7b9   :  { %v3980_v63 = vmul.f32 %v3978_v3, %v3960_v54 }
 0x7bb   :  { %v4014_v19 = vrot.slane %v3980_v63, 7 }
 0x7bd   :  { %v4016_v15 = vsel %vm4015_vm4, %v4014_v19, %v3979_v21 }
 0x7be   :  { %4284 = vmatmul.msk.f32.vlgmr.msra.gmra.mxu2 %vm241_vm0, %v4016_v15 }
 0x841   :  { %v4036_v13 = vpop.f32.mrf.mxu2 }
 0x842   :  { %v4063_v40 = vadd.f32 %v4062_v29, %v4036_v13 }
 0x844   :  { %v4095_v27 = vadd.f32 %v4092_v25, %v4063_v40 }
 0x846   :  { %v4100_v54 = vadd.f32 %v4376_v2, %v4095_v27 }
 0x848   :  { %4102 = vst.msk [vmem:[#allocation7] sm:$0x3] %vm4101_vm5, %v4100_v54 }
 0x849   :  { %4738 = shalt.err (!%p4735_p0)
}
 0x84a   :  { %4113 = dma.vmem_to_hbm [thread:$0]  %s4109_s22, 32, %s4111_s0, [#allocation4]  }
 0x84b   :  { %4743 = dma.done.wait [#allocation4], 32  }
 0x84c   :  { %4744 = vsyncadd [#allocation4], 4294967264 }
 0x84d   :  { %4118 = vsyncpa [#allocation3], 1 }
 0x84e   :  { %4119 = vsyncpa [#allocation6], 1 }
 0x84f   :  { %4120 = vsyncpa [#allocation4], 1 }

</bundles_post_ra>
